<compile_context>
chip_gen: v7x
topology: tpu7x:2x2x1
jax: 0.10.0
libtpu: 0.0.40
codegen_flags: <defaults>
</compile_context>

<pallas_src>
import functools

import jax
import jax.numpy as jnp
from jax.experimental import pallas as pl
from jax.experimental.pallas import tpu as pltpu

NUM_RELATIONS = 20
LRELU_SLOPE = 0.01
BN_EPS = 1e-5


def _round_up(x, m):
    return ((x + m - 1) // m) * m


def _vmem_budget_bytes():
    """Generation-aware VMEM budget with ~25% headroom for compiler scratch.

    v5e/v6e: 128 MiB -> ~96 MiB usable; v7x: 64 MiB -> ~48 MiB usable.
    Falls back to the v7x-safe number when hardware introspection is
    unavailable (e.g. interpret mode / CPU).
    """
    try:
        cap = int(pltpu.get_tpu_info().vmem_capacity_bytes)
    except Exception:
        cap = 64 * 1024 * 1024
    return (cap * 3) // 4


def _choose_tiling(n, cin, cout, num_rel, budget):
    """Pick (row_tile tm, relation_block rb, padded N).

    Accounts for ALL VMEM residents (adjacency double-buffer, resident bf16 x,
    row-tiled f32 x, inv-degree tile, weight stack, output block, message
    scratch), not just the adjacency slab.
    """
    rel_divisors = [d for d in range(num_rel, 0, -1) if num_rel % d == 0]

    def usage(tm, rb, npad):
        return (2 * rb * tm * npad * 1            # int8 adjacency block (double buffered)
                + 2 * npad * cin * 2              # resident bf16 x
                + 2 * tm * cin * 4                # f32 x row tile (root path)
                + 2 * tm * num_rel * 4            # inv-degree row tile
                + 2 * num_rel * cin * cout * 4    # relation weight stack (resident)
                + 2 * cin * cout * 4              # root weight
                + 2 * tm * cout * 4               # output block
                + num_rel * tm * cin * 4          # stacked-message VMEM scratch
                + 4096)                           # bias / BN scale+shift

    for tm_cand in (1024, 512, 256, 128, 64, 32, 16, 8):
        tm = min(tm_cand, _round_up(n, 8))
        npad = _round_up(n, tm)
        for rb in rel_divisors:
            if usage(tm, rb, npad) <= budget:
                return tm, rb, npad
    # Bounded fallback (never tm == N): smallest legal tile.
    return 8, 1, _round_up(n, 8)


# ---------------------------------------------------------------------------
# Fused RGCNConv (+ optional BatchNorm1d(inference) + LeakyReLU) kernel.
# grid = (row_tiles, relation_groups); relation axis innermost ("arbitrary").
# ---------------------------------------------------------------------------
def _rgcn_layer_kernel(adj_ref, xnb_ref, xrow_ref, invdeg_ref, w_ref, root_ref,
                       bias_ref, scale_ref, shift_ref, out_ref, msgs_ref,
                       *, rel_block, num_rel, fuse_bn_lrelu):
    # NOTE: program_id / num_programs are only called at the top level of the
    # kernel body (never inside a pl.when body).
    g = pl.program_id(1)
    r0 = g * rel_block
    is_last_group = g == pl.num_programs(1) - 1

    # ---- streaming phase: raw neighbor sums for this relation group --------
    # int8 edge counts -> bf16 (VPU widen), pure-bf16 MXU matmul, f32 accumulate.
    x_nb = xnb_ref[...]                                       # (Npad, Cin) bf16, resident
    for j in range(rel_block):                                # static unroll
        msg = jnp.dot(adj_ref[j].astype(jnp.bfloat16), x_nb,
                      preferred_element_type=jnp.float32)     # (tm, Cin) f32
        msgs_ref[r0 + j] = msg                                # dynamic leading-dim store

    # ---- epilogue (once per row tile): root + projections + BN + LeakyReLU -
    @pl.when(is_last_group)
    def _():
        acc = jnp.dot(xrow_ref[...], root_ref[...],
                      preferred_element_type=jnp.float32) + bias_ref[...]
        inv_deg = invdeg_ref[...]                             # (tm, R) f32, exact 1/deg
        for r in range(num_rel):                              # static: no dynamic lane slicing
            scaled = msgs_ref[r] * inv_deg[:, r:r + 1]        # exact 'mean' aggregation
            acc = acc + jnp.dot(scaled, w_ref[r],
                                preferred_element_type=jnp.float32)
        if fuse_bn_lrelu:                                     # trace-time flag
            y = acc * scale_ref[...] + shift_ref[...]
            acc = jnp.where(y >= 0.0, y, LRELU_SLOPE * y)
        out_ref[...] = acc.astype(out_ref.dtype)


def rgcn_layer(x, adj_i8, inv_deg_t, weight, root, bias, scale, shift,
               *, tm, rel_block, fuse_bn_lrelu):
    """One RGCNConv layer (optionally fused with BN+LeakyReLU).

    x:[Npad,Cin] f32, adj_i8:[R,Npad,Npad] int8 edge counts,
    inv_deg_t:[Npad,R] f32, weight:[R,Cin,Cout], root:[Cin,Cout], bias:[Cout].
    """
    npad, cin = x.shape
    num_rel, _, cout = weight.shape
    assert npad % tm == 0 and num_rel % rel_block == 0
    budget = _vmem_budget_bytes()
    x_nb = x.astype(jnp.bfloat16)

    kernel = functools.partial(_rgcn_layer_kernel, rel_block=rel_block,
                               num_rel=num_rel, fuse_bn_lrelu=fuse_bn_lrelu)
    return pl.pallas_call(
        kernel,
        out_shape=jax.ShapeDtypeStruct((npad, cout), jnp.float32),
        grid_spec=pltpu.PrefetchScalarGridSpec(
            num_scalar_prefetch=0,
            grid=(npad // tm, num_rel // rel_block),
            in_specs=[
                pl.BlockSpec((rel_block, tm, npad), lambda m, g: (g, m, 0)),   # adjacency
                pl.BlockSpec((npad, cin), lambda m, g: (0, 0)),                # x bf16 (resident)
                pl.BlockSpec((tm, cin), lambda m, g: (m, 0)),                  # x f32 row tile
                pl.BlockSpec((tm, num_rel), lambda m, g: (m, 0)),              # 1/deg row tile
                pl.BlockSpec((num_rel, cin, cout), lambda m, g: (0, 0, 0)),    # W stack (resident)
                pl.BlockSpec((cin, cout), lambda m, g: (0, 0)),                # root
                pl.BlockSpec((1, cout), lambda m, g: (0, 0)),                  # bias
                pl.BlockSpec((1, cout), lambda m, g: (0, 0)),                  # BN scale
                pl.BlockSpec((1, cout), lambda m, g: (0, 0)),                  # BN shift
            ],
            out_specs=pl.BlockSpec((tm, cout), lambda m, g: (m, 0)),
            scratch_shapes=[pltpu.VMEM((num_rel, tm, cin), jnp.float32)],
        ),
        compiler_params=pltpu.CompilerParams(
            dimension_semantics=("parallel", "arbitrary"),
            vmem_limit_bytes=budget,
        ),
    )(adj_i8, x_nb, x, inv_deg_t, weight, root,
      bias.reshape(1, cout), scale.reshape(1, cout), shift.reshape(1, cout))


# ---------------------------------------------------------------------------
# Glue: graph -> dense per-relation int8 edge counts + exact 1/deg table.
# TODO(synk): replace with CSR neighbor lists + gather/segment-sum kernel for
# sparse graphs (drops the dense R*N^2 stream).
# ---------------------------------------------------------------------------
def build_graph_tensors(edge_index, edge_type, num_nodes_padded, num_relations):
    src = edge_index[0]
    dst = edge_index[1]
    counts = jnp.zeros((num_relations, num_nodes_padded, num_nodes_padded), jnp.float32)
    counts = counts.at[edge_type, dst, src].add(1.0)          # messages flow src -> dst
    deg = counts.sum(axis=2)                                  # (R, Npad) per-relation in-degree
    inv_deg = jnp.where(deg > 0.0, 1.0 / jnp.maximum(deg, 1.0), 0.0)
    # Edge multiplicities are small integers -> int8 is exact (halves the HBM
    # stream vs bf16).  TODO(synk): >127 duplicate identical edges would clip.
    adj_i8 = counts.astype(jnp.int8)
    inv_deg_t = jnp.transpose(inv_deg)                        # (Npad, R), row-tiled in-kernel
    return adj_i8, inv_deg_t


# ---------------------------------------------------------------------------
# Parameter init (deterministic) and full forward pass.
# ---------------------------------------------------------------------------
def init_params(key, num_layers, in_channels, num_relations=NUM_RELATIONS):
    layers, norms = [], []
    dims = [(in_channels, in_channels)] * (num_layers - 1) + [(in_channels, 1)]
    for (cin, cout) in dims:
        key, k1, k2 = jax.random.split(key, 3)
        glorot = (6.0 / (cin + cout)) ** 0.5
        layers.append(dict(
            weight=jax.random.uniform(k1, (num_relations, cin, cout), jnp.float32,
                                      minval=-glorot, maxval=glorot),
            root=jax.random.uniform(k2, (cin, cout), jnp.float32,
                                    minval=-glorot, maxval=glorot),
            bias=jnp.zeros((cout,), jnp.float32),
        ))
    for _ in range(num_layers - 1):
        norms.append(dict(
            gamma=jnp.ones((in_channels,), jnp.float32),
            beta=jnp.zeros((in_channels,), jnp.float32),
            mean=jnp.zeros((in_channels,), jnp.float32),
            var=jnp.ones((in_channels,), jnp.float32),
        ))
    return dict(layers=layers, norms=norms)


def var_rgcn_forward(params, x_pad, adj_i8, inv_deg_t, *, tm, rel_block):
    layers = params["layers"]
    norms = params["norms"]
    h = x_pad
    for i in range(len(layers) - 1):
        lp, bn = layers[i], norms[i]
        # BN scale/shift precomputed in the wrapper (no per-element rsqrt in-kernel).
        scale = bn["gamma"] * jax.lax.rsqrt(bn["var"] + BN_EPS)
        shift = bn["beta"] - bn["mean"] * scale
        h = rgcn_layer(h, adj_i8, inv_deg_t, lp["weight"], lp["root"], lp["bias"],
                       scale, shift, tm=tm, rel_block=rel_block, fuse_bn_lrelu=True)
        # TODO(synk): Dropout(p=0.1) is identity in inference mode.
    lp = layers[-1]
    cout = lp["weight"].shape[-1]
    return rgcn_layer(h, adj_i8, inv_deg_t, lp["weight"], lp["root"], lp["bias"],
                      jnp.ones((cout,), jnp.float32), jnp.zeros((cout,), jnp.float32),
                      tm=tm, rel_block=rel_block, fuse_bn_lrelu=False)


# ---------------------------------------------------------------------------
# Pure-JAX reference (no Pallas) mirroring the kernel numerics (bf16 x for the
# neighbor matmul, exact int8 adjacency counts, exact 1/deg mean weights).
# ---------------------------------------------------------------------------
def _rgcn_conv_ref(x, adj_f32, inv_deg, weight, root, bias):
    hi = jax.lax.Precision.HIGHEST
    out = jnp.dot(x, root, precision=hi) + bias
    x_nb = x.astype(jnp.bfloat16).astype(jnp.float32)
    msgs = jnp.einsum("rij,jc->ric", adj_f32, x_nb, precision=hi)
    msgs = msgs * inv_deg[:, :, None]
    return out + jnp.einsum("ric,rcd->id", msgs, weight, precision=hi)


def _forward_ref(params, x_pad, adj_i8, inv_deg_t):
    adj_f32 = adj_i8.astype(jnp.float32)
    inv_deg = jnp.transpose(inv_deg_t)        # (R, Npad)
    layers = params["layers"]
    norms = params["norms"]
    h = x_pad
    for i in range(len(layers) - 1):
        lp, bn = layers[i], norms[i]
        h = _rgcn_conv_ref(h, adj_f32, inv_deg, lp["weight"], lp["root"], lp["bias"])
        scale = bn["gamma"] * jax.lax.rsqrt(bn["var"] + BN_EPS)
        shift = bn["beta"] - bn["mean"] * scale
        y = h * scale + shift
        h = jnp.where(y >= 0.0, y, LRELU_SLOPE * y)
    lp = layers[-1]
    return _rgcn_conv_ref(h, adj_f32, inv_deg, lp["weight"], lp["root"], lp["bias"])


if __name__ == "__main__":
    N_NODES = 32
    IN_CHANNELS = 32
    N_EDGES = 64
    NUM_LAYERS = 2

    key = jax.random.PRNGKey(0)
    key, kx, ke, kt, kp = jax.random.split(key, 5)

    x = jax.random.normal(kx, (N_NODES, IN_CHANNELS), jnp.float32)
    edge_index = jax.random.randint(ke, (2, N_EDGES), 0, N_NODES, dtype=jnp.int32)
    edge_attr = jax.random.randint(kt, (N_EDGES,), 0, NUM_RELATIONS, dtype=jnp.int32)

    params = init_params(kp, NUM_LAYERS, IN_CHANNELS)

    # Tiling / padding decided once for the whole network (worst-case Cout).
    budget = _vmem_budget_bytes()
    tm, rel_block, npad = _choose_tiling(N_NODES, IN_CHANNELS, IN_CHANNELS,
                                         NUM_RELATIONS, budget)
    x_pad = jnp.zeros((npad, IN_CHANNELS), jnp.float32).at[:N_NODES].set(x)
    adj_i8, inv_deg_t = build_graph_tensors(edge_index, edge_attr, npad, NUM_RELATIONS)

    out_pad = var_rgcn_forward(params, x_pad, adj_i8, inv_deg_t,
                               tm=tm, rel_block=rel_block)
    out_pad = jax.block_until_ready(out_pad)
    out = out_pad[:N_NODES]

    ref = _forward_ref(params, x_pad, adj_i8, inv_deg_t)[:N_NODES]
    assert out.shape == (N_NODES, 1), out.shape
    assert jnp.allclose(out, ref, atol=2e-3, rtol=2e-3), (
        "mismatch vs JAX reference, max abs err = %f"
        % float(jnp.max(jnp.abs(out - ref))))

    print("KERNEL_OK")
</pallas_src>

<mosaic_0001>
module attributes {stable_mosaic.version = 11 : i64} {
  func.func @_rgcn_layer_kernel(%arg0: i32, %arg1: i32, %arg2: memref<20x32x32xi8, #tpu.memory_space<vmem>>, %arg3: memref<32x32xbf16, #tpu.memory_space<vmem>>, %arg4: memref<32x32xf32, #tpu.memory_space<vmem>>, %arg5: memref<32x20xf32, #tpu.memory_space<vmem>>, %arg6: memref<20x32x32xf32, #tpu.memory_space<vmem>>, %arg7: memref<32x32xf32, #tpu.memory_space<vmem>>, %arg8: memref<1x32xf32, #tpu.memory_space<vmem>>, %arg9: memref<1x32xf32, #tpu.memory_space<vmem>>, %arg10: memref<1x32xf32, #tpu.memory_space<vmem>>, %arg11: memref<32x32xf32, #tpu.memory_space<vmem>>, %arg12: memref<20x32x32xf32, #tpu.memory_space<vmem>>) attributes {dimension_semantics = [#tpu.dimension_semantics<parallel>, #tpu.dimension_semantics<arbitrary>], iteration_bounds = array<i64: 1, 1>, scalar_prefetch = 0 : i64, scratch_operands = 1 : i64, tpu.core_type = #tpu.core_type<tc>, window_params = [{transform_indices = @transform_0, window_bounds = array<i64: 20, 32, 32>}, {pipeline_mode = #tpu.pipeline_mode<synchronous>, transform_indices = @transform_1, window_bounds = array<i64: 32, 32>}, {transform_indices = @transform_2, window_bounds = array<i64: 32, 32>}, {transform_indices = @transform_3, window_bounds = array<i64: 32, 20>}, {pipeline_mode = #tpu.pipeline_mode<synchronous>, transform_indices = @transform_4, window_bounds = array<i64: 20, 32, 32>}, {pipeline_mode = #tpu.pipeline_mode<synchronous>, transform_indices = @transform_5, window_bounds = array<i64: 32, 32>}, {pipeline_mode = #tpu.pipeline_mode<synchronous>, transform_indices = @transform_6, window_bounds = array<i64: 1, 32>}, {pipeline_mode = #tpu.pipeline_mode<synchronous>, transform_indices = @transform_7, window_bounds = array<i64: 1, 32>}, {pipeline_mode = #tpu.pipeline_mode<synchronous>, transform_indices = @transform_8, window_bounds = array<i64: 1, 32>}, {transform_indices = @transform_9, window_bounds = array<i64: 32, 32>}]} {
    %c20_i32 = arith.constant 20 : i32
    %0 = arith.muli %arg1, %c20_i32 : i32
    %c0_i32 = arith.constant 0 : i32
    %1 = arith.cmpi eq, %arg1, %c0_i32 : i32
    %c0 = arith.constant 0 : index
    %c0_0 = arith.constant 0 : index
    %2 = vector.load %arg3[%c0, %c0_0] : memref<32x32xbf16, #tpu.memory_space<vmem>>, vector<32x32xbf16>
    %c0_1 = arith.constant 0 : index
    %c0_2 = arith.constant 0 : index
    %c0_3 = arith.constant 0 : index
    %3 = vector.load %arg2[%c0_1, %c0_2, %c0_3] : memref<20x32x32xi8, #tpu.memory_space<vmem>>, vector<1x32x32xi8>
    %4 = vector.shape_cast %3 : vector<1x32x32xi8> to vector<32x32xi8>
    %5 = arith.sitofp %4 : vector<32x32xi8> to vector<32x32xbf16>
    %cst = arith.constant dense<0.000000e+00> : vector<32x32xf32>
    %6 = tpu.matmul %5, %2, %cst {dimension_numbers = #tpu.dot_dimension_numbers<[1], [0], [0], [1], [0, 0, 1, 1], [], []>} : vector<32x32xbf16>, vector<32x32xbf16>, vector<32x32xf32> -> vector<32x32xf32>
    %c0_i32_4 = arith.constant 0 : i32
    %7 = arith.addi %0, %c0_i32_4 : i32
    %8 = arith.index_cast %7 : i32 to index
    %c0_5 = arith.constant 0 : index
    %c0_6 = arith.constant 0 : index
    %9 = vector.load %arg12[%8, %c0_5, %c0_6] : memref<20x32x32xf32, #tpu.memory_space<vmem>>, vector<1x32x32xf32>
    %10 = vector.shape_cast %9 : vector<1x32x32xf32> to vector<32x32xf32>
    %11 = vector.shape_cast %6 : vector<32x32xf32> to vector<1x32x32xf32>
    tpu.vector_store %arg12[%8, %c0_5, %c0_6], %11 {strides = array<i32>} : memref<20x32x32xf32, #tpu.memory_space<vmem>>, vector<1x32x32xf32>,
    %c1 = arith.constant 1 : index
    %c0_7 = arith.constant 0 : index
    %c0_8 = arith.constant 0 : index
    %12 = vector.load %arg2[%c1, %c0_7, %c0_8] : memref<20x32x32xi8, #tpu.memory_space<vmem>>, vector<1x32x32xi8>
    %13 = vector.shape_cast %12 : vector<1x32x32xi8> to vector<32x32xi8>
    %14 = arith.sitofp %13 : vector<32x32xi8> to vector<32x32xbf16>
    %cst_9 = arith.constant dense<0.000000e+00> : vector<32x32xf32>
    %15 = tpu.matmul %14, %2, %cst_9 {dimension_numbers = #tpu.dot_dimension_numbers<[1], [0], [0], [1], [0, 0, 1, 1], [], []>} : vector<32x32xbf16>, vector<32x32xbf16>, vector<32x32xf32> -> vector<32x32xf32>
    %c1_i32 = arith.constant 1 : i32
    %16 = arith.addi %0, %c1_i32 : i32
    %17 = arith.index_cast %16 : i32 to index
    %c0_10 = arith.constant 0 : index
    %c0_11 = arith.constant 0 : index
    %18 = vector.load %arg12[%17, %c0_10, %c0_11] : memref<20x32x32xf32, #tpu.memory_space<vmem>>, vector<1x32x32xf32>
    %19 = vector.shape_cast %18 : vector<1x32x32xf32> to vector<32x32xf32>
    %20 = vector.shape_cast %15 : vector<32x32xf32> to vector<1x32x32xf32>
    tpu.vector_store %arg12[%17, %c0_10, %c0_11], %20 {strides = array<i32>} : memref<20x32x32xf32, #tpu.memory_space<vmem>>, vector<1x32x32xf32>,
    %c2 = arith.constant 2 : index
    %c0_12 = arith.constant 0 : index
    %c0_13 = arith.constant 0 : index
    %21 = vector.load %arg2[%c2, %c0_12, %c0_13] : memref<20x32x32xi8, #tpu.memory_space<vmem>>, vector<1x32x32xi8>
    %22 = vector.shape_cast %21 : vector<1x32x32xi8> to vector<32x32xi8>
    %23 = arith.sitofp %22 : vector<32x32xi8> to vector<32x32xbf16>
    %cst_14 = arith.constant dense<0.000000e+00> : vector<32x32xf32>
    %24 = tpu.matmul %23, %2, %cst_14 {dimension_numbers = #tpu.dot_dimension_numbers<[1], [0], [0], [1], [0, 0, 1, 1], [], []>} : vector<32x32xbf16>, vector<32x32xbf16>, vector<32x32xf32> -> vector<32x32xf32>
    %c2_i32 = arith.constant 2 : i32
    %25 = arith.addi %0, %c2_i32 : i32
    %26 = arith.index_cast %25 : i32 to index
    %c0_15 = arith.constant 0 : index
    %c0_16 = arith.constant 0 : index
    %27 = vector.load %arg12[%26, %c0_15, %c0_16] : memref<20x32x32xf32, #tpu.memory_space<vmem>>, vector<1x32x32xf32>
    %28 = vector.shape_cast %27 : vector<1x32x32xf32> to vector<32x32xf32>
    %29 = vector.shape_cast %24 : vector<32x32xf32> to vector<1x32x32xf32>
    tpu.vector_store %arg12[%26, %c0_15, %c0_16], %29 {strides = array<i32>} : memref<20x32x32xf32, #tpu.memory_space<vmem>>, vector<1x32x32xf32>,
    %c3 = arith.constant 3 : index
    %c0_17 = arith.constant 0 : index
    %c0_18 = arith.constant 0 : index
    %30 = vector.load %arg2[%c3, %c0_17, %c0_18] : memref<20x32x32xi8, #tpu.memory_space<vmem>>, vector<1x32x32xi8>
    %31 = vector.shape_cast %30 : vector<1x32x32xi8> to vector<32x32xi8>
    %32 = arith.sitofp %31 : vector<32x32xi8> to vector<32x32xbf16>
    %cst_19 = arith.constant dense<0.000000e+00> : vector<32x32xf32>
    %33 = tpu.matmul %32, %2, %cst_19 {dimension_numbers = #tpu.dot_dimension_numbers<[1], [0], [0], [1], [0, 0, 1, 1], [], []>} : vector<32x32xbf16>, vector<32x32xbf16>, vector<32x32xf32> -> vector<32x32xf32>
    %c3_i32 = arith.constant 3 : i32
    %34 = arith.addi %0, %c3_i32 : i32
    %35 = arith.index_cast %34 : i32 to index
    %c0_20 = arith.constant 0 : index
    %c0_21 = arith.constant 0 : index
    %36 = vector.load %arg12[%35, %c0_20, %c0_21] : memref<20x32x32xf32, #tpu.memory_space<vmem>>, vector<1x32x32xf32>
    %37 = vector.shape_cast %36 : vector<1x32x32xf32> to vector<32x32xf32>
    %38 = vector.shape_cast %33 : vector<32x32xf32> to vector<1x32x32xf32>
    tpu.vector_store %arg12[%35, %c0_20, %c0_21], %38 {strides = array<i32>} : memref<20x32x32xf32, #tpu.memory_space<vmem>>, vector<1x32x32xf32>,
    %c4 = arith.constant 4 : index
    %c0_22 = arith.constant 0 : index
    %c0_23 = arith.constant 0 : index
    %39 = vector.load %arg2[%c4, %c0_22, %c0_23] : memref<20x32x32xi8, #tpu.memory_space<vmem>>, vector<1x32x32xi8>
    %40 = vector.shape_cast %39 : vector<1x32x32xi8> to vector<32x32xi8>
    %41 = arith.sitofp %40 : vector<32x32xi8> to vector<32x32xbf16>
    %cst_24 = arith.constant dense<0.000000e+00> : vector<32x32xf32>
    %42 = tpu.matmul %41, %2, %cst_24 {dimension_numbers = #tpu.dot_dimension_numbers<[1], [0], [0], [1], [0, 0, 1, 1], [], []>} : vector<32x32xbf16>, vector<32x32xbf16>, vector<32x32xf32> -> vector<32x32xf32>
    %c4_i32 = arith.constant 4 : i32
    %43 = arith.addi %0, %c4_i32 : i32
    %44 = arith.index_cast %43 : i32 to index
    %c0_25 = arith.constant 0 : index
    %c0_26 = arith.constant 0 : index
    %45 = vector.load %arg12[%44, %c0_25, %c0_26] : memref<20x32x32xf32, #tpu.memory_space<vmem>>, vector<1x32x32xf32>
    %46 = vector.shape_cast %45 : vector<1x32x32xf32> to vector<32x32xf32>
    %47 = vector.shape_cast %42 : vector<32x32xf32> to vector<1x32x32xf32>
    tpu.vector_store %arg12[%44, %c0_25, %c0_26], %47 {strides = array<i32>} : memref<20x32x32xf32, #tpu.memory_space<vmem>>, vector<1x32x32xf32>,
    %c5 = arith.constant 5 : index
    %c0_27 = arith.constant 0 : index
    %c0_28 = arith.constant 0 : index
    %48 = vector.load %arg2[%c5, %c0_27, %c0_28] : memref<20x32x32xi8, #tpu.memory_space<vmem>>, vector<1x32x32xi8>
    %49 = vector.shape_cast %48 : vector<1x32x32xi8> to vector<32x32xi8>
    %50 = arith.sitofp %49 : vector<32x32xi8> to vector<32x32xbf16>
    %cst_29 = arith.constant dense<0.000000e+00> : vector<32x32xf32>
    %51 = tpu.matmul %50, %2, %cst_29 {dimension_numbers = #tpu.dot_dimension_numbers<[1], [0], [0], [1], [0, 0, 1, 1], [], []>} : vector<32x32xbf16>, vector<32x32xbf16>, vector<32x32xf32> -> vector<32x32xf32>
    %c5_i32 = arith.constant 5 : i32
    %52 = arith.addi %0, %c5_i32 : i32
    %53 = arith.index_cast %52 : i32 to index
    %c0_30 = arith.constant 0 : index
    %c0_31 = arith.constant 0 : index
    %54 = vector.load %arg12[%53, %c0_30, %c0_31] : memref<20x32x32xf32, #tpu.memory_space<vmem>>, vector<1x32x32xf32>
    %55 = vector.shape_cast %54 : vector<1x32x32xf32> to vector<32x32xf32>
    %56 = vector.shape_cast %51 : vector<32x32xf32> to vector<1x32x32xf32>
    tpu.vector_store %arg12[%53, %c0_30, %c0_31], %56 {strides = array<i32>} : memref<20x32x32xf32, #tpu.memory_space<vmem>>, vector<1x32x32xf32>,
    %c6 = arith.constant 6 : index
    %c0_32 = arith.constant 0 : index
    %c0_33 = arith.constant 0 : index
    %57 = vector.load %arg2[%c6, %c0_32, %c0_33] : memref<20x32x32xi8, #tpu.memory_space<vmem>>, vector<1x32x32xi8>
    %58 = vector.shape_cast %57 : vector<1x32x32xi8> to vector<32x32xi8>
    %59 = arith.sitofp %58 : vector<32x32xi8> to vector<32x32xbf16>
    %cst_34 = arith.constant dense<0.000000e+00> : vector<32x32xf32>
    %60 = tpu.matmul %59, %2, %cst_34 {dimension_numbers = #tpu.dot_dimension_numbers<[1], [0], [0], [1], [0, 0, 1, 1], [], []>} : vector<32x32xbf16>, vector<32x32xbf16>, vector<32x32xf32> -> vector<32x32xf32>
    %c6_i32 = arith.constant 6 : i32
    %61 = arith.addi %0, %c6_i32 : i32
    %62 = arith.index_cast %61 : i32 to index
    %c0_35 = arith.constant 0 : index
    %c0_36 = arith.constant 0 : index
    %63 = vector.load %arg12[%62, %c0_35, %c0_36] : memref<20x32x32xf32, #tpu.memory_space<vmem>>, vector<1x32x32xf32>
    %64 = vector.shape_cast %63 : vector<1x32x32xf32> to vector<32x32xf32>
    %65 = vector.shape_cast %60 : vector<32x32xf32> to vector<1x32x32xf32>
    tpu.vector_store %arg12[%62, %c0_35, %c0_36], %65 {strides = array<i32>} : memref<20x32x32xf32, #tpu.memory_space<vmem>>, vector<1x32x32xf32>,
    %c7 = arith.constant 7 : index
    %c0_37 = arith.constant 0 : index
    %c0_38 = arith.constant 0 : index
    %66 = vector.load %arg2[%c7, %c0_37, %c0_38] : memref<20x32x32xi8, #tpu.memory_space<vmem>>, vector<1x32x32xi8>
    %67 = vector.shape_cast %66 : vector<1x32x32xi8> to vector<32x32xi8>
    %68 = arith.sitofp %67 : vector<32x32xi8> to vector<32x32xbf16>
    %cst_39 = arith.constant dense<0.000000e+00> : vector<32x32xf32>
    %69 = tpu.matmul %68, %2, %cst_39 {dimension_numbers = #tpu.dot_dimension_numbers<[1], [0], [0], [1], [0, 0, 1, 1], [], []>} : vector<32x32xbf16>, vector<32x32xbf16>, vector<32x32xf32> -> vector<32x32xf32>
    %c7_i32 = arith.constant 7 : i32
    %70 = arith.addi %0, %c7_i32 : i32
    %71 = arith.index_cast %70 : i32 to index
    %c0_40 = arith.constant 0 : index
    %c0_41 = arith.constant 0 : index
    %72 = vector.load %arg12[%71, %c0_40, %c0_41] : memref<20x32x32xf32, #tpu.memory_space<vmem>>, vector<1x32x32xf32>
    %73 = vector.shape_cast %72 : vector<1x32x32xf32> to vector<32x32xf32>
    %74 = vector.shape_cast %69 : vector<32x32xf32> to vector<1x32x32xf32>
    tpu.vector_store %arg12[%71, %c0_40, %c0_41], %74 {strides = array<i32>} : memref<20x32x32xf32, #tpu.memory_space<vmem>>, vector<1x32x32xf32>,
    %c8 = arith.constant 8 : index
    %c0_42 = arith.constant 0 : index
    %c0_43 = arith.constant 0 : index
    %75 = vector.load %arg2[%c8, %c0_42, %c0_43] : memref<20x32x32xi8, #tpu.memory_space<vmem>>, vector<1x32x32xi8>
    %76 = vector.shape_cast %75 : vector<1x32x32xi8> to vector<32x32xi8>
    %77 = arith.sitofp %76 : vector<32x32xi8> to vector<32x32xbf16>
    %cst_44 = arith.constant dense<0.000000e+00> : vector<32x32xf32>
    %78 = tpu.matmul %77, %2, %cst_44 {dimension_numbers = #tpu.dot_dimension_numbers<[1], [0], [0], [1], [0, 0, 1, 1], [], []>} : vector<32x32xbf16>, vector<32x32xbf16>, vector<32x32xf32> -> vector<32x32xf32>
    %c8_i32 = arith.constant 8 : i32
    %79 = arith.addi %0, %c8_i32 : i32
    %80 = arith.index_cast %79 : i32 to index
    %c0_45 = arith.constant 0 : index
    %c0_46 = arith.constant 0 : index
    %81 = vector.load %arg12[%80, %c0_45, %c0_46] : memref<20x32x32xf32, #tpu.memory_space<vmem>>, vector<1x32x32xf32>
    %82 = vector.shape_cast %81 : vector<1x32x32xf32> to vector<32x32xf32>
    %83 = vector.shape_cast %78 : vector<32x32xf32> to vector<1x32x32xf32>
    tpu.vector_store %arg12[%80, %c0_45, %c0_46], %83 {strides = array<i32>} : memref<20x32x32xf32, #tpu.memory_space<vmem>>, vector<1x32x32xf32>,
    %c9 = arith.constant 9 : index
    %c0_47 = arith.constant 0 : index
    %c0_48 = arith.constant 0 : index
    %84 = vector.load %arg2[%c9, %c0_47, %c0_48] : memref<20x32x32xi8, #tpu.memory_space<vmem>>, vector<1x32x32xi8>
    %85 = vector.shape_cast %84 : vector<1x32x32xi8> to vector<32x32xi8>
    %86 = arith.sitofp %85 : vector<32x32xi8> to vector<32x32xbf16>
    %cst_49 = arith.constant dense<0.000000e+00> : vector<32x32xf32>
    %87 = tpu.matmul %86, %2, %cst_49 {dimension_numbers = #tpu.dot_dimension_numbers<[1], [0], [0], [1], [0, 0, 1, 1], [], []>} : vector<32x32xbf16>, vector<32x32xbf16>, vector<32x32xf32> -> vector<32x32xf32>
    %c9_i32 = arith.constant 9 : i32
    %88 = arith.addi %0, %c9_i32 : i32
    %89 = arith.index_cast %88 : i32 to index
    %c0_50 = arith.constant 0 : index
    %c0_51 = arith.constant 0 : index
    %90 = vector.load %arg12[%89, %c0_50, %c0_51] : memref<20x32x32xf32, #tpu.memory_space<vmem>>, vector<1x32x32xf32>
    %91 = vector.shape_cast %90 : vector<1x32x32xf32> to vector<32x32xf32>
    %92 = vector.shape_cast %87 : vector<32x32xf32> to vector<1x32x32xf32>
    tpu.vector_store %arg12[%89, %c0_50, %c0_51], %92 {strides = array<i32>} : memref<20x32x32xf32, #tpu.memory_space<vmem>>, vector<1x32x32xf32>,
    %c10 = arith.constant 10 : index
    %c0_52 = arith.constant 0 : index
    %c0_53 = arith.constant 0 : index
    %93 = vector.load %arg2[%c10, %c0_52, %c0_53] : memref<20x32x32xi8, #tpu.memory_space<vmem>>, vector<1x32x32xi8>
    %94 = vector.shape_cast %93 : vector<1x32x32xi8> to vector<32x32xi8>
    %95 = arith.sitofp %94 : vector<32x32xi8> to vector<32x32xbf16>
    %cst_54 = arith.constant dense<0.000000e+00> : vector<32x32xf32>
    %96 = tpu.matmul %95, %2, %cst_54 {dimension_numbers = #tpu.dot_dimension_numbers<[1], [0], [0], [1], [0, 0, 1, 1], [], []>} : vector<32x32xbf16>, vector<32x32xbf16>, vector<32x32xf32> -> vector<32x32xf32>
    %c10_i32 = arith.constant 10 : i32
    %97 = arith.addi %0, %c10_i32 : i32
    %98 = arith.index_cast %97 : i32 to index
    %c0_55 = arith.constant 0 : index
    %c0_56 = arith.constant 0 : index
    %99 = vector.load %arg12[%98, %c0_55, %c0_56] : memref<20x32x32xf32, #tpu.memory_space<vmem>>, vector<1x32x32xf32>
    %100 = vector.shape_cast %99 : vector<1x32x32xf32> to vector<32x32xf32>
    %101 = vector.shape_cast %96 : vector<32x32xf32> to vector<1x32x32xf32>
    tpu.vector_store %arg12[%98, %c0_55, %c0_56], %101 {strides = array<i32>} : memref<20x32x32xf32, #tpu.memory_space<vmem>>, vector<1x32x32xf32>,
    %c11 = arith.constant 11 : index
    %c0_57 = arith.constant 0 : index
    %c0_58 = arith.constant 0 : index
    %102 = vector.load %arg2[%c11, %c0_57, %c0_58] : memref<20x32x32xi8, #tpu.memory_space<vmem>>, vector<1x32x32xi8>
    %103 = vector.shape_cast %102 : vector<1x32x32xi8> to vector<32x32xi8>
    %104 = arith.sitofp %103 : vector<32x32xi8> to vector<32x32xbf16>
    %cst_59 = arith.constant dense<0.000000e+00> : vector<32x32xf32>
    %105 = tpu.matmul %104, %2, %cst_59 {dimension_numbers = #tpu.dot_dimension_numbers<[1], [0], [0], [1], [0, 0, 1, 1], [], []>} : vector<32x32xbf16>, vector<32x32xbf16>, vector<32x32xf32> -> vector<32x32xf32>
    %c11_i32 = arith.constant 11 : i32
    %106 = arith.addi %0, %c11_i32 : i32
    %107 = arith.index_cast %106 : i32 to index
    %c0_60 = arith.constant 0 : index
    %c0_61 = arith.constant 0 : index
    %108 = vector.load %arg12[%107, %c0_60, %c0_61] : memref<20x32x32xf32, #tpu.memory_space<vmem>>, vector<1x32x32xf32>
    %109 = vector.shape_cast %108 : vector<1x32x32xf32> to vector<32x32xf32>
    %110 = vector.shape_cast %105 : vector<32x32xf32> to vector<1x32x32xf32>
    tpu.vector_store %arg12[%107, %c0_60, %c0_61], %110 {strides = array<i32>} : memref<20x32x32xf32, #tpu.memory_space<vmem>>, vector<1x32x32xf32>,
    %c12 = arith.constant 12 : index
    %c0_62 = arith.constant 0 : index
    %c0_63 = arith.constant 0 : index
    %111 = vector.load %arg2[%c12, %c0_62, %c0_63] : memref<20x32x32xi8, #tpu.memory_space<vmem>>, vector<1x32x32xi8>
    %112 = vector.shape_cast %111 : vector<1x32x32xi8> to vector<32x32xi8>
    %113 = arith.sitofp %112 : vector<32x32xi8> to vector<32x32xbf16>
    %cst_64 = arith.constant dense<0.000000e+00> : vector<32x32xf32>
    %114 = tpu.matmul %113, %2, %cst_64 {dimension_numbers = #tpu.dot_dimension_numbers<[1], [0], [0], [1], [0, 0, 1, 1], [], []>} : vector<32x32xbf16>, vector<32x32xbf16>, vector<32x32xf32> -> vector<32x32xf32>
    %c12_i32 = arith.constant 12 : i32
    %115 = arith.addi %0, %c12_i32 : i32
    %116 = arith.index_cast %115 : i32 to index
    %c0_65 = arith.constant 0 : index
    %c0_66 = arith.constant 0 : index
    %117 = vector.load %arg12[%116, %c0_65, %c0_66] : memref<20x32x32xf32, #tpu.memory_space<vmem>>, vector<1x32x32xf32>
    %118 = vector.shape_cast %117 : vector<1x32x32xf32> to vector<32x32xf32>
    %119 = vector.shape_cast %114 : vector<32x32xf32> to vector<1x32x32xf32>
    tpu.vector_store %arg12[%116, %c0_65, %c0_66], %119 {strides = array<i32>} : memref<20x32x32xf32, #tpu.memory_space<vmem>>, vector<1x32x32xf32>,
    %c13 = arith.constant 13 : index
    %c0_67 = arith.constant 0 : index
    %c0_68 = arith.constant 0 : index
    %120 = vector.load %arg2[%c13, %c0_67, %c0_68] : memref<20x32x32xi8, #tpu.memory_space<vmem>>, vector<1x32x32xi8>
    %121 = vector.shape_cast %120 : vector<1x32x32xi8> to vector<32x32xi8>
    %122 = arith.sitofp %121 : vector<32x32xi8> to vector<32x32xbf16>
    %cst_69 = arith.constant dense<0.000000e+00> : vector<32x32xf32>
    %123 = tpu.matmul %122, %2, %cst_69 {dimension_numbers = #tpu.dot_dimension_numbers<[1], [0], [0], [1], [0, 0, 1, 1], [], []>} : vector<32x32xbf16>, vector<32x32xbf16>, vector<32x32xf32> -> vector<32x32xf32>
    %c13_i32 = arith.constant 13 : i32
    %124 = arith.addi %0, %c13_i32 : i32
    %125 = arith.index_cast %124 : i32 to index
    %c0_70 = arith.constant 0 : index
    %c0_71 = arith.constant 0 : index
    %126 = vector.load %arg12[%125, %c0_70, %c0_71] : memref<20x32x32xf32, #tpu.memory_space<vmem>>, vector<1x32x32xf32>
    %127 = vector.shape_cast %126 : vector<1x32x32xf32> to vector<32x32xf32>
    %128 = vector.shape_cast %123 : vector<32x32xf32> to vector<1x32x32xf32>
    tpu.vector_store %arg12[%125, %c0_70, %c0_71], %128 {strides = array<i32>} : memref<20x32x32xf32, #tpu.memory_space<vmem>>, vector<1x32x32xf32>,
    %c14 = arith.constant 14 : index
    %c0_72 = arith.constant 0 : index
    %c0_73 = arith.constant 0 : index
    %129 = vector.load %arg2[%c14, %c0_72, %c0_73] : memref<20x32x32xi8, #tpu.memory_space<vmem>>, vector<1x32x32xi8>
    %130 = vector.shape_cast %129 : vector<1x32x32xi8> to vector<32x32xi8>
    %131 = arith.sitofp %130 : vector<32x32xi8> to vector<32x32xbf16>
    %cst_74 = arith.constant dense<0.000000e+00> : vector<32x32xf32>
    %132 = tpu.matmul %131, %2, %cst_74 {dimension_numbers = #tpu.dot_dimension_numbers<[1], [0], [0], [1], [0, 0, 1, 1], [], []>} : vector<32x32xbf16>, vector<32x32xbf16>, vector<32x32xf32> -> vector<32x32xf32>
    %c14_i32 = arith.constant 14 : i32
    %133 = arith.addi %0, %c14_i32 : i32
    %134 = arith.index_cast %133 : i32 to index
    %c0_75 = arith.constant 0 : index
    %c0_76 = arith.constant 0 : index
    %135 = vector.load %arg12[%134, %c0_75, %c0_76] : memref<20x32x32xf32, #tpu.memory_space<vmem>>, vector<1x32x32xf32>
    %136 = vector.shape_cast %135 : vector<1x32x32xf32> to vector<32x32xf32>
    %137 = vector.shape_cast %132 : vector<32x32xf32> to vector<1x32x32xf32>
    tpu.vector_store %arg12[%134, %c0_75, %c0_76], %137 {strides = array<i32>} : memref<20x32x32xf32, #tpu.memory_space<vmem>>, vector<1x32x32xf32>,
    %c15 = arith.constant 15 : index
    %c0_77 = arith.constant 0 : index
    %c0_78 = arith.constant 0 : index
    %138 = vector.load %arg2[%c15, %c0_77, %c0_78] : memref<20x32x32xi8, #tpu.memory_space<vmem>>, vector<1x32x32xi8>
    %139 = vector.shape_cast %138 : vector<1x32x32xi8> to vector<32x32xi8>
    %140 = arith.sitofp %139 : vector<32x32xi8> to vector<32x32xbf16>
    %cst_79 = arith.constant dense<0.000000e+00> : vector<32x32xf32>
    %141 = tpu.matmul %140, %2, %cst_79 {dimension_numbers = #tpu.dot_dimension_numbers<[1], [0], [0], [1], [0, 0, 1, 1], [], []>} : vector<32x32xbf16>, vector<32x32xbf16>, vector<32x32xf32> -> vector<32x32xf32>
    %c15_i32 = arith.constant 15 : i32
    %142 = arith.addi %0, %c15_i32 : i32
    %143 = arith.index_cast %142 : i32 to index
    %c0_80 = arith.constant 0 : index
    %c0_81 = arith.constant 0 : index
    %144 = vector.load %arg12[%143, %c0_80, %c0_81] : memref<20x32x32xf32, #tpu.memory_space<vmem>>, vector<1x32x32xf32>
    %145 = vector.shape_cast %144 : vector<1x32x32xf32> to vector<32x32xf32>
    %146 = vector.shape_cast %141 : vector<32x32xf32> to vector<1x32x32xf32>
    tpu.vector_store %arg12[%143, %c0_80, %c0_81], %146 {strides = array<i32>} : memref<20x32x32xf32, #tpu.memory_space<vmem>>, vector<1x32x32xf32>,
    %c16 = arith.constant 16 : index
    %c0_82 = arith.constant 0 : index
    %c0_83 = arith.constant 0 : index
    %147 = vector.load %arg2[%c16, %c0_82, %c0_83] : memref<20x32x32xi8, #tpu.memory_space<vmem>>, vector<1x32x32xi8>
    %148 = vector.shape_cast %147 : vector<1x32x32xi8> to vector<32x32xi8>
    %149 = arith.sitofp %148 : vector<32x32xi8> to vector<32x32xbf16>
    %cst_84 = arith.constant dense<0.000000e+00> : vector<32x32xf32>
    %150 = tpu.matmul %149, %2, %cst_84 {dimension_numbers = #tpu.dot_dimension_numbers<[1], [0], [0], [1], [0, 0, 1, 1], [], []>} : vector<32x32xbf16>, vector<32x32xbf16>, vector<32x32xf32> -> vector<32x32xf32>
    %c16_i32 = arith.constant 16 : i32
    %151 = arith.addi %0, %c16_i32 : i32
    %152 = arith.index_cast %151 : i32 to index
    %c0_85 = arith.constant 0 : index
    %c0_86 = arith.constant 0 : index
    %153 = vector.load %arg12[%152, %c0_85, %c0_86] : memref<20x32x32xf32, #tpu.memory_space<vmem>>, vector<1x32x32xf32>
    %154 = vector.shape_cast %153 : vector<1x32x32xf32> to vector<32x32xf32>
    %155 = vector.shape_cast %150 : vector<32x32xf32> to vector<1x32x32xf32>
    tpu.vector_store %arg12[%152, %c0_85, %c0_86], %155 {strides = array<i32>} : memref<20x32x32xf32, #tpu.memory_space<vmem>>, vector<1x32x32xf32>,
    %c17 = arith.constant 17 : index
    %c0_87 = arith.constant 0 : index
    %c0_88 = arith.constant 0 : index
    %156 = vector.load %arg2[%c17, %c0_87, %c0_88] : memref<20x32x32xi8, #tpu.memory_space<vmem>>, vector<1x32x32xi8>
    %157 = vector.shape_cast %156 : vector<1x32x32xi8> to vector<32x32xi8>
    %158 = arith.sitofp %157 : vector<32x32xi8> to vector<32x32xbf16>
    %cst_89 = arith.constant dense<0.000000e+00> : vector<32x32xf32>
    %159 = tpu.matmul %158, %2, %cst_89 {dimension_numbers = #tpu.dot_dimension_numbers<[1], [0], [0], [1], [0, 0, 1, 1], [], []>} : vector<32x32xbf16>, vector<32x32xbf16>, vector<32x32xf32> -> vector<32x32xf32>
    %c17_i32 = arith.constant 17 : i32
    %160 = arith.addi %0, %c17_i32 : i32
    %161 = arith.index_cast %160 : i32 to index
    %c0_90 = arith.constant 0 : index
    %c0_91 = arith.constant 0 : index
    %162 = vector.load %arg12[%161, %c0_90, %c0_91] : memref<20x32x32xf32, #tpu.memory_space<vmem>>, vector<1x32x32xf32>
    %163 = vector.shape_cast %162 : vector<1x32x32xf32> to vector<32x32xf32>
    %164 = vector.shape_cast %159 : vector<32x32xf32> to vector<1x32x32xf32>
    tpu.vector_store %arg12[%161, %c0_90, %c0_91], %164 {strides = array<i32>} : memref<20x32x32xf32, #tpu.memory_space<vmem>>, vector<1x32x32xf32>,
    %c18 = arith.constant 18 : index
    %c0_92 = arith.constant 0 : index
    %c0_93 = arith.constant 0 : index
    %165 = vector.load %arg2[%c18, %c0_92, %c0_93] : memref<20x32x32xi8, #tpu.memory_space<vmem>>, vector<1x32x32xi8>
    %166 = vector.shape_cast %165 : vector<1x32x32xi8> to vector<32x32xi8>
    %167 = arith.sitofp %166 : vector<32x32xi8> to vector<32x32xbf16>
    %cst_94 = arith.constant dense<0.000000e+00> : vector<32x32xf32>
    %168 = tpu.matmul %167, %2, %cst_94 {dimension_numbers = #tpu.dot_dimension_numbers<[1], [0], [0], [1], [0, 0, 1, 1], [], []>} : vector<32x32xbf16>, vector<32x32xbf16>, vector<32x32xf32> -> vector<32x32xf32>
    %c18_i32 = arith.constant 18 : i32
    %169 = arith.addi %0, %c18_i32 : i32
    %170 = arith.index_cast %169 : i32 to index
    %c0_95 = arith.constant 0 : index
    %c0_96 = arith.constant 0 : index
    %171 = vector.load %arg12[%170, %c0_95, %c0_96] : memref<20x32x32xf32, #tpu.memory_space<vmem>>, vector<1x32x32xf32>
    %172 = vector.shape_cast %171 : vector<1x32x32xf32> to vector<32x32xf32>
    %173 = vector.shape_cast %168 : vector<32x32xf32> to vector<1x32x32xf32>
    tpu.vector_store %arg12[%170, %c0_95, %c0_96], %173 {strides = array<i32>} : memref<20x32x32xf32, #tpu.memory_space<vmem>>, vector<1x32x32xf32>,
    %c19 = arith.constant 19 : index
    %c0_97 = arith.constant 0 : index
    %c0_98 = arith.constant 0 : index
    %174 = vector.load %arg2[%c19, %c0_97, %c0_98] : memref<20x32x32xi8, #tpu.memory_space<vmem>>, vector<1x32x32xi8>
    %175 = vector.shape_cast %174 : vector<1x32x32xi8> to vector<32x32xi8>
    %176 = arith.sitofp %175 : vector<32x32xi8> to vector<32x32xbf16>
    %cst_99 = arith.constant dense<0.000000e+00> : vector<32x32xf32>
    %177 = tpu.matmul %176, %2, %cst_99 {dimension_numbers = #tpu.dot_dimension_numbers<[1], [0], [0], [1], [0, 0, 1, 1], [], []>} : vector<32x32xbf16>, vector<32x32xbf16>, vector<32x32xf32> -> vector<32x32xf32>
    %c19_i32 = arith.constant 19 : i32
    %178 = arith.addi %0, %c19_i32 : i32
    %179 = arith.index_cast %178 : i32 to index
    %c0_100 = arith.constant 0 : index
    %c0_101 = arith.constant 0 : index
    %180 = vector.load %arg12[%179, %c0_100, %c0_101] : memref<20x32x32xf32, #tpu.memory_space<vmem>>, vector<1x32x32xf32>
    %181 = vector.shape_cast %180 : vector<1x32x32xf32> to vector<32x32xf32>
    %182 = vector.shape_cast %177 : vector<32x32xf32> to vector<1x32x32xf32>
    tpu.vector_store %arg12[%179, %c0_100, %c0_101], %182 {strides = array<i32>} : memref<20x32x32xf32, #tpu.memory_space<vmem>>, vector<1x32x32xf32>,
    %183 = arith.extui %1 : i1 to i32
    %c0_i32_102 = arith.constant 0 : i32
    %184 = arith.cmpi ne, %183, %c0_i32_102 : i32
    scf.if %184 {
      %c0_103 = arith.constant 0 : index
      %c0_104 = arith.constant 0 : index
      %185 = vector.load %arg4[%c0_103, %c0_104] : memref<32x32xf32, #tpu.memory_space<vmem>>, vector<32x32xf32>
      %c0_105 = arith.constant 0 : index
      %c0_106 = arith.constant 0 : index
      %186 = vector.load %arg7[%c0_105, %c0_106] : memref<32x32xf32, #tpu.memory_space<vmem>>, vector<32x32xf32>
      %cst_107 = arith.constant dense<0.000000e+00> : vector<32x32xf32>
      %187 = tpu.matmul %185, %186, %cst_107 {dimension_numbers = #tpu.dot_dimension_numbers<[1], [0], [0], [1], [0, 0, 1, 1], [], []>} : vector<32x32xf32>, vector<32x32xf32>, vector<32x32xf32> -> vector<32x32xf32>
      %c0_108 = arith.constant 0 : index
      %c0_109 = arith.constant 0 : index
      %188 = vector.load %arg8[%c0_108, %c0_109] : memref<1x32xf32, #tpu.memory_space<vmem>>, vector<1x32xf32>
      %189 = vector.broadcast %188 : vector<1x32xf32> to vector<32x32xf32>
      %190 = arith.addf %187, %189 : vector<32x32xf32>
      %c0_110 = arith.constant 0 : index
      %c0_111 = arith.constant 0 : index
      %191 = vector.load %arg5[%c0_110, %c0_111] : memref<32x20xf32, #tpu.memory_space<vmem>>, vector<32x20xf32>
      %c0_112 = arith.constant 0 : index
      %c0_113 = arith.constant 0 : index
      %c0_114 = arith.constant 0 : index
      %192 = vector.load %arg12[%c0_112, %c0_113, %c0_114] : memref<20x32x32xf32, #tpu.memory_space<vmem>>, vector<1x32x32xf32>
      %193 = vector.shape_cast %192 : vector<1x32x32xf32> to vector<32x32xf32>
      %194 = vector.extract_strided_slice %191 {offsets = [0, 0], sizes = [32, 1], strides = [1, 1]} : vector<32x20xf32> to vector<32x1xf32>
      %195 = vector.broadcast %194 : vector<32x1xf32> to vector<32x32xf32>
      %196 = arith.mulf %193, %195 : vector<32x32xf32>
      %c0_115 = arith.constant 0 : index
      %c0_116 = arith.constant 0 : index
      %c0_117 = arith.constant 0 : index
      %197 = vector.load %arg6[%c0_115, %c0_116, %c0_117] : memref<20x32x32xf32, #tpu.memory_space<vmem>>, vector<1x32x32xf32>
      %198 = vector.shape_cast %197 : vector<1x32x32xf32> to vector<32x32xf32>
      %cst_118 = arith.constant dense<0.000000e+00> : vector<32x32xf32>
      %199 = tpu.matmul %196, %198, %cst_118 {dimension_numbers = #tpu.dot_dimension_numbers<[1], [0], [0], [1], [0, 0, 1, 1], [], []>} : vector<32x32xf32>, vector<32x32xf32>, vector<32x32xf32> -> vector<32x32xf32>
      %200 = arith.addf %190, %199 : vector<32x32xf32>
      %c1_119 = arith.constant 1 : index
      %c0_120 = arith.constant 0 : index
      %c0_121 = arith.constant 0 : index
      %201 = vector.load %arg12[%c1_119, %c0_120, %c0_121] : memref<20x32x32xf32, #tpu.memory_space<vmem>>, vector<1x32x32xf32>
      %202 = vector.shape_cast %201 : vector<1x32x32xf32> to vector<32x32xf32>
      %203 = vector.extract_strided_slice %191 {offsets = [0, 1], sizes = [32, 1], strides = [1, 1]} : vector<32x20xf32> to vector<32x1xf32>
      %204 = vector.broadcast %203 : vector<32x1xf32> to vector<32x32xf32>
      %205 = arith.mulf %202, %204 : vector<32x32xf32>
      %c1_122 = arith.constant 1 : index
      %c0_123 = arith.constant 0 : index
      %c0_124 = arith.constant 0 : index
      %206 = vector.load %arg6[%c1_122, %c0_123, %c0_124] : memref<20x32x32xf32, #tpu.memory_space<vmem>>, vector<1x32x32xf32>
      %207 = vector.shape_cast %206 : vector<1x32x32xf32> to vector<32x32xf32>
      %cst_125 = arith.constant dense<0.000000e+00> : vector<32x32xf32>
      %208 = tpu.matmul %205, %207, %cst_125 {dimension_numbers = #tpu.dot_dimension_numbers<[1], [0], [0], [1], [0, 0, 1, 1], [], []>} : vector<32x32xf32>, vector<32x32xf32>, vector<32x32xf32> -> vector<32x32xf32>
      %209 = arith.addf %200, %208 : vector<32x32xf32>
      %c2_126 = arith.constant 2 : index
      %c0_127 = arith.constant 0 : index
      %c0_128 = arith.constant 0 : index
      %210 = vector.load %arg12[%c2_126, %c0_127, %c0_128] : memref<20x32x32xf32, #tpu.memory_space<vmem>>, vector<1x32x32xf32>
      %211 = vector.shape_cast %210 : vector<1x32x32xf32> to vector<32x32xf32>
      %212 = vector.extract_strided_slice %191 {offsets = [0, 2], sizes = [32, 1], strides = [1, 1]} : vector<32x20xf32> to vector<32x1xf32>
      %213 = vector.broadcast %212 : vector<32x1xf32> to vector<32x32xf32>
      %214 = arith.mulf %211, %213 : vector<32x32xf32>
      %c2_129 = arith.constant 2 : index
      %c0_130 = arith.constant 0 : index
      %c0_131 = arith.constant 0 : index
      %215 = vector.load %arg6[%c2_129, %c0_130, %c0_131] : memref<20x32x32xf32, #tpu.memory_space<vmem>>, vector<1x32x32xf32>
      %216 = vector.shape_cast %215 : vector<1x32x32xf32> to vector<32x32xf32>
      %cst_132 = arith.constant dense<0.000000e+00> : vector<32x32xf32>
      %217 = tpu.matmul %214, %216, %cst_132 {dimension_numbers = #tpu.dot_dimension_numbers<[1], [0], [0], [1], [0, 0, 1, 1], [], []>} : vector<32x32xf32>, vector<32x32xf32>, vector<32x32xf32> -> vector<32x32xf32>
      %218 = arith.addf %209, %217 : vector<32x32xf32>
      %c3_133 = arith.constant 3 : index
      %c0_134 = arith.constant 0 : index
      %c0_135 = arith.constant 0 : index
      %219 = vector.load %arg12[%c3_133, %c0_134, %c0_135] : memref<20x32x32xf32, #tpu.memory_space<vmem>>, vector<1x32x32xf32>
      %220 = vector.shape_cast %219 : vector<1x32x32xf32> to vector<32x32xf32>
      %221 = vector.extract_strided_slice %191 {offsets = [0, 3], sizes = [32, 1], strides = [1, 1]} : vector<32x20xf32> to vector<32x1xf32>
      %222 = vector.broadcast %221 : vector<32x1xf32> to vector<32x32xf32>
      %223 = arith.mulf %220, %222 : vector<32x32xf32>
      %c3_136 = arith.constant 3 : index
      %c0_137 = arith.constant 0 : index
      %c0_138 = arith.constant 0 : index
      %224 = vector.load %arg6[%c3_136, %c0_137, %c0_138] : memref<20x32x32xf32, #tpu.memory_space<vmem>>, vector<1x32x32xf32>
      %225 = vector.shape_cast %224 : vector<1x32x32xf32> to vector<32x32xf32>
      %cst_139 = arith.constant dense<0.000000e+00> : vector<32x32xf32>
      %226 = tpu.matmul %223, %225, %cst_139 {dimension_numbers = #tpu.dot_dimension_numbers<[1], [0], [0], [1], [0, 0, 1, 1], [], []>} : vector<32x32xf32>, vector<32x32xf32>, vector<32x32xf32> -> vector<32x32xf32>
      %227 = arith.addf %218, %226 : vector<32x32xf32>
      %c4_140 = arith.constant 4 : index
      %c0_141 = arith.constant 0 : index
      %c0_142 = arith.constant 0 : index
      %228 = vector.load %arg12[%c4_140, %c0_141, %c0_142] : memref<20x32x32xf32, #tpu.memory_space<vmem>>, vector<1x32x32xf32>
      %229 = vector.shape_cast %228 : vector<1x32x32xf32> to vector<32x32xf32>
      %230 = vector.extract_strided_slice %191 {offsets = [0, 4], sizes = [32, 1], strides = [1, 1]} : vector<32x20xf32> to vector<32x1xf32>
      %231 = vector.broadcast %230 : vector<32x1xf32> to vector<32x32xf32>
      %232 = arith.mulf %229, %231 : vector<32x32xf32>
      %c4_143 = arith.constant 4 : index
      %c0_144 = arith.constant 0 : index
      %c0_145 = arith.constant 0 : index
      %233 = vector.load %arg6[%c4_143, %c0_144, %c0_145] : memref<20x32x32xf32, #tpu.memory_space<vmem>>, vector<1x32x32xf32>
      %234 = vector.shape_cast %233 : vector<1x32x32xf32> to vector<32x32xf32>
      %cst_146 = arith.constant dense<0.000000e+00> : vector<32x32xf32>
      %235 = tpu.matmul %232, %234, %cst_146 {dimension_numbers = #tpu.dot_dimension_numbers<[1], [0], [0], [1], [0, 0, 1, 1], [], []>} : vector<32x32xf32>, vector<32x32xf32>, vector<32x32xf32> -> vector<32x32xf32>
      %236 = arith.addf %227, %235 : vector<32x32xf32>
      %c5_147 = arith.constant 5 : index
      %c0_148 = arith.constant 0 : index
      %c0_149 = arith.constant 0 : index
      %237 = vector.load %arg12[%c5_147, %c0_148, %c0_149] : memref<20x32x32xf32, #tpu.memory_space<vmem>>, vector<1x32x32xf32>
      %238 = vector.shape_cast %237 : vector<1x32x32xf32> to vector<32x32xf32>
      %239 = vector.extract_strided_slice %191 {offsets = [0, 5], sizes = [32, 1], strides = [1, 1]} : vector<32x20xf32> to vector<32x1xf32>
      %240 = vector.broadcast %239 : vector<32x1xf32> to vector<32x32xf32>
      %241 = arith.mulf %238, %240 : vector<32x32xf32>
      %c5_150 = arith.constant 5 : index
      %c0_151 = arith.constant 0 : index
      %c0_152 = arith.constant 0 : index
      %242 = vector.load %arg6[%c5_150, %c0_151, %c0_152] : memref<20x32x32xf32, #tpu.memory_space<vmem>>, vector<1x32x32xf32>
      %243 = vector.shape_cast %242 : vector<1x32x32xf32> to vector<32x32xf32>
      %cst_153 = arith.constant dense<0.000000e+00> : vector<32x32xf32>
      %244 = tpu.matmul %241, %243, %cst_153 {dimension_numbers = #tpu.dot_dimension_numbers<[1], [0], [0], [1], [0, 0, 1, 1], [], []>} : vector<32x32xf32>, vector<32x32xf32>, vector<32x32xf32> -> vector<32x32xf32>
      %245 = arith.addf %236, %244 : vector<32x32xf32>
      %c6_154 = arith.constant 6 : index
      %c0_155 = arith.constant 0 : index
      %c0_156 = arith.constant 0 : index
      %246 = vector.load %arg12[%c6_154, %c0_155, %c0_156] : memref<20x32x32xf32, #tpu.memory_space<vmem>>, vector<1x32x32xf32>
      %247 = vector.shape_cast %246 : vector<1x32x32xf32> to vector<32x32xf32>
      %248 = vector.extract_strided_slice %191 {offsets = [0, 6], sizes = [32, 1], strides = [1, 1]} : vector<32x20xf32> to vector<32x1xf32>
      %249 = vector.broadcast %248 : vector<32x1xf32> to vector<32x32xf32>
      %250 = arith.mulf %247, %249 : vector<32x32xf32>
      %c6_157 = arith.constant 6 : index
      %c0_158 = arith.constant 0 : index
      %c0_159 = arith.constant 0 : index
      %251 = vector.load %arg6[%c6_157, %c0_158, %c0_159] : memref<20x32x32xf32, #tpu.memory_space<vmem>>, vector<1x32x32xf32>
      %252 = vector.shape_cast %251 : vector<1x32x32xf32> to vector<32x32xf32>
      %cst_160 = arith.constant dense<0.000000e+00> : vector<32x32xf32>
      %253 = tpu.matmul %250, %252, %cst_160 {dimension_numbers = #tpu.dot_dimension_numbers<[1], [0], [0], [1], [0, 0, 1, 1], [], []>} : vector<32x32xf32>, vector<32x32xf32>, vector<32x32xf32> -> vector<32x32xf32>
      %254 = arith.addf %245, %253 : vector<32x32xf32>
      %c7_161 = arith.constant 7 : index
      %c0_162 = arith.constant 0 : index
      %c0_163 = arith.constant 0 : index
      %255 = vector.load %arg12[%c7_161, %c0_162, %c0_163] : memref<20x32x32xf32, #tpu.memory_space<vmem>>, vector<1x32x32xf32>
      %256 = vector.shape_cast %255 : vector<1x32x32xf32> to vector<32x32xf32>
      %257 = vector.extract_strided_slice %191 {offsets = [0, 7], sizes = [32, 1], strides = [1, 1]} : vector<32x20xf32> to vector<32x1xf32>
      %258 = vector.broadcast %257 : vector<32x1xf32> to vector<32x32xf32>
      %259 = arith.mulf %256, %258 : vector<32x32xf32>
      %c7_164 = arith.constant 7 : index
      %c0_165 = arith.constant 0 : index
      %c0_166 = arith.constant 0 : index
      %260 = vector.load %arg6[%c7_164, %c0_165, %c0_166] : memref<20x32x32xf32, #tpu.memory_space<vmem>>, vector<1x32x32xf32>
      %261 = vector.shape_cast %260 : vector<1x32x32xf32> to vector<32x32xf32>
      %cst_167 = arith.constant dense<0.000000e+00> : vector<32x32xf32>
      %262 = tpu.matmul %259, %261, %cst_167 {dimension_numbers = #tpu.dot_dimension_numbers<[1], [0], [0], [1], [0, 0, 1, 1], [], []>} : vector<32x32xf32>, vector<32x32xf32>, vector<32x32xf32> -> vector<32x32xf32>
      %263 = arith.addf %254, %262 : vector<32x32xf32>
      %c8_168 = arith.constant 8 : index
      %c0_169 = arith.constant 0 : index
      %c0_170 = arith.constant 0 : index
      %264 = vector.load %arg12[%c8_168, %c0_169, %c0_170] : memref<20x32x32xf32, #tpu.memory_space<vmem>>, vector<1x32x32xf32>
      %265 = vector.shape_cast %264 : vector<1x32x32xf32> to vector<32x32xf32>
      %266 = vector.extract_strided_slice %191 {offsets = [0, 8], sizes = [32, 1], strides = [1, 1]} : vector<32x20xf32> to vector<32x1xf32>
      %267 = vector.broadcast %266 : vector<32x1xf32> to vector<32x32xf32>
      %268 = arith.mulf %265, %267 : vector<32x32xf32>
      %c8_171 = arith.constant 8 : index
      %c0_172 = arith.constant 0 : index
      %c0_173 = arith.constant 0 : index
      %269 = vector.load %arg6[%c8_171, %c0_172, %c0_173] : memref<20x32x32xf32, #tpu.memory_space<vmem>>, vector<1x32x32xf32>
      %270 = vector.shape_cast %269 : vector<1x32x32xf32> to vector<32x32xf32>
      %cst_174 = arith.constant dense<0.000000e+00> : vector<32x32xf32>
      %271 = tpu.matmul %268, %270, %cst_174 {dimension_numbers = #tpu.dot_dimension_numbers<[1], [0], [0], [1], [0, 0, 1, 1], [], []>} : vector<32x32xf32>, vector<32x32xf32>, vector<32x32xf32> -> vector<32x32xf32>
      %272 = arith.addf %263, %271 : vector<32x32xf32>
      %c9_175 = arith.constant 9 : index
      %c0_176 = arith.constant 0 : index
      %c0_177 = arith.constant 0 : index
      %273 = vector.load %arg12[%c9_175, %c0_176, %c0_177] : memref<20x32x32xf32, #tpu.memory_space<vmem>>, vector<1x32x32xf32>
      %274 = vector.shape_cast %273 : vector<1x32x32xf32> to vector<32x32xf32>
      %275 = vector.extract_strided_slice %191 {offsets = [0, 9], sizes = [32, 1], strides = [1, 1]} : vector<32x20xf32> to vector<32x1xf32>
      %276 = vector.broadcast %275 : vector<32x1xf32> to vector<32x32xf32>
      %277 = arith.mulf %274, %276 : vector<32x32xf32>
      %c9_178 = arith.constant 9 : index
      %c0_179 = arith.constant 0 : index
      %c0_180 = arith.constant 0 : index
      %278 = vector.load %arg6[%c9_178, %c0_179, %c0_180] : memref<20x32x32xf32, #tpu.memory_space<vmem>>, vector<1x32x32xf32>
      %279 = vector.shape_cast %278 : vector<1x32x32xf32> to vector<32x32xf32>
      %cst_181 = arith.constant dense<0.000000e+00> : vector<32x32xf32>
      %280 = tpu.matmul %277, %279, %cst_181 {dimension_numbers = #tpu.dot_dimension_numbers<[1], [0], [0], [1], [0, 0, 1, 1], [], []>} : vector<32x32xf32>, vector<32x32xf32>, vector<32x32xf32> -> vector<32x32xf32>
      %281 = arith.addf %272, %280 : vector<32x32xf32>
      %c10_182 = arith.constant 10 : index
      %c0_183 = arith.constant 0 : index
      %c0_184 = arith.constant 0 : index
      %282 = vector.load %arg12[%c10_182, %c0_183, %c0_184] : memref<20x32x32xf32, #tpu.memory_space<vmem>>, vector<1x32x32xf32>
      %283 = vector.shape_cast %282 : vector<1x32x32xf32> to vector<32x32xf32>
      %284 = vector.extract_strided_slice %191 {offsets = [0, 10], sizes = [32, 1], strides = [1, 1]} : vector<32x20xf32> to vector<32x1xf32>
      %285 = vector.broadcast %284 : vector<32x1xf32> to vector<32x32xf32>
      %286 = arith.mulf %283, %285 : vector<32x32xf32>
      %c10_185 = arith.constant 10 : index
      %c0_186 = arith.constant 0 : index
      %c0_187 = arith.constant 0 : index
      %287 = vector.load %arg6[%c10_185, %c0_186, %c0_187] : memref<20x32x32xf32, #tpu.memory_space<vmem>>, vector<1x32x32xf32>
      %288 = vector.shape_cast %287 : vector<1x32x32xf32> to vector<32x32xf32>
      %cst_188 = arith.constant dense<0.000000e+00> : vector<32x32xf32>
      %289 = tpu.matmul %286, %288, %cst_188 {dimension_numbers = #tpu.dot_dimension_numbers<[1], [0], [0], [1], [0, 0, 1, 1], [], []>} : vector<32x32xf32>, vector<32x32xf32>, vector<32x32xf32> -> vector<32x32xf32>
      %290 = arith.addf %281, %289 : vector<32x32xf32>
      %c11_189 = arith.constant 11 : index
      %c0_190 = arith.constant 0 : index
      %c0_191 = arith.constant 0 : index
      %291 = vector.load %arg12[%c11_189, %c0_190, %c0_191] : memref<20x32x32xf32, #tpu.memory_space<vmem>>, vector<1x32x32xf32>
      %292 = vector.shape_cast %291 : vector<1x32x32xf32> to vector<32x32xf32>
      %293 = vector.extract_strided_slice %191 {offsets = [0, 11], sizes = [32, 1], strides = [1, 1]} : vector<32x20xf32> to vector<32x1xf32>
      %294 = vector.broadcast %293 : vector<32x1xf32> to vector<32x32xf32>
      %295 = arith.mulf %292, %294 : vector<32x32xf32>
      %c11_192 = arith.constant 11 : index
      %c0_193 = arith.constant 0 : index
      %c0_194 = arith.constant 0 : index
      %296 = vector.load %arg6[%c11_192, %c0_193, %c0_194] : memref<20x32x32xf32, #tpu.memory_space<vmem>>, vector<1x32x32xf32>
      %297 = vector.shape_cast %296 : vector<1x32x32xf32> to vector<32x32xf32>
      %cst_195 = arith.constant dense<0.000000e+00> : vector<32x32xf32>
      %298 = tpu.matmul %295, %297, %cst_195 {dimension_numbers = #tpu.dot_dimension_numbers<[1], [0], [0], [1], [0, 0, 1, 1], [], []>} : vector<32x32xf32>, vector<32x32xf32>, vector<32x32xf32> -> vector<32x32xf32>
      %299 = arith.addf %290, %298 : vector<32x32xf32>
      %c12_196 = arith.constant 12 : index
      %c0_197 = arith.constant 0 : index
      %c0_198 = arith.constant 0 : index
      %300 = vector.load %arg12[%c12_196, %c0_197, %c0_198] : memref<20x32x32xf32, #tpu.memory_space<vmem>>, vector<1x32x32xf32>
      %301 = vector.shape_cast %300 : vector<1x32x32xf32> to vector<32x32xf32>
      %302 = vector.extract_strided_slice %191 {offsets = [0, 12], sizes = [32, 1], strides = [1, 1]} : vector<32x20xf32> to vector<32x1xf32>
      %303 = vector.broadcast %302 : vector<32x1xf32> to vector<32x32xf32>
      %304 = arith.mulf %301, %303 : vector<32x32xf32>
      %c12_199 = arith.constant 12 : index
      %c0_200 = arith.constant 0 : index
      %c0_201 = arith.constant 0 : index
      %305 = vector.load %arg6[%c12_199, %c0_200, %c0_201] : memref<20x32x32xf32, #tpu.memory_space<vmem>>, vector<1x32x32xf32>
      %306 = vector.shape_cast %305 : vector<1x32x32xf32> to vector<32x32xf32>
      %cst_202 = arith.constant dense<0.000000e+00> : vector<32x32xf32>
      %307 = tpu.matmul %304, %306, %cst_202 {dimension_numbers = #tpu.dot_dimension_numbers<[1], [0], [0], [1], [0, 0, 1, 1], [], []>} : vector<32x32xf32>, vector<32x32xf32>, vector<32x32xf32> -> vector<32x32xf32>
      %308 = arith.addf %299, %307 : vector<32x32xf32>
      %c13_203 = arith.constant 13 : index
      %c0_204 = arith.constant 0 : index
      %c0_205 = arith.constant 0 : index
      %309 = vector.load %arg12[%c13_203, %c0_204, %c0_205] : memref<20x32x32xf32, #tpu.memory_space<vmem>>, vector<1x32x32xf32>
      %310 = vector.shape_cast %309 : vector<1x32x32xf32> to vector<32x32xf32>
      %311 = vector.extract_strided_slice %191 {offsets = [0, 13], sizes = [32, 1], strides = [1, 1]} : vector<32x20xf32> to vector<32x1xf32>
      %312 = vector.broadcast %311 : vector<32x1xf32> to vector<32x32xf32>
      %313 = arith.mulf %310, %312 : vector<32x32xf32>
      %c13_206 = arith.constant 13 : index
      %c0_207 = arith.constant 0 : index
      %c0_208 = arith.constant 0 : index
      %314 = vector.load %arg6[%c13_206, %c0_207, %c0_208] : memref<20x32x32xf32, #tpu.memory_space<vmem>>, vector<1x32x32xf32>
      %315 = vector.shape_cast %314 : vector<1x32x32xf32> to vector<32x32xf32>
      %cst_209 = arith.constant dense<0.000000e+00> : vector<32x32xf32>
      %316 = tpu.matmul %313, %315, %cst_209 {dimension_numbers = #tpu.dot_dimension_numbers<[1], [0], [0], [1], [0, 0, 1, 1], [], []>} : vector<32x32xf32>, vector<32x32xf32>, vector<32x32xf32> -> vector<32x32xf32>
      %317 = arith.addf %308, %316 : vector<32x32xf32>
      %c14_210 = arith.constant 14 : index
      %c0_211 = arith.constant 0 : index
      %c0_212 = arith.constant 0 : index
      %318 = vector.load %arg12[%c14_210, %c0_211, %c0_212] : memref<20x32x32xf32, #tpu.memory_space<vmem>>, vector<1x32x32xf32>
      %319 = vector.shape_cast %318 : vector<1x32x32xf32> to vector<32x32xf32>
      %320 = vector.extract_strided_slice %191 {offsets = [0, 14], sizes = [32, 1], strides = [1, 1]} : vector<32x20xf32> to vector<32x1xf32>
      %321 = vector.broadcast %320 : vector<32x1xf32> to vector<32x32xf32>
      %322 = arith.mulf %319, %321 : vector<32x32xf32>
      %c14_213 = arith.constant 14 : index
      %c0_214 = arith.constant 0 : index
      %c0_215 = arith.constant 0 : index
      %323 = vector.load %arg6[%c14_213, %c0_214, %c0_215] : memref<20x32x32xf32, #tpu.memory_space<vmem>>, vector<1x32x32xf32>
      %324 = vector.shape_cast %323 : vector<1x32x32xf32> to vector<32x32xf32>
      %cst_216 = arith.constant dense<0.000000e+00> : vector<32x32xf32>
      %325 = tpu.matmul %322, %324, %cst_216 {dimension_numbers = #tpu.dot_dimension_numbers<[1], [0], [0], [1], [0, 0, 1, 1], [], []>} : vector<32x32xf32>, vector<32x32xf32>, vector<32x32xf32> -> vector<32x32xf32>
      %326 = arith.addf %317, %325 : vector<32x32xf32>
      %c15_217 = arith.constant 15 : index
      %c0_218 = arith.constant 0 : index
      %c0_219 = arith.constant 0 : index
      %327 = vector.load %arg12[%c15_217, %c0_218, %c0_219] : memref<20x32x32xf32, #tpu.memory_space<vmem>>, vector<1x32x32xf32>
      %328 = vector.shape_cast %327 : vector<1x32x32xf32> to vector<32x32xf32>
      %329 = vector.extract_strided_slice %191 {offsets = [0, 15], sizes = [32, 1], strides = [1, 1]} : vector<32x20xf32> to vector<32x1xf32>
      %330 = vector.broadcast %329 : vector<32x1xf32> to vector<32x32xf32>
      %331 = arith.mulf %328, %330 : vector<32x32xf32>
      %c15_220 = arith.constant 15 : index
      %c0_221 = arith.constant 0 : index
      %c0_222 = arith.constant 0 : index
      %332 = vector.load %arg6[%c15_220, %c0_221, %c0_222] : memref<20x32x32xf32, #tpu.memory_space<vmem>>, vector<1x32x32xf32>
      %333 = vector.shape_cast %332 : vector<1x32x32xf32> to vector<32x32xf32>
      %cst_223 = arith.constant dense<0.000000e+00> : vector<32x32xf32>
      %334 = tpu.matmul %331, %333, %cst_223 {dimension_numbers = #tpu.dot_dimension_numbers<[1], [0], [0], [1], [0, 0, 1, 1], [], []>} : vector<32x32xf32>, vector<32x32xf32>, vector<32x32xf32> -> vector<32x32xf32>
      %335 = arith.addf %326, %334 : vector<32x32xf32>
      %c16_224 = arith.constant 16 : index
      %c0_225 = arith.constant 0 : index
      %c0_226 = arith.constant 0 : index
      %336 = vector.load %arg12[%c16_224, %c0_225, %c0_226] : memref<20x32x32xf32, #tpu.memory_space<vmem>>, vector<1x32x32xf32>
      %337 = vector.shape_cast %336 : vector<1x32x32xf32> to vector<32x32xf32>
      %338 = vector.extract_strided_slice %191 {offsets = [0, 16], sizes = [32, 1], strides = [1, 1]} : vector<32x20xf32> to vector<32x1xf32>
      %339 = vector.broadcast %338 : vector<32x1xf32> to vector<32x32xf32>
      %340 = arith.mulf %337, %339 : vector<32x32xf32>
      %c16_227 = arith.constant 16 : index
      %c0_228 = arith.constant 0 : index
      %c0_229 = arith.constant 0 : index
      %341 = vector.load %arg6[%c16_227, %c0_228, %c0_229] : memref<20x32x32xf32, #tpu.memory_space<vmem>>, vector<1x32x32xf32>
      %342 = vector.shape_cast %341 : vector<1x32x32xf32> to vector<32x32xf32>
      %cst_230 = arith.constant dense<0.000000e+00> : vector<32x32xf32>
      %343 = tpu.matmul %340, %342, %cst_230 {dimension_numbers = #tpu.dot_dimension_numbers<[1], [0], [0], [1], [0, 0, 1, 1], [], []>} : vector<32x32xf32>, vector<32x32xf32>, vector<32x32xf32> -> vector<32x32xf32>
      %344 = arith.addf %335, %343 : vector<32x32xf32>
      %c17_231 = arith.constant 17 : index
      %c0_232 = arith.constant 0 : index
      %c0_233 = arith.constant 0 : index
      %345 = vector.load %arg12[%c17_231, %c0_232, %c0_233] : memref<20x32x32xf32, #tpu.memory_space<vmem>>, vector<1x32x32xf32>
      %346 = vector.shape_cast %345 : vector<1x32x32xf32> to vector<32x32xf32>
      %347 = vector.extract_strided_slice %191 {offsets = [0, 17], sizes = [32, 1], strides = [1, 1]} : vector<32x20xf32> to vector<32x1xf32>
      %348 = vector.broadcast %347 : vector<32x1xf32> to vector<32x32xf32>
      %349 = arith.mulf %346, %348 : vector<32x32xf32>
      %c17_234 = arith.constant 17 : index
      %c0_235 = arith.constant 0 : index
      %c0_236 = arith.constant 0 : index
      %350 = vector.load %arg6[%c17_234, %c0_235, %c0_236] : memref<20x32x32xf32, #tpu.memory_space<vmem>>, vector<1x32x32xf32>
      %351 = vector.shape_cast %350 : vector<1x32x32xf32> to vector<32x32xf32>
      %cst_237 = arith.constant dense<0.000000e+00> : vector<32x32xf32>
      %352 = tpu.matmul %349, %351, %cst_237 {dimension_numbers = #tpu.dot_dimension_numbers<[1], [0], [0], [1], [0, 0, 1, 1], [], []>} : vector<32x32xf32>, vector<32x32xf32>, vector<32x32xf32> -> vector<32x32xf32>
      %353 = arith.addf %344, %352 : vector<32x32xf32>
      %c18_238 = arith.constant 18 : index
      %c0_239 = arith.constant 0 : index
      %c0_240 = arith.constant 0 : index
      %354 = vector.load %arg12[%c18_238, %c0_239, %c0_240] : memref<20x32x32xf32, #tpu.memory_space<vmem>>, vector<1x32x32xf32>
      %355 = vector.shape_cast %354 : vector<1x32x32xf32> to vector<32x32xf32>
      %356 = vector.extract_strided_slice %191 {offsets = [0, 18], sizes = [32, 1], strides = [1, 1]} : vector<32x20xf32> to vector<32x1xf32>
      %357 = vector.broadcast %356 : vector<32x1xf32> to vector<32x32xf32>
      %358 = arith.mulf %355, %357 : vector<32x32xf32>
      %c18_241 = arith.constant 18 : index
      %c0_242 = arith.constant 0 : index
      %c0_243 = arith.constant 0 : index
      %359 = vector.load %arg6[%c18_241, %c0_242, %c0_243] : memref<20x32x32xf32, #tpu.memory_space<vmem>>, vector<1x32x32xf32>
      %360 = vector.shape_cast %359 : vector<1x32x32xf32> to vector<32x32xf32>
      %cst_244 = arith.constant dense<0.000000e+00> : vector<32x32xf32>
      %361 = tpu.matmul %358, %360, %cst_244 {dimension_numbers = #tpu.dot_dimension_numbers<[1], [0], [0], [1], [0, 0, 1, 1], [], []>} : vector<32x32xf32>, vector<32x32xf32>, vector<32x32xf32> -> vector<32x32xf32>
      %362 = arith.addf %353, %361 : vector<32x32xf32>
      %c19_245 = arith.constant 19 : index
      %c0_246 = arith.constant 0 : index
      %c0_247 = arith.constant 0 : index
      %363 = vector.load %arg12[%c19_245, %c0_246, %c0_247] : memref<20x32x32xf32, #tpu.memory_space<vmem>>, vector<1x32x32xf32>
      %364 = vector.shape_cast %363 : vector<1x32x32xf32> to vector<32x32xf32>
      %365 = vector.extract_strided_slice %191 {offsets = [0, 19], sizes = [32, 1], strides = [1, 1]} : vector<32x20xf32> to vector<32x1xf32>
      %366 = vector.broadcast %365 : vector<32x1xf32> to vector<32x32xf32>
      %367 = arith.mulf %364, %366 : vector<32x32xf32>
      %c19_248 = arith.constant 19 : index
      %c0_249 = arith.constant 0 : index
      %c0_250 = arith.constant 0 : index
      %368 = vector.load %arg6[%c19_248, %c0_249, %c0_250] : memref<20x32x32xf32, #tpu.memory_space<vmem>>, vector<1x32x32xf32>
      %369 = vector.shape_cast %368 : vector<1x32x32xf32> to vector<32x32xf32>
      %cst_251 = arith.constant dense<0.000000e+00> : vector<32x32xf32>
      %370 = tpu.matmul %367, %369, %cst_251 {dimension_numbers = #tpu.dot_dimension_numbers<[1], [0], [0], [1], [0, 0, 1, 1], [], []>} : vector<32x32xf32>, vector<32x32xf32>, vector<32x32xf32> -> vector<32x32xf32>
      %371 = arith.addf %362, %370 : vector<32x32xf32>
      %c0_252 = arith.constant 0 : index
      %c0_253 = arith.constant 0 : index
      %372 = vector.load %arg9[%c0_252, %c0_253] : memref<1x32xf32, #tpu.memory_space<vmem>>, vector<1x32xf32>
      %373 = vector.broadcast %372 : vector<1x32xf32> to vector<32x32xf32>
      %374 = arith.mulf %371, %373 : vector<32x32xf32>
      %c0_254 = arith.constant 0 : index
      %c0_255 = arith.constant 0 : index
      %375 = vector.load %arg10[%c0_254, %c0_255] : memref<1x32xf32, #tpu.memory_space<vmem>>, vector<1x32xf32>
      %376 = vector.broadcast %375 : vector<1x32xf32> to vector<32x32xf32>
      %377 = arith.addf %374, %376 : vector<32x32xf32>
      %cst_256 = arith.constant 0.000000e+00 : f32
      %378 = vector.broadcast %cst_256 : f32 to vector<32x32xf32>
      %379 = arith.cmpf oge, %377, %378 : vector<32x32xf32>
      %cst_257 = arith.constant 0.00999999977 : f32
      %380 = vector.broadcast %cst_257 : f32 to vector<32x32xf32>
      %381 = arith.mulf %380, %377 : vector<32x32xf32>
      %382 = arith.select %379, %377, %381 : vector<32x32xi1>, vector<32x32xf32>
      %c0_258 = arith.constant 0 : index
      %c0_259 = arith.constant 0 : index
      %383 = vector.load %arg11[%c0_258, %c0_259] : memref<32x32xf32, #tpu.memory_space<vmem>>, vector<32x32xf32>
      tpu.vector_store %arg11[%c0_258, %c0_259], %382 {strides = array<i32>} : memref<32x32xf32, #tpu.memory_space<vmem>>, vector<32x32xf32>,
    } else {
    }
    return
  }
  func.func @transform_0(%arg0: i32, %arg1: i32) -> (i32, i32, i32) {
    %c0_i32 = arith.constant 0 : i32
    %c0_i32_0 = arith.constant 0 : i32
    return %arg1, %arg0, %c0_i32 : i32, i32, i32
  }
  func.func @transform_1(%arg0: i32, %arg1: i32) -> (i32, i32) {
    %c0_i32 = arith.constant 0 : i32
    %c0_i32_0 = arith.constant 0 : i32
    %c0_i32_1 = arith.constant 0 : i32
    return %c0_i32, %c0_i32_0 : i32, i32
  }
  func.func @transform_2(%arg0: i32, %arg1: i32) -> (i32, i32) {
    %c0_i32 = arith.constant 0 : i32
    %c0_i32_0 = arith.constant 0 : i32
    return %arg0, %c0_i32 : i32, i32
  }
  func.func @transform_3(%arg0: i32, %arg1: i32) -> (i32, i32) {
    %c0_i32 = arith.constant 0 : i32
    %c0_i32_0 = arith.constant 0 : i32
    return %arg0, %c0_i32 : i32, i32
  }
  func.func @transform_4(%arg0: i32, %arg1: i32) -> (i32, i32, i32) {
    %c0_i32 = arith.constant 0 : i32
    %c0_i32_0 = arith.constant 0 : i32
    %c0_i32_1 = arith.constant 0 : i32
    %c0_i32_2 = arith.constant 0 : i32
    return %c0_i32, %c0_i32_0, %c0_i32_1 : i32, i32, i32
  }
  func.func @transform_5(%arg0: i32, %arg1: i32) -> (i32, i32) {
    %c0_i32 = arith.constant 0 : i32
    %c0_i32_0 = arith.constant 0 : i32
    %c0_i32_1 = arith.constant 0 : i32
    return %c0_i32, %c0_i32_0 : i32, i32
  }
  func.func @transform_6(%arg0: i32, %arg1: i32) -> (i32, i32) {
    %c0_i32 = arith.constant 0 : i32
    %c0_i32_0 = arith.constant 0 : i32
    %c0_i32_1 = arith.constant 0 : i32
    return %c0_i32, %c0_i32_0 : i32, i32
  }
  func.func @transform_7(%arg0: i32, %arg1: i32) -> (i32, i32) {
    %c0_i32 = arith.constant 0 : i32
    %c0_i32_0 = arith.constant 0 : i32
    %c0_i32_1 = arith.constant 0 : i32
    return %c0_i32, %c0_i32_0 : i32, i32
  }
  func.func @transform_8(%arg0: i32, %arg1: i32) -> (i32, i32) {
    %c0_i32 = arith.constant 0 : i32
    %c0_i32_0 = arith.constant 0 : i32
    %c0_i32_1 = arith.constant 0 : i32
    return %c0_i32, %c0_i32_0 : i32, i32
  }
  func.func @transform_9(%arg0: i32, %arg1: i32) -> (i32, i32) {
    %c0_i32 = arith.constant 0 : i32
    %c0_i32_0 = arith.constant 0 : i32
    return %arg0, %c0_i32 : i32, i32
  }
}

</mosaic_0001>

<bundles_post_ra>
// kernel: tpu_custom_call.1
= control target key start
LH: loop header
LB: loop body
LE: loop exit
PB: predicated region body
PF: predicated region fallthrough
CT: control target
= control target key end

     0   :  { %14 = vsyncpa [#allocation4], 0  ;;  %s6198_s0 = inlined_call_operand.hbm [shape: s8[20,32,32], index: 0, kind: input, shape index: {}]   ;;  %s6199_s1 = inlined_call_operand.hbm [shape: bf16[32,32], index: 1, kind: input, shape index: {}]   ;;  %s6200_s2 = inlined_call_operand.vmem [shape: f32[32,32], index: 2, kind: input, shape index: {}]   ;;  %s6201_s3 = inlined_call_operand.vmem [shape: f32[32,20], index: 3, kind: input, shape index: {}]   ;;  %s6202_s4 = inlined_call_operand.hbm [shape: f32[20,32,32], index: 4, kind: input, shape index: {}]   ;;  %s6203_s5 = inlined_call_operand.vmem [shape: f32[32,32], index: 5, kind: input, shape index: {}]   ;;  %s6204_s6 = inlined_call_operand.vmem [shape: f32[1,32], index: 6, kind: input, shape index: {}]   ;;  %s6205_s7 = inlined_call_operand.vmem [shape: f32[1,32], index: 7, kind: input, shape index: {}]   ;;  %s6206_s8 = inlined_call_operand.vmem [shape: f32[1,32], index: 8, kind: input, shape index: {}]   ;;  %s6207_s9 = inlined_call_operand.hbm [shape: f32[32,32], index: 9, kind: output, shape index: {}]  }
   0x1   :  { %15 = vsyncpa [#allocation7], 0 }
   0x2   :  { %16 = vsyncpa [#allocation5], 0  ;;  %s5479_s30 = smov [#allocation6]   ;;  %s5385_s13 = scalar_lea.hbm %s6199_s1, 256 }
   0x3   :  { %s34_s10 = sshll.u32 %s5479_s30, 4  ;;  %p5386_p0 = scmp.ne.s32.totalorder %s6199_s1, %s5385_s13  ;;  %s35_s10 = int_to_ptr.vmem [resolvable:$true] %s34_s10 }
   0x4   :  { %p5389_p1 = scmp.lt.u32.totalorder %s5385_s13, %s6199_s1 }
   0x6   :  { %p5391_p2 = pnand %p5389_p1, %p5386_p0 }
   0x8   :  { %5394 = shalt.err (!%p5391_p2)
}
   0x9   :  { %s5395_s18 = scalar_lea.vmem %s35_s10, 256  ;;  %p5400_p4 = scmp.lt.s32.totalorder %s35_s10, %s35_s10 }
   0xa   :  { %p5396_p3 = scmp.ne.s32.totalorder %s35_s10, %s5395_s18  ;;  %p5401_p5 = scmp.lt.s32.totalorder %s5395_s18, %s5395_s18 }
   0xc   :  { %p5402_p6 = por %p5401_p5, %p5400_p4 }
   0xe   :  { %p5403_p7 = pnand %p5402_p6, %p5396_p3 }
  0x10   :  { %5406 = shalt.err (!%p5403_p7)
}
  0x11   :  { %s5480_s19 = smov 64   ;;  %s5481_s20 = smov 4  }
  0x12   :  { %40 = dma.hbm_to_vmem [thread:$0]  %s6199_s1, 256, %s35_s10, [#allocation7], %s5480_s19, %s5480_s19, %s5481_s20  }
  0x13   :  { %s5482_s23 = smov [#allocation3]   ;;  %s5407_s27 = scalar_lea.hbm %s6198_s0, 2560 }
  0x14   :  { %s22_s24 = sshll.u32 %s5482_s23, 4  ;;  %p5408_p8 = scmp.ne.s32.totalorder %s6198_s0, %s5407_s27  ;;  %s23_s24 = int_to_ptr.vmem [resolvable:$true] %s22_s24 }
  0x15   :  { %p5411_p9 = scmp.lt.u32.totalorder %s5407_s27, %s6198_s0 }
  0x17   :  { %p5413_p10 = pnand %p5411_p9, %p5408_p8 }
  0x19   :  { %5416 = shalt.err (!%p5413_p10)
}
  0x1a   :  { %s5417_s12 = scalar_lea.vmem %s23_s24, 2560  ;;  %p5422_p12 = scmp.lt.s32.totalorder %s23_s24, %s23_s24 }
  0x1b   :  { %p5418_p11 = scmp.ne.s32.totalorder %s23_s24, %s5417_s12  ;;  %p5423_p13 = scmp.lt.s32.totalorder %s5417_s12, %s5417_s12 }
  0x1d   :  { %p5424_p0 = por %p5423_p13, %p5422_p12 }
  0x1f   :  { %p5425_p1 = pnand %p5424_p0, %p5418_p11 }
  0x21   :  { %5428 = shalt.err (!%p5425_p1)
}
  0x22   :  { %s5483_s1 = smov 128   ;;  %s5484_s10 = smov 8  }
  0x23   :  { %28 = dma.hbm_to_vmem [thread:$0]  %s6198_s0, 2560, %s23_s24, [#allocation4], %s5483_s1, %s5483_s1, %s5484_s10  }
  0x24   :  { %s5485_s15 = smov [#allocation8]   ;;  %s5429_s19 = scalar_lea.hbm %s6202_s4, 10240 }
  0x25   :  { %s50_s16 = sshll.u32 %s5485_s15, 4  ;;  %p5430_p2 = scmp.ne.s32.totalorder %s6202_s4, %s5429_s19  ;;  %s51_s16 = int_to_ptr.vmem [resolvable:$true] %s50_s16 }
  0x26   :  { %p5433_p3 = scmp.lt.u32.totalorder %s5429_s19, %s6202_s4 }
  0x28   :  { %p5435_p4 = pnand %p5433_p3, %p5430_p2 }
  0x2a   :  { %5438 = shalt.err (!%p5435_p4)
}
  0x2b   :  { %s5439_s25 = scalar_lea.vmem %s51_s16, 10240  ;;  %p5444_p6 = scmp.lt.s32.totalorder %s51_s16, %s51_s16 }
  0x2c   :  { %p5440_p5 = scmp.ne.s32.totalorder %s51_s16, %s5439_s25  ;;  %p5445_p7 = scmp.lt.s32.totalorder %s5439_s25, %s5439_s25 }
  0x2e   :  { %p5446_p8 = por %p5445_p7, %p5444_p6 }
  0x30   :  { %p5447_p9 = pnand %p5446_p8, %p5440_p5 }
  0x32   :  { %5450 = shalt.err (!%p5447_p9)
}
  0x33   :  { %56 = dma.hbm_to_vmem [thread:$0]  %s6202_s4, 10240, %s51_s16, [#allocation7], %s5483_s1, %s5483_s1, %s5484_s10  }
  0x34   :  { %5473 = dma.done.wait [#allocation4], 2560  }
  0x35   :  { %5474 = vsyncadd [#allocation4], 4294964736 }
  0x36   :  { %5475 = dma.done.wait [#allocation7], 10496  }
  0x37   :  { %5476 = vsyncadd [#allocation7], 4294956800  ;;  %v5486_v0 = vmov 0   ;;  %v5599_v1 = vld [vmem:[#allocation6] sm:$0xff]   ;;  %v5601_v2 = vld [vmem:[#allocation6 + $0x8] sm:$0xff]   ;;  %vm96_vm0 = vcmask 261120  }
  0x38   :  { %5344 = vset.pattern.permute.xlu1 %v5486_v0  ;;  %5343 = vset.pattern.permute.xlu0 %v5486_v0  ;;  %v81_v3 = vld [vmem:[#allocation3] sm:$0xff]  ;;  %v5608_v5 = vld [vmem:[%s6201_s3 + $0x10] sm:$0xff]  ;;  %v159_v6 = vld [vmem:[#allocation3 + $0x8] sm:$0xff]  ;;  %v5487_v13 = vmov 1   ;;  %v5488_v17 = vmov 2   ;;  %v5489_v21 = vmov 3  }
  0x39   :  { %4605 = vmatprep.subr.bf16.mxu1 %v5599_v1  ;;  %v82_v4 = vunpack.c.l.s8.bf16 %v81_v3  ;;  %1547 = vperm.xlu1 %5344, %v5608_v5   ;;  %v5616_v7 = vld [vmem:[%s6201_s3 + $0x18] sm:$0xff]  ;;  %v5621_v8 = vld [vmem:[%s6201_s3] sm:$0xff]  ;;  %v83_v9 = vunpack.c.h.s8.bf16 %v81_v3  ;;  %v160_v10 = vunpack.c.l.s8.bf16 %v159_v6  ;;  %v5630_v11 = vld [vmem:[%s6201_s3 + $0x8] sm:$0xff]  ;;  %v161_v14 = vunpack.c.h.s8.bf16 %v159_v6 }
  0x3a   :  { %4606 = vmatpush3.bf16.msra.mxu1 %v5599_v1  ;;  %1537 = vperm.xlu0 %5343, %v5621_v8   ;;  %v225_v12 = vld [vmem:[#allocation3 + $0x10] sm:$0xff]  ;;  %v291_v16 = vld [vmem:[#allocation3 + $0x18] sm:$0xff]  ;;  %v357_v20 = vld [vmem:[#allocation3 + $0x20] sm:$0xff]  ;;  %v5490_v27 = vmov 4   ;;  %v5491_v30 = vmov 5   ;;  %v5492_v35 = vmov 6  }
  0x3b   :  { %4607 = vmatprep.subr.bf16.mxu1 %v5601_v2  ;;  %4609 = vmatprep.mubr.msk.bf16.mxu1 %vm96_vm0, %v82_v4  ;;  %v226_v15 = vunpack.c.l.s8.bf16 %v225_v12  ;;  %v227_v18 = vunpack.c.h.s8.bf16 %v225_v12  ;;  %v292_v19 = vunpack.c.l.s8.bf16 %v291_v16  ;;  %v293_v22 = vunpack.c.h.s8.bf16 %v291_v16  ;;  %v423_v24 = vld [vmem:[#allocation3 + $0x28] sm:$0xff]  ;;  %v489_v28 = vld [vmem:[#allocation3 + $0x30] sm:$0xff]  ;;  %v555_v32 = vld [vmem:[#allocation3 + $0x38] sm:$0xff] }
  0x3c   :  { %v358_v23 = vunpack.c.l.s8.bf16 %v357_v20  ;;  %v359_v25 = vunpack.c.h.s8.bf16 %v357_v20  ;;  %v424_v26 = vunpack.c.l.s8.bf16 %v423_v24  ;;  %v425_v29 = vunpack.c.h.s8.bf16 %v423_v24  ;;  %v621_v36 = vld [vmem:[#allocation3 + $0x40] sm:$0xff]  ;;  %v1420_v38 = vld [vmem:[%s6203_s5 + $0x8] sm:$0xff]  ;;  %v753_v47 = vld [vmem:[#allocation3 + $0x50] sm:$0xff] }
  0x3d   :  { %1552 = vperm.xlu1 %5344, %v5616_v7   ;;  %v490_v31 = vunpack.c.l.s8.bf16 %v489_v28  ;;  %v491_v33 = vunpack.c.h.s8.bf16 %v489_v28  ;;  %v556_v34 = vunpack.c.l.s8.bf16 %v555_v32  ;;  %v1419_v37 = vld [vmem:[%s6203_s5] sm:$0xff]  ;;  %v5493_v39 = vmov 7   ;;  %v687_v43 = vld [vmem:[#allocation3 + $0x48] sm:$0xff]  ;;  %v819_v51 = vld [vmem:[#allocation3 + $0x58] sm:$0xff] }
  0x3e   :  { %4608 = vmatpush3.bf16.msra.mxu1 %v5601_v2  ;;  %1542 = vperm.xlu0 %5343, %v5630_v11   ;;  %v5059_v40 = vpack.c.bf16 %v1420_v38, %v1419_v37  ;;  %v557_v41 = vunpack.c.h.s8.bf16 %v555_v32  ;;  %v622_v42 = vunpack.c.l.s8.bf16 %v621_v36  ;;  %v623_v44 = vunpack.c.h.s8.bf16 %v621_v36  ;;  %v885_v55 = vld [vmem:[#allocation3 + $0x60] sm:$0xff]  ;;  %v1421_v56 = vld [vmem:[%s6203_s5 + $0x10] sm:$0xff]  ;;  %v1422_v57 = vld [vmem:[%s6203_s5 + $0x18] sm:$0xff] }
  0x3f   :  { %4613 = vmatprep.subr.bf16.mxu1 %v5599_v1  ;;  %v688_v45 = vunpack.c.l.s8.bf16 %v687_v43  ;;  %v5494_v46 = vmov 8   ;;  %v689_v48 = vunpack.c.h.s8.bf16 %v687_v43  ;;  %v5495_v49 = vmov 9   ;;  %v1559_v62 = vld [vmem:[#allocation8] sm:$0xff]  ;;  %v1560_v63 = vld [vmem:[#allocation8 + $0x8] sm:$0xff]  ;;  %v1415_v3 = vld [vmem:[%s6200_s2] sm:$0xff] }
  0x40   :  { %5060 = vmatprep.subr.bf16.mxu0 %v5059_v40  ;;  %v754_v50 = vunpack.c.l.s8.bf16 %v753_v47  ;;  %v755_v52 = vunpack.c.h.s8.bf16 %v753_v47  ;;  %v820_v53 = vunpack.c.l.s8.bf16 %v819_v51  ;;  %v5496_v54 = vmov 10   ;;  %v1416_v4 = vld [vmem:[%s6200_s2 + $0x8] sm:$0xff]  ;;  %4773 = vmatprep.mubr.msk.f32.mxu0 %vm96_vm0, %v1415_v3  ;;  %v1417_v12 = vld [vmem:[%s6200_s2 + $0x10] sm:$0xff]  ;;  %v1418_v16 = vld [vmem:[%s6200_s2 + $0x18] sm:$0xff] }
  0x41   :  { %4610 = vmatmul.mubr.msk.bf16.vlgmr.msra.gmra.mrb[0].mxu1 %vm96_vm0, %v83_v9  ;;  %5346 = vset.pattern.permute.xlu1 %v5487_v13  ;;  %v5497_v58 = vmov 11   ;;  %v5063_v59 = vpack.c.bf16 %v1422_v57, %v1421_v56  ;;  %v821_v60 = vunpack.c.h.s8.bf16 %v819_v51  ;;  %v886_v61 = vunpack.c.l.s8.bf16 %v885_v55  ;;  %v951_v6 = vld [vmem:[#allocation3 + $0x68] sm:$0xff]  ;;  %v1017_v20 = vld [vmem:[#allocation3 + $0x70] sm:$0xff] }
  0x42   :  { %4614 = vmatpush3.bf16.msra.mxu1 %v5599_v1  ;;  %4617 = vmatprep.mubr.msk.bf16.mxu1 %vm96_vm0, %v160_v10  ;;  %v5067_v0 = vpack.c.bf16 %v1560_v63, %v1559_v62  ;;  %v887_v9 = vunpack.c.h.s8.bf16 %v885_v55  ;;  %v952_v10 = vunpack.c.l.s8.bf16 %v951_v6  ;;  %v1018_v24 = vunpack.c.l.s8.bf16 %v1017_v20 }
  0x43   :  { %4615 = vmatprep.subr.bf16.mxu1 %v5601_v2  ;;  %1674 = vperm.xlu1 %5346, %v5630_v11   ;;  %v5504_v47 = vmov 18   ;;  %v5505_v51 = vmov 19  }
  0x44   :  { %5345 = vset.pattern.permute.xlu0 %v5487_v13  ;;  %5062 = vmatpush3.bf16.msra.mxu0 %v5059_v40  ;;  %v1561_v13 = vld [vmem:[#allocation8 + $0x10] sm:$0xff]  ;;  %v1281_v40 = vld [vmem:[#allocation3 + $0x90] sm:$0xff] }
  0x45   :  { %1670 = vperm.xlu0 %5345, %v5621_v8   ;;  %5064 = vmatprep.subr.bf16.mxu0 %v5063_v59  ;;  %v1282_v43 = vunpack.c.l.s8.bf16 %v1281_v40 }
  0x46   :  { %4616 = vmatpush3.bf16.msra.mxu1 %v5601_v2 }
  0x47   :  { %4621 = vmatprep.subr.bf16.mxu1 %v5599_v1  ;;  %1678 = vperm.xlu1 %5346, %v5608_v5  }
  0x48   :  { %5066 = vmatpush3.bf16.msra.mxu0 %v5063_v59 }
  0x49   :  { %4618 = vmatmul.mubr.msk.bf16.vlgmr.msra.gmra.mrb[4].mxu1 %vm96_vm0, %v161_v14  ;;  %1682 = vperm.xlu0 %5345, %v5616_v7   ;;  %v1562_v14 = vld [vmem:[#allocation8 + $0x18] sm:$0xff] }
  0x4a   :  { %4622 = vmatpush3.bf16.msra.mxu1 %v5599_v1  ;;  %4625 = vmatprep.mubr.msk.bf16.mxu1 %vm96_vm0, %v226_v15  ;;  %v5498_v15 = vmov 12  }
  0x4b   :  { %4623 = vmatprep.subr.bf16.mxu1 %v5601_v2  ;;  %5347 = vset.pattern.permute.xlu1 %v5488_v17 }
  0x4c   :  { %1801 = vperm.xlu1 %5347, %v5621_v8   ;;  %5068 = vmatprep.subr.bf16.mxu0 %v5067_v0 }
  0x4d   :  { %5348 = vset.pattern.permute.xlu0 %v5488_v17  ;;  %4774 = vmatmul.mubr.msk.f32.vlgmr.msra.gmra.mrb[0].mxu0 %vm96_vm0, %v1416_v4  ;;  %v5071_v17 = vpack.c.bf16 %v1562_v14, %v1561_v13  ;;  %v1692_v13 = vld [vmem:[#allocation8 + $0x30] sm:$0xff]  ;;  %v1693_v14 = vld [vmem:[#allocation8 + $0x38] sm:$0xff] }
  0x4e   :  { %4624 = vmatpush3.bf16.msra.mxu1 %v5601_v2  ;;  %1805 = vperm.xlu0 %5348, %v5630_v11  }
  0x4f   :  { %4629 = vmatprep.subr.bf16.mxu1 %v5599_v1  ;;  %5070 = vmatpush3.bf16.msra.mxu0 %v5067_v0 }
  0x50   :  { %1809 = vperm.xlu1 %5347, %v5608_v5   ;;  %4776 = vmatprep.mubr.msk.f32.mxu0 %vm96_vm0, %v1417_v12 }
  0x51   :  { %4626 = vmatmul.mubr.msk.bf16.vlgmr.msra.gmra.mrb[8].mxu1 %vm96_vm0, %v227_v18  ;;  %v1690_v18 = vld [vmem:[#allocation8 + $0x20] sm:$0xff]  ;;  %4777 = vmatmul.mubr.msk.f32.gmra.mrb[2].mxu0 %vm96_vm0, %v1418_v16 }
  0x52   :  { %4630 = vmatpush3.bf16.msra.mxu1 %v5599_v1  ;;  %4633 = vmatprep.mubr.msk.bf16.mxu1 %vm96_vm0, %v292_v19  ;;  %v1691_v19 = vld [vmem:[#allocation8 + $0x28] sm:$0xff] }
  0x53   :  { %4631 = vmatprep.subr.bf16.mxu1 %v5601_v2  ;;  %5349 = vset.pattern.permute.xlu0 %v5489_v21 }
  0x54   :  { %1813 = vperm.xlu1 %5347, %v5616_v7   ;;  %1932 = vperm.xlu0 %5349, %v5621_v8  }
  0x55   :  { %5072 = vmatprep.subr.bf16.mxu0 %v5071_v17 }
  0x56   :  { %4632 = vmatpush3.bf16.msra.mxu1 %v5601_v2  ;;  %5074 = vmatpush3.bf16.msra.mxu0 %v5071_v17 }
  0x57   :  { %4637 = vmatprep.subr.bf16.mxu1 %v5599_v1 }
  0x58   :  { %5350 = vset.pattern.permute.xlu1 %v5489_v21  ;;  %1944 = vperm.xlu0 %5349, %v5616_v7   ;;  %v5499_v21 = vmov 13  }
  0x59   :  { %4634 = vmatmul.mubr.msk.bf16.vlgmr.msra.gmra.mrb[12].mxu1 %vm96_vm0, %v293_v22  ;;  %1936 = vperm.xlu1 %5350, %v5630_v11   ;;  %v5781_v22 = vpack.c.bf16 %v1691_v19, %v1690_v18 }
  0x5a   :  { %4638 = vmatpush3.bf16.msra.mxu1 %v5599_v1  ;;  %4641 = vmatprep.mubr.msk.bf16.mxu1 %vm96_vm0, %v358_v23  ;;  %v953_v23 = vunpack.c.h.s8.bf16 %v951_v6 }
  0x5b   :  { %4639 = vmatprep.subr.bf16.mxu1 %v5601_v2  ;;  %5076 = vmatprep.subr.bf16.mxu0 %v5781_v22 }
  0x5c   :  { %5352 = vset.pattern.permute.xlu0 %v5490_v27 }
  0x5d   :  { %1940 = vperm.xlu1 %5350, %v5608_v5   ;;  %2067 = vperm.xlu0 %5352, %v5630_v11  }
  0x5e   :  { %4640 = vmatpush3.bf16.msra.mxu1 %v5601_v2 }
  0x5f   :  { %4645 = vmatprep.subr.bf16.mxu1 %v5599_v1 }
  0x61   :  { %4642 = vmatmul.mubr.msk.bf16.vlgmr.msra.gmra.mrb[16].mxu1 %vm96_vm0, %v359_v25  ;;  %5351 = vset.pattern.permute.xlu1 %v5490_v27  ;;  %v1083_v25 = vld [vmem:[#allocation3 + $0x78] sm:$0xff]  ;;  %v5500_v27 = vmov 14  }
  0x62   :  { %4646 = vmatpush3.bf16.msra.mxu1 %v5599_v1  ;;  %4649 = vmatprep.mubr.msk.bf16.mxu1 %vm96_vm0, %v424_v26  ;;  %v1019_v26 = vunpack.c.h.s8.bf16 %v1017_v20  ;;  %v1084_v28 = vunpack.c.l.s8.bf16 %v1083_v25 }
  0x63   :  { %4647 = vmatprep.subr.bf16.mxu1 %v5601_v2  ;;  %2063 = vperm.xlu1 %5351, %v5621_v8  }
  0x64   :  { %5353 = vset.pattern.permute.xlu0 %v5491_v30 }
  0x65   :  { %2194 = vperm.xlu0 %5353, %v5621_v8  }
  0x66   :  { %4648 = vmatpush3.bf16.msra.mxu1 %v5601_v2 }
  0x67   :  { %4653 = vmatprep.subr.bf16.mxu1 %v5599_v1  ;;  %2071 = vperm.xlu1 %5351, %v5608_v5  }
  0x69   :  { %4650 = vmatmul.mubr.msk.bf16.vlgmr.msra.gmra.mrb[20].mxu1 %vm96_vm0, %v425_v29  ;;  %2206 = vperm.xlu0 %5353, %v5616_v7   ;;  %v1149_v29 = vld [vmem:[#allocation3 + $0x80] sm:$0xff] }
  0x6a   :  { %4654 = vmatpush3.bf16.msra.mxu1 %v5599_v1  ;;  %4657 = vmatprep.mubr.msk.bf16.mxu1 %vm96_vm0, %v490_v31  ;;  %v1085_v31 = vunpack.c.h.s8.bf16 %v1083_v25  ;;  %v1150_v32 = vunpack.c.l.s8.bf16 %v1149_v29  ;;  %v1151_v36 = vunpack.c.h.s8.bf16 %v1149_v29 }
  0x6b   :  { %4655 = vmatprep.subr.bf16.mxu1 %v5601_v2  ;;  %2075 = vperm.xlu1 %5351, %v5616_v7  }
  0x6d   :  { %5356 = vset.pattern.permute.xlu0 %v5492_v35 }
  0x6e   :  { %4656 = vmatpush3.bf16.msra.mxu1 %v5601_v2  ;;  %2329 = vperm.xlu0 %5356, %v5630_v11  }
  0x6f   :  { %4661 = vmatprep.subr.bf16.mxu1 %v5599_v1  ;;  %5354 = vset.pattern.permute.xlu1 %v5491_v30  ;;  %v5501_v30 = vmov 15  }
  0x70   :  { %2198 = vperm.xlu1 %5354, %v5630_v11  }
  0x71   :  { %4658 = vmatmul.mubr.msk.bf16.vlgmr.msra.gmra.mrb[24].mxu1 %vm96_vm0, %v491_v33 }
  0x72   :  { %4662 = vmatpush3.bf16.msra.mxu1 %v5599_v1  ;;  %4665 = vmatprep.mubr.msk.bf16.mxu1 %vm96_vm0, %v556_v34  ;;  %v1215_v34 = vld [vmem:[#allocation3 + $0x88] sm:$0xff] }
  0x73   :  { %4663 = vmatprep.subr.bf16.mxu1 %v5601_v2  ;;  %5357 = vset.pattern.permute.xlu0 %v5493_v39  ;;  %v1216_v37 = vunpack.c.l.s8.bf16 %v1215_v34 }
  0x74   :  { %2202 = vperm.xlu1 %5354, %v5608_v5   ;;  %2456 = vperm.xlu0 %5357, %v5621_v8  }
  0x76   :  { %4664 = vmatpush3.bf16.msra.mxu1 %v5601_v2 }
  0x77   :  { %4669 = vmatprep.subr.bf16.mxu1 %v5599_v1 }
  0x78   :  { %5355 = vset.pattern.permute.xlu1 %v5492_v35  ;;  %2468 = vperm.xlu0 %5357, %v5616_v7   ;;  %v5502_v35 = vmov 16  }
  0x79   :  { %4666 = vmatmul.mubr.msk.bf16.vlgmr.msra.gmra.mrb[28].mxu1 %vm96_vm0, %v557_v41  ;;  %2325 = vperm.xlu1 %5355, %v5621_v8  }
  0x7a   :  { %4670 = vmatpush3.bf16.msra.mxu1 %v5599_v1  ;;  %4673 = vmatprep.mubr.msk.bf16.mxu1 %vm96_vm0, %v622_v42  ;;  %v1217_v42 = vunpack.c.h.s8.bf16 %v1215_v34  ;;  %v1823_v34 = vld [vmem:[#allocation8 + $0x50] sm:$0xff] }
  0x7b   :  { %4671 = vmatprep.subr.bf16.mxu1 %v5601_v2 }
  0x7c   :  { %5360 = vset.pattern.permute.xlu0 %v5494_v46 }
  0x7d   :  { %2333 = vperm.xlu1 %5355, %v5608_v5   ;;  %2591 = vperm.xlu0 %5360, %v5630_v11  }
  0x7e   :  { %4672 = vmatpush3.bf16.msra.mxu1 %v5601_v2 }
  0x7f   :  { %4677 = vmatprep.subr.bf16.mxu1 %v5599_v1 }
  0x81   :  { %4674 = vmatmul.mubr.msk.bf16.vlgmr.msra.gmra.mrb[32].mxu1 %vm96_vm0, %v623_v44  ;;  %2337 = vperm.xlu1 %5355, %v5616_v7  }
  0x82   :  { %4678 = vmatpush3.bf16.msra.mxu1 %v5599_v1  ;;  %4681 = vmatprep.mubr.msk.bf16.mxu1 %vm96_vm0, %v688_v45  ;;  %v1347_v45 = vld [vmem:[#allocation3 + $0x98] sm:$0xff] }
  0x83   :  { %4679 = vmatprep.subr.bf16.mxu1 %v5601_v2  ;;  %5361 = vset.pattern.permute.xlu0 %v5495_v49 }
  0x84   :  { %2718 = vperm.xlu0 %5361, %v5621_v8  }
  0x85   :  { %5358 = vset.pattern.permute.xlu1 %v5493_v39  ;;  %v5503_v39 = vmov 17  }
  0x86   :  { %4680 = vmatpush3.bf16.msra.mxu1 %v5601_v2  ;;  %2460 = vperm.xlu1 %5358, %v5630_v11  }
  0x87   :  { %4685 = vmatprep.subr.bf16.mxu1 %v5599_v1 }
  0x88   :  { %2730 = vperm.xlu0 %5361, %v5616_v7  }
  0x89   :  { %4682 = vmatmul.mubr.msk.bf16.vlgmr.msra.gmra.mrb[36].mxu1 %vm96_vm0, %v689_v48  ;;  %v1283_v48 = vunpack.c.h.s8.bf16 %v1281_v40 }
  0x8a   :  { %4686 = vmatpush3.bf16.msra.mxu1 %v5599_v1  ;;  %4689 = vmatprep.mubr.msk.bf16.mxu1 %vm96_vm0, %v754_v50 }
  0x8b   :  { %4687 = vmatprep.subr.bf16.mxu1 %v5601_v2  ;;  %2464 = vperm.xlu1 %5358, %v5608_v5  }
  0x8c   :  { %5364 = vset.pattern.permute.xlu0 %v5496_v54 }
  0x8d   :  { %2853 = vperm.xlu0 %5364, %v5630_v11  }
  0x8e   :  { %4688 = vmatpush3.bf16.msra.mxu1 %v5601_v2 }
  0x8f   :  { %4693 = vmatprep.subr.bf16.mxu1 %v5599_v1  ;;  %5359 = vset.pattern.permute.xlu1 %v5494_v46 }
  0x90   :  { %2587 = vperm.xlu1 %5359, %v5621_v8  }
  0x91   :  { %4690 = vmatmul.mubr.msk.bf16.vlgmr.msra.gmra.mrb[40].mxu1 %vm96_vm0, %v755_v52  ;;  %5365 = vset.pattern.permute.xlu0 %v5497_v58  ;;  %v1349_v52 = vunpack.c.h.s8.bf16 %v1347_v45 }
  0x92   :  { %4694 = vmatpush3.bf16.msra.mxu1 %v5599_v1  ;;  %4697 = vmatprep.mubr.msk.bf16.mxu1 %vm96_vm0, %v820_v53 }
  0x93   :  { %4695 = vmatprep.subr.bf16.mxu1 %v5601_v2  ;;  %2980 = vperm.xlu0 %5365, %v5621_v8  }
  0x94   :  { %2595 = vperm.xlu1 %5359, %v5608_v5  }
  0x96   :  { %4696 = vmatpush3.bf16.msra.mxu1 %v5601_v2 }
  0x97   :  { %4701 = vmatprep.subr.bf16.mxu1 %v5599_v1  ;;  %2992 = vperm.xlu0 %5365, %v5616_v7  }
  0x98   :  { %2599 = vperm.xlu1 %5359, %v5616_v7  }
  0x99   :  { %4698 = vmatmul.mubr.msk.bf16.vlgmr.msra.gmra.mrb[44].mxu1 %vm96_vm0, %v821_v60 }
  0x9a   :  { %4702 = vmatpush3.bf16.msra.mxu1 %v5599_v1  ;;  %4705 = vmatprep.mubr.msk.bf16.mxu1 %vm96_vm0, %v886_v61 }
  0x9b   :  { %4703 = vmatprep.subr.bf16.mxu1 %v5601_v2  ;;  %5368 = vset.pattern.permute.xlu0 %v5498_v15 }
  0x9c   :  { %5362 = vset.pattern.permute.xlu1 %v5495_v49  ;;  %3115 = vperm.xlu0 %5368, %v5630_v11   ;;  %v1348_v49 = vunpack.c.l.s8.bf16 %v1347_v45 }
  0x9d   :  { %2722 = vperm.xlu1 %5362, %v5630_v11  }
  0x9e   :  { %4704 = vmatpush3.bf16.msra.mxu1 %v5601_v2 }
  0x9f   :  { %4709 = vmatprep.subr.bf16.mxu1 %v5599_v1 }
  0xa0   :  { %5369 = vset.pattern.permute.xlu0 %v5499_v21 }
  0xa1   :  { %4706 = vmatmul.mubr.msk.bf16.vlgmr.msra.gmra.mrb[48].mxu1 %vm96_vm0, %v887_v9  ;;  %2726 = vperm.xlu1 %5362, %v5608_v5  }
  0xa2   :  { %4710 = vmatpush3.bf16.msra.mxu1 %v5599_v1  ;;  %4713 = vmatprep.mubr.msk.bf16.mxu1 %vm96_vm0, %v952_v10 }
  0xa3   :  { %4711 = vmatprep.subr.bf16.mxu1 %v5601_v2  ;;  %3242 = vperm.xlu0 %5369, %v5621_v8  }
  0xa5   :  { %5363 = vset.pattern.permute.xlu1 %v5496_v54 }
  0xa6   :  { %4712 = vmatpush3.bf16.msra.mxu1 %v5601_v2  ;;  %2849 = vperm.xlu1 %5363, %v5621_v8  }
  0xa7   :  { %4717 = vmatprep.subr.bf16.mxu1 %v5599_v1  ;;  %3254 = vperm.xlu0 %5369, %v5616_v7  }
  0xa9   :  { %4714 = vmatmul.mubr.msk.bf16.vlgmr.msra.gmra.mrb[52].mxu1 %vm96_vm0, %v953_v23  ;;  %v5079_v23 = vpack.c.bf16 %v1693_v14, %v1692_v13  ;;  %v4048_v13 = vld [vmem:[#allocation8 + $0x260] sm:$0xff]  ;;  %v4049_v14 = vld [vmem:[#allocation8 + $0x268] sm:$0xff] }
  0xaa   :  { %4718 = vmatpush3.bf16.msra.mxu1 %v5599_v1  ;;  %4721 = vmatprep.mubr.msk.bf16.mxu1 %vm96_vm0, %v1018_v24 }
  0xab   :  { %4719 = vmatprep.subr.bf16.mxu1 %v5601_v2  ;;  %2857 = vperm.xlu1 %5363, %v5608_v5  }
  0xac   :  { %5372 = vset.pattern.permute.xlu0 %v5500_v27 }
  0xad   :  { %3377 = vperm.xlu0 %5372, %v5630_v11  }
  0xae   :  { %4720 = vmatpush3.bf16.msra.mxu1 %v5601_v2 }
  0xaf   :  { %4725 = vmatprep.subr.bf16.mxu1 %v5599_v1  ;;  %2861 = vperm.xlu1 %5363, %v5616_v7  }
  0xb1   :  { %4722 = vmatmul.mubr.msk.bf16.vlgmr.msra.gmra.mrb[56].mxu1 %vm96_vm0, %v1019_v26  ;;  %5373 = vset.pattern.permute.xlu0 %v5501_v30  ;;  %v1821_v26 = vld [vmem:[#allocation8 + $0x40] sm:$0xff] }
  0xb2   :  { %4726 = vmatpush3.bf16.msra.mxu1 %v5599_v1  ;;  %4729 = vmatprep.mubr.msk.bf16.mxu1 %vm96_vm0, %v1084_v28 }
  0xb3   :  { %4727 = vmatprep.subr.bf16.mxu1 %v5601_v2  ;;  %5366 = vset.pattern.permute.xlu1 %v5497_v58 }
  0xb4   :  { %3504 = vperm.xlu0 %5373, %v5621_v8   ;;  %2984 = vperm.xlu1 %5366, %v5630_v11  }
  0xb6   :  { %4728 = vmatpush3.bf16.msra.mxu1 %v5601_v2 }
  0xb7   :  { %4733 = vmatprep.subr.bf16.mxu1 %v5599_v1 }
  0xb8   :  { %3516 = vperm.xlu0 %5373, %v5616_v7   ;;  %2988 = vperm.xlu1 %5366, %v5608_v5   ;;  %v5815_v33 = vpop.permute.xlu1 %1547 }
  0xb9   :  { %4730 = vmatmul.mubr.msk.bf16.vlgmr.msra.gmra.mrb[60].mxu1 %vm96_vm0, %v1085_v31  ;;  %v1538_v6 = vpop.permute.xlu0 %1537 }
  0xba   :  { %4734 = vmatpush3.bf16.msra.mxu1 %v5599_v1  ;;  %4737 = vmatprep.mubr.msk.bf16.mxu1 %vm96_vm0, %v1150_v32 }
  0xbb   :  { %4735 = vmatprep.subr.bf16.mxu1 %v5601_v2 }
  0xbc   :  { %5376 = vset.pattern.permute.xlu0 %v5502_v35  ;;  %5367 = vset.pattern.permute.xlu1 %v5498_v15  ;;  %v5823_v38 = vpop.permute.xlu1 %1552 }
  0xbd   :  { %3639 = vperm.xlu0 %5376, %v5630_v11   ;;  %3111 = vperm.xlu1 %5367, %v5621_v8   ;;  %v1543_v9 = vpop.permute.xlu0 %1542 }
  0xbe   :  { %4736 = vmatpush3.bf16.msra.mxu1 %v5601_v2 }
  0xbf   :  { %4741 = vmatprep.subr.bf16.mxu1 %v5599_v1 }
  0xc1   :  { %4738 = vmatmul.mubr.msk.bf16.vlgmr.msra.gmra.mrb[64].mxu1 %vm96_vm0, %v1151_v36  ;;  %5377 = vset.pattern.permute.xlu0 %v5503_v39 }
  0xc2   :  { %4742 = vmatpush3.bf16.msra.mxu1 %v5599_v1  ;;  %4745 = vmatprep.mubr.msk.bf16.mxu1 %vm96_vm0, %v1216_v37  ;;  %v5831_v41 = vpop.permute.xlu1 %1674 }
  0xc3   :  { %4743 = vmatprep.subr.bf16.mxu1 %v5601_v2  ;;  %3119 = vperm.xlu1 %5367, %v5608_v5  }
  0xc4   :  { %3766 = vperm.xlu0 %5377, %v5621_v8  }
  0xc6   :  { %4744 = vmatpush3.bf16.msra.mxu1 %v5601_v2  ;;  %v5837_v44 = vpop.permute.xlu1 %1678 }
  0xc7   :  { %4749 = vmatprep.subr.bf16.mxu1 %v5599_v1  ;;  %3123 = vperm.xlu1 %5367, %v5616_v7  }
  0xc8   :  { %3778 = vperm.xlu0 %5377, %v5616_v7  }
  0xc9   :  { %4746 = vmatmul.mubr.msk.bf16.vlgmr.msra.gmra.mrb[68].mxu1 %vm96_vm0, %v1217_v42 }
  0xca   :  { %4750 = vmatpush3.bf16.msra.mxu1 %v5599_v1  ;;  %4753 = vmatprep.mubr.msk.bf16.mxu1 %vm96_vm0, %v1282_v43 }
  0xcb   :  { %4751 = vmatprep.subr.bf16.mxu1 %v5601_v2  ;;  %5370 = vset.pattern.permute.xlu1 %v5499_v21  ;;  %v5846_v46 = vpop.permute.xlu1 %1801  ;;  %v1671_v21 = vpop.permute.xlu0 %1670 }
  0xcc   :  { %3246 = vperm.xlu1 %5370, %v5630_v11   ;;  %5380 = vset.pattern.permute.xlu0 %v5504_v47 }
  0xcd   :  { %3901 = vperm.xlu0 %5380, %v5630_v11  }
  0xce   :  { %4752 = vmatpush3.bf16.msra.mxu1 %v5601_v2 }
  0xcf   :  { %4757 = vmatprep.subr.bf16.mxu1 %v5599_v1  ;;  %v5852_v50 = vpop.permute.xlu1 %1809 }
  0xd0   :  { %3250 = vperm.xlu1 %5370, %v5608_v5  }
  0xd1   :  { %4754 = vmatmul.mubr.msk.bf16.vlgmr.msra.gmra.mrb[72].mxu1 %vm96_vm0, %v1283_v48  ;;  %5381 = vset.pattern.permute.xlu0 %v5505_v51 }
  0xd2   :  { %4758 = vmatpush3.bf16.msra.mxu1 %v5599_v1  ;;  %4761 = vmatprep.mubr.msk.bf16.mxu1 %vm96_vm0, %v1348_v49  ;;  %v1952_v49 = vld [vmem:[#allocation8 + $0x60] sm:$0xff] }
  0xd3   :  { %4759 = vmatprep.subr.bf16.mxu1 %v5601_v2  ;;  %4028 = vperm.xlu0 %5381, %v5621_v8   ;;  %v5862_v53 = vpop.permute.xlu1 %1813 }
  0xd4   :  { %5371 = vset.pattern.permute.xlu1 %v5500_v27  ;;  %v1822_v27 = vld [vmem:[#allocation8 + $0x48] sm:$0xff] }
  0xd5   :  { %3373 = vperm.xlu1 %5371, %v5621_v8   ;;  %v5083_v31 = vpack.c.bf16 %v1822_v27, %v1821_v26  ;;  %v4050_v26 = vld [vmem:[#allocation8 + $0x270] sm:$0xff]  ;;  %v4051_v27 = vld [vmem:[#allocation8 + $0x278] sm:$0xff] }
  0xd6   :  { %4760 = vmatpush3.bf16.msra.mxu1 %v5601_v2 }
  0xd7   :  { %4040 = vperm.xlu0 %5381, %v5616_v7  }
  0xd8   :  { %v5867_v1 = vpop.permute.xlu1 %1936 }
  0xd9   :  { %4762 = vmatmul.mubr.msk.bf16.vlgmr.msra.gmra.mrb[76].mxu1 %vm96_vm0, %v1349_v52  ;;  %3381 = vperm.xlu1 %5371, %v5608_v5  }
  0xdc   :  { %v5870_v54 = vpop.permute.xlu1 %1940 }
  0xdd   :  { %3385 = vperm.xlu1 %5371, %v5616_v7  }
  0xe1   :  { %5374 = vset.pattern.permute.xlu1 %v5501_v30 }
  0xe2   :  { %3508 = vperm.xlu1 %5374, %v5630_v11   ;;  %v5874_v55 = vpop.permute.xlu1 %2063 }
  0xe6   :  { %3512 = vperm.xlu1 %5374, %v5608_v5   ;;  %v5877_v2 = vpop.permute.xlu1 %2071 }
  0xea   :  { %5375 = vset.pattern.permute.xlu1 %v5502_v35  ;;  %v5881_v56 = vpop.permute.xlu1 %2075  ;;  %v1824_v35 = vld [vmem:[#allocation8 + $0x58] sm:$0xff] }
  0xeb   :  { %3635 = vperm.xlu1 %5375, %v5621_v8   ;;  %v5087_v45 = vpack.c.bf16 %v1824_v35, %v1823_v34  ;;  %v2085_v34 = vld [vmem:[#allocation8 + $0x90] sm:$0xff]  ;;  %v2086_v35 = vld [vmem:[#allocation8 + $0x98] sm:$0xff] }
  0xef   :  { %3643 = vperm.xlu1 %5375, %v5608_v5   ;;  %v5884_v57 = vpop.permute.xlu1 %2198 }
  0xf3   :  { %3647 = vperm.xlu1 %5375, %v5616_v7   ;;  %v5887_v58 = vpop.permute.xlu1 %2202 }
  0xf7   :  { %5378 = vset.pattern.permute.xlu1 %v5503_v39  ;;  %v1683_v39 = vpop.permute.xlu0 %1682 }
  0xf8   :  { %3770 = vperm.xlu1 %5378, %v5630_v11   ;;  %v5890_v59 = vpop.permute.xlu1 %2325 }
  0xfb   :  { %v1806_v52 = vpop.permute.xlu0 %1805 }
  0xfc   :  { %3774 = vperm.xlu1 %5378, %v5608_v5   ;;  %v5893_v60 = vpop.permute.xlu1 %2333 }
 0x100   :  { %5379 = vset.pattern.permute.xlu1 %v5504_v47  ;;  %v5896_v61 = vpop.permute.xlu1 %2337 }
 0x101   :  { %3897 = vperm.xlu1 %5379, %v5621_v8  }
 0x105   :  { %3905 = vperm.xlu1 %5379, %v5608_v5   ;;  %v5900_v62 = vpop.permute.xlu1 %2460 }
 0x109   :  { %3909 = vperm.xlu1 %5379, %v5616_v7  }
 0x10a   :  { %v5903_v63 = vpop.permute.xlu1 %2464 }
 0x10d   :  { %5382 = vset.pattern.permute.xlu1 %v5505_v51  ;;  %v1953_v51 = vld [vmem:[#allocation8 + $0x68] sm:$0xff] }
 0x10e   :  { %4036 = vperm.xlu1 %5382, %v5608_v5  }
 0x10f   :  { %v5907_v8 = vpop.permute.xlu1 %2587 }
 0x112   :  { %4032 = vperm.xlu1 %5382, %v5630_v11  }
 0x113   :  { %v5912_v5 = vpop.permute.xlu1 %2595 }
 0x114   :  { %v4611_v0 = vpop.f32.mrb[0].mxu1 }
 0x115   :  { %156 = vst.msk [vmem:[#allocation2 + $0x10] sm:$0xff] %vm96_vm0, %v4611_v0  ;;  %v137_v3 = vpop.f32.mrb[1].mxu1 }
 0x116   :  { %154 = vst.msk [vmem:[#allocation2] sm:$0xff] %vm96_vm0, %v137_v3  ;;  %v4612_v4 = vpop.f32.mrb[2].mxu1 }
 0x117   :  { %157 = vst.msk [vmem:[#allocation2 + $0x18] sm:$0xff] %vm96_vm0, %v4612_v4  ;;  %v140_v7 = vpop.f32.mrb[3].mxu1  ;;  %v5920_v28 = vpop.permute.xlu1 %2599 }
 0x118   :  { %155 = vst.msk [vmem:[#allocation2 + $0x8] sm:$0xff] %vm96_vm0, %v140_v7 }
 0x11c   :  { %v4619_v10 = vpop.f32.mrb[4].mxu1  ;;  %v1533_v17 = vld [vmem:[#allocation2 + $0x10] sm:$0xff]  ;;  %v5927_v36 = vpop.permute.xlu1 %2722 }
 0x11d   :  { %v1531_v11 = vld [vmem:[#allocation2] sm:$0xff]  ;;  %222 = vst.msk [vmem:[#allocation2 + $0x30] sm:$0xff] %vm96_vm0, %v4619_v10  ;;  %v202_v12 = vpop.f32.mrb[5].mxu1  ;;  %v1557_v24 = vmul.f32 %v5815_v33, %v1533_v17  ;;  %v5945_v17 = vpack.c.bf16 %v4049_v14, %v4048_v13 }
 0x11e   :  { %v1555_v15 = vmul.f32 %v1538_v6, %v1531_v11  ;;  %220 = vst.msk [vmem:[#allocation2 + $0x20] sm:$0xff] %vm96_vm0, %v202_v12  ;;  %v4620_v16 = vpop.f32.mrb[6].mxu1  ;;  %v1534_v25 = vld [vmem:[#allocation2 + $0x18] sm:$0xff]  ;;  %v5091_v6 = vpack.c.bf16 %v1953_v51, %v1952_v49  ;;  %v2214_v49 = vld [vmem:[#allocation8 + $0xa0] sm:$0xff] }
 0x11f   :  { %v1532_v18 = vld [vmem:[#allocation2 + $0x8] sm:$0xff]  ;;  %223 = vst.msk [vmem:[#allocation2 + $0x38] sm:$0xff] %vm96_vm0, %v4620_v16  ;;  %v205_v19 = vpop.f32.mrb[7].mxu1  ;;  %v1558_v30 = vmul.f32 %v5823_v38, %v1534_v25  ;;  %5227 = vmatprep.subr.bf16.mxu1 %v5945_v17  ;;  %v2215_v51 = vld [vmem:[#allocation8 + $0xa8] sm:$0xff] }
 0x120   :  { %v1556_v20 = vmul.f32 %v1543_v9, %v1532_v18  ;;  %221 = vst.msk [vmem:[#allocation2 + $0x28] sm:$0xff] %vm96_vm0, %v205_v19  ;;  %4787 = vmatprep.mubr.msk.f32.mxu0 %vm96_vm0, %v1555_v15  ;;  %v5938_v0 = vpop.permute.xlu1 %2726  ;;  %v1954_v9 = vld [vmem:[#allocation8 + $0x70] sm:$0xff]  ;;  %v1933_v19 = vpop.permute.xlu0 %1932  ;;  %5229 = vmatpush3.bf16.msra.mxu1 %v5945_v17 }
 0x122   :  { %4788 = vmatmul.mubr.msk.f32.vlgmr.msra.gmra.mrb[0].mxu0 %vm96_vm0, %v1556_v20 }
 0x123   :  { %4790 = vmatprep.mubr.msk.f32.mxu0 %vm96_vm0, %v1557_v24  ;;  %5078 = vmatpush3.bf16.msra.mxu0 %v5781_v22  ;;  %v2084_v24 = vld [vmem:[#allocation8 + $0x88] sm:$0xff] }
 0x124   :  { %v4627_v29 = vpop.f32.mrb[8].mxu1  ;;  %5080 = vmatprep.subr.bf16.mxu0 %v5079_v23  ;;  %v1667_v22 = vld [vmem:[#allocation2 + $0x30] sm:$0xff] }
 0x125   :  { %v1665_v32 = vld [vmem:[#allocation2 + $0x20] sm:$0xff]  ;;  %288 = vst.msk [vmem:[#allocation2 + $0x50] sm:$0xff] %vm96_vm0, %v4627_v29  ;;  %v268_v33 = vpop.f32.mrb[9].mxu1  ;;  %v1687_v48 = vmul.f32 %v5837_v44, %v1667_v22  ;;  %v1955_v44 = vld [vmem:[#allocation8 + $0x78] sm:$0xff]  ;;  %v5950_v25 = vpop.permute.xlu1 %2849  ;;  %v5956_v29 = vpack.c.bf16 %v4051_v27, %v4050_v26 }
 0x126   :  { %v1685_v37 = vmul.f32 %v1671_v21, %v1665_v32  ;;  %286 = vst.msk [vmem:[#allocation2 + $0x40] sm:$0xff] %vm96_vm0, %v268_v33  ;;  %v4628_v40 = vpop.f32.mrb[10].mxu1  ;;  %4791 = vmatmul.mubr.msk.f32.gmra.mrb[2].mxu0 %vm96_vm0, %v1558_v30  ;;  %v1668_v47 = vld [vmem:[#allocation2 + $0x38] sm:$0xff]  ;;  %v5095_v20 = vpack.c.bf16 %v1955_v44, %v1954_v9  ;;  %v2217_v9 = vld [vmem:[#allocation8 + $0xb8] sm:$0xff] }
 0x127   :  { %289 = vst.msk [vmem:[#allocation2 + $0x58] sm:$0xff] %vm96_vm0, %v4628_v40  ;;  %v271_v38 = vpop.f32.mrb[11].mxu1  ;;  %5082 = vmatpush3.bf16.msra.mxu0 %v5079_v23  ;;  %v1666_v42 = vld [vmem:[#allocation2 + $0x28] sm:$0xff]  ;;  %v1688_v3 = vmul.f32 %v1683_v39, %v1668_v47  ;;  %v2083_v23 = vld [vmem:[#allocation8 + $0x80] sm:$0xff]  ;;  %5228 = vmatprep.subr.bf16.mxu1 %v5956_v29  ;;  %v1945_v39 = vpop.permute.xlu0 %1944 }
 0x128   :  { %287 = vst.msk [vmem:[#allocation2 + $0x48] sm:$0xff] %vm96_vm0, %v271_v38  ;;  %4801 = vmatprep.mubr.msk.f32.mxu0 %vm96_vm0, %v1685_v37  ;;  %v1686_v43 = vmul.f32 %v5831_v41, %v1666_v42  ;;  %5084 = vmatprep.subr.bf16.mxu0 %v5083_v31 }
 0x129   :  { %5230 = vmatpush3.bf16.msra.mxu1 %v5956_v29 }
 0x12a   :  { %4802 = vmatmul.mubr.msk.f32.vlgmr.msra.gmra.mrb[0].mxu0 %vm96_vm0, %v1686_v43  ;;  %v5965_v42 = vpop.permute.xlu1 %2857 }
 0x12b   :  { %4804 = vmatprep.mubr.msk.f32.mxu0 %vm96_vm0, %v1687_v48  ;;  %5086 = vmatpush3.bf16.msra.mxu0 %v5083_v31  ;;  %v5099_v31 = vpack.c.bf16 %v2084_v24, %v2083_v23 }
 0x12c   :  { %v4635_v4 = vpop.f32.mrb[12].mxu1  ;;  %5088 = vmatprep.subr.bf16.mxu0 %v5087_v45  ;;  %v1798_v12 = vld [vmem:[#allocation2 + $0x50] sm:$0xff] }
 0x12d   :  { %354 = vst.msk [vmem:[#allocation2 + $0x70] sm:$0xff] %vm96_vm0, %v4635_v4  ;;  %v334_v41 = vpop.f32.mrb[13].mxu1  ;;  %v1796_v7 = vld [vmem:[#allocation2 + $0x40] sm:$0xff] }
 0x12e   :  { %352 = vst.msk [vmem:[#allocation2 + $0x60] sm:$0xff] %vm96_vm0, %v334_v41  ;;  %v4636_v10 = vpop.f32.mrb[14].mxu1  ;;  %4805 = vmatmul.mubr.msk.f32.gmra.mrb[2].mxu0 %vm96_vm0, %v1688_v3  ;;  %v1816_v11 = vmul.f32 %v5846_v46, %v1796_v7  ;;  %v1818_v46 = vmul.f32 %v5852_v50, %v1798_v12  ;;  %v1799_v21 = vld [vmem:[#allocation2 + $0x58] sm:$0xff]  ;;  %v2216_v7 = vld [vmem:[#allocation8 + $0xb0] sm:$0xff]  ;;  %v5974_v44 = vpop.permute.xlu1 %2861 }
 0x12f   :  { %v1797_v15 = vld [vmem:[#allocation2 + $0x48] sm:$0xff]  ;;  %355 = vst.msk [vmem:[#allocation2 + $0x78] sm:$0xff] %vm96_vm0, %v4636_v10  ;;  %v337_v16 = vpop.f32.mrb[15].mxu1  ;;  %5090 = vmatpush3.bf16.msra.mxu0 %v5087_v45  ;;  %v1819_v50 = vmul.f32 %v5862_v53, %v1799_v21  ;;  %v5103_v45 = vpack.c.bf16 %v2086_v35, %v2085_v34 }
 0x130   :  { %v1817_v18 = vmul.f32 %v1806_v52, %v1797_v15  ;;  %353 = vst.msk [vmem:[#allocation2 + $0x68] sm:$0xff] %vm96_vm0, %v337_v16  ;;  %4815 = vmatprep.mubr.msk.f32.mxu0 %vm96_vm0, %v1816_v11  ;;  %5092 = vmatprep.subr.bf16.mxu0 %v5091_v6  ;;  %v2068_v52 = vpop.permute.xlu0 %2067  ;;  %v5111_v16 = vpack.c.bf16 %v2217_v9, %v2216_v7 }
 0x132   :  { %4816 = vmatmul.mubr.msk.f32.vlgmr.msra.gmra.mrb[0].mxu0 %vm96_vm0, %v1817_v18 }
 0x133   :  { %4818 = vmatprep.mubr.msk.f32.mxu0 %vm96_vm0, %v1818_v46  ;;  %5094 = vmatpush3.bf16.msra.mxu0 %v5091_v6  ;;  %v5107_v6 = vpack.c.bf16 %v2215_v51, %v2214_v49  ;;  %v2346_v46 = vld [vmem:[#allocation8 + $0xc8] sm:$0xff]  ;;  %v2478_v51 = vld [vmem:[#allocation8 + $0xf0] sm:$0xff] }
 0x134   :  { %v4643_v30 = vpop.f32.mrb[16].mxu1  ;;  %5096 = vmatprep.subr.bf16.mxu0 %v5095_v20  ;;  %v1929_v22 = vld [vmem:[#allocation2 + $0x70] sm:$0xff]  ;;  %v2195_v15 = vpop.permute.xlu0 %2194 }
 0x135   :  { %v1927_v32 = vld [vmem:[#allocation2 + $0x60] sm:$0xff]  ;;  %420 = vst.msk [vmem:[#allocation2 + $0x90] sm:$0xff] %vm96_vm0, %v4643_v30  ;;  %v400_v33 = vpop.f32.mrb[17].mxu1  ;;  %v1949_v48 = vmul.f32 %v5870_v54, %v1929_v22  ;;  %v2348_v30 = vld [vmem:[#allocation8 + $0xd8] sm:$0xff] }
 0x136   :  { %v1947_v37 = vmul.f32 %v1933_v19, %v1927_v32  ;;  %418 = vst.msk [vmem:[#allocation2 + $0x80] sm:$0xff] %vm96_vm0, %v400_v33  ;;  %v4644_v40 = vpop.f32.mrb[18].mxu1  ;;  %4819 = vmatmul.mubr.msk.f32.gmra.mrb[2].mxu0 %vm96_vm0, %v1819_v50  ;;  %v1930_v47 = vld [vmem:[#allocation2 + $0x78] sm:$0xff] }
 0x137   :  { %421 = vst.msk [vmem:[#allocation2 + $0x98] sm:$0xff] %vm96_vm0, %v4644_v40  ;;  %v403_v53 = vpop.f32.mrb[19].mxu1  ;;  %5098 = vmatpush3.bf16.msra.mxu0 %v5095_v20  ;;  %v1928_v38 = vld [vmem:[#allocation2 + $0x68] sm:$0xff]  ;;  %v1950_v3 = vmul.f32 %v1945_v39, %v1930_v47  ;;  %v2345_v20 = vld [vmem:[#allocation8 + $0xc0] sm:$0xff] }
 0x138   :  { %419 = vst.msk [vmem:[#allocation2 + $0x88] sm:$0xff] %vm96_vm0, %v403_v53  ;;  %4829 = vmatprep.mubr.msk.f32.mxu0 %vm96_vm0, %v1947_v37  ;;  %v1948_v43 = vmul.f32 %v5867_v1, %v1928_v38  ;;  %5100 = vmatprep.subr.bf16.mxu0 %v5099_v31  ;;  %v5115_v24 = vpack.c.bf16 %v2346_v46, %v2345_v20  ;;  %v2476_v53 = vld [vmem:[#allocation8 + $0xe0] sm:$0xff]  ;;  %v2477_v38 = vld [vmem:[#allocation8 + $0xe8] sm:$0xff]  ;;  %v2610_v20 = vld [vmem:[#allocation8 + $0x118] sm:$0xff] }
 0x13a   :  { %4830 = vmatmul.mubr.msk.f32.vlgmr.msra.gmra.mrb[0].mxu0 %vm96_vm0, %v1948_v43 }
 0x13b   :  { %4832 = vmatprep.mubr.msk.f32.mxu0 %vm96_vm0, %v1949_v48  ;;  %5102 = vmatpush3.bf16.msra.mxu0 %v5099_v31  ;;  %v2207_v31 = vpop.permute.xlu0 %2206  ;;  %v5123_v48 = vpack.c.bf16 %v2477_v38, %v2476_v53 }
 0x13c   :  { %v4651_v4 = vpop.f32.mrb[20].mxu1  ;;  %5104 = vmatprep.subr.bf16.mxu0 %v5103_v45  ;;  %v2060_v11 = vld [vmem:[#allocation2 + $0x90] sm:$0xff] }
 0x13d   :  { %486 = vst.msk [vmem:[#allocation2 + $0xb0] sm:$0xff] %vm96_vm0, %v4651_v4  ;;  %v466_v1 = vpop.f32.mrb[21].mxu1  ;;  %v2058_v41 = vld [vmem:[#allocation2 + $0x80] sm:$0xff]  ;;  %v2080_v18 = vmul.f32 %v5877_v2, %v2060_v11 }
 0x13e   :  { %484 = vst.msk [vmem:[#allocation2 + $0xa0] sm:$0xff] %vm96_vm0, %v466_v1  ;;  %v4652_v54 = vpop.f32.mrb[22].mxu1  ;;  %4833 = vmatmul.mubr.msk.f32.gmra.mrb[2].mxu0 %vm96_vm0, %v1950_v3  ;;  %v2078_v10 = vmul.f32 %v5874_v55, %v2058_v41  ;;  %v2061_v19 = vld [vmem:[#allocation2 + $0x98] sm:$0xff]  ;;  %v5983_v55 = vpop.permute.xlu1 %2984  ;;  %v2347_v2 = vld [vmem:[#allocation8 + $0xd0] sm:$0xff] }
 0x13f   :  { %v2059_v12 = vld [vmem:[#allocation2 + $0x88] sm:$0xff]  ;;  %487 = vst.msk [vmem:[#allocation2 + $0xb8] sm:$0xff] %vm96_vm0, %v4652_v54  ;;  %v469_v13 = vpop.f32.mrb[23].mxu1  ;;  %5106 = vmatpush3.bf16.msra.mxu0 %v5103_v45  ;;  %v2081_v23 = vmul.f32 %v5881_v56, %v2061_v19  ;;  %v5119_v39 = vpack.c.bf16 %v2348_v30, %v2347_v2  ;;  %v2330_v43 = vpop.permute.xlu0 %2329 }
 0x140   :  { %v2079_v14 = vmul.f32 %v2068_v52, %v2059_v12  ;;  %485 = vst.msk [vmem:[#allocation2 + $0xa8] sm:$0xff] %vm96_vm0, %v469_v13  ;;  %4843 = vmatprep.mubr.msk.f32.mxu0 %vm96_vm0, %v2078_v10  ;;  %5108 = vmatprep.subr.bf16.mxu0 %v5107_v6  ;;  %v2479_v52 = vld [vmem:[#allocation8 + $0xf8] sm:$0xff]  ;;  %v2607_v12 = vld [vmem:[#allocation8 + $0x100] sm:$0xff]  ;;  %v2608_v13 = vld [vmem:[#allocation8 + $0x108] sm:$0xff] }
 0x141   :  { %v5127_v54 = vpack.c.bf16 %v2479_v52, %v2478_v51 }
 0x142   :  { %4844 = vmatmul.mubr.msk.f32.vlgmr.msra.gmra.mrb[0].mxu0 %vm96_vm0, %v2079_v14  ;;  %v5992_v35 = vpop.permute.xlu1 %2988 }
 0x143   :  { %4846 = vmatprep.mubr.msk.f32.mxu0 %vm96_vm0, %v2080_v18  ;;  %5110 = vmatpush3.bf16.msra.mxu0 %v5107_v6  ;;  %v2457_v9 = vpop.permute.xlu0 %2456 }
 0x144   :  { %v4659_v21 = vpop.f32.mrb[24].mxu1  ;;  %5112 = vmatprep.subr.bf16.mxu0 %v5111_v16  ;;  %v2191_v33 = vld [vmem:[#allocation2 + $0xb0] sm:$0xff] }
 0x145   :  { %v2189_v26 = vld [vmem:[#allocation2 + $0xa0] sm:$0xff]  ;;  %552 = vst.msk [vmem:[#allocation2 + $0xd0] sm:$0xff] %vm96_vm0, %v4659_v21  ;;  %v532_v27 = vpop.f32.mrb[25].mxu1  ;;  %v2211_v22 = vmul.f32 %v5887_v58, %v2191_v33 }
 0x146   :  { %v2209_v50 = vmul.f32 %v2195_v15, %v2189_v26  ;;  %550 = vst.msk [vmem:[#allocation2 + $0xc0] sm:$0xff] %vm96_vm0, %v532_v27  ;;  %v4660_v32 = vpop.f32.mrb[26].mxu1  ;;  %4847 = vmatmul.mubr.msk.f32.gmra.mrb[2].mxu0 %vm96_vm0, %v2081_v23  ;;  %v2192_v40 = vld [vmem:[#allocation2 + $0xb8] sm:$0xff]  ;;  %v6001_v3 = vpop.permute.xlu1 %3111 }
 0x147   :  { %553 = vst.msk [vmem:[#allocation2 + $0xd8] sm:$0xff] %vm96_vm0, %v4660_v32  ;;  %v535_v34 = vpop.f32.mrb[27].mxu1  ;;  %5114 = vmatpush3.bf16.msra.mxu0 %v5111_v16  ;;  %v2190_v56 = vld [vmem:[#allocation2 + $0xa8] sm:$0xff]  ;;  %v2212_v45 = vmul.f32 %v2207_v31, %v2192_v40  ;;  %v5131_v16 = vpack.c.bf16 %v2608_v13, %v2607_v12  ;;  %v2469_v21 = vpop.permute.xlu0 %2468  ;;  %v2738_v31 = vld [vmem:[#allocation8 + $0x120] sm:$0xff]  ;;  %v2739_v32 = vld [vmem:[#allocation8 + $0x128] sm:$0xff] }
 0x148   :  { %551 = vst.msk [vmem:[#allocation2 + $0xc8] sm:$0xff] %vm96_vm0, %v535_v34  ;;  %4857 = vmatprep.mubr.msk.f32.mxu0 %vm96_vm0, %v2209_v50  ;;  %v2210_v37 = vmul.f32 %v5884_v57, %v2190_v56  ;;  %5116 = vmatprep.subr.bf16.mxu0 %v5115_v24 }
 0x14a   :  { %4858 = vmatmul.mubr.msk.f32.vlgmr.msra.gmra.mrb[0].mxu0 %vm96_vm0, %v2210_v37 }
 0x14b   :  { %4860 = vmatprep.mubr.msk.f32.mxu0 %vm96_vm0, %v2211_v22  ;;  %5118 = vmatpush3.bf16.msra.mxu0 %v5115_v24  ;;  %v2592_v34 = vpop.permute.xlu0 %2591  ;;  %v2740_v22 = vld [vmem:[#allocation8 + $0x130] sm:$0xff] }
 0x14c   :  { %v4667_v47 = vpop.f32.mrb[28].mxu1  ;;  %5120 = vmatprep.subr.bf16.mxu0 %v5119_v39  ;;  %v2322_v6 = vld [vmem:[#allocation2 + $0xd0] sm:$0xff] }
 0x14d   :  { %618 = vst.msk [vmem:[#allocation2 + $0xf0] sm:$0xff] %vm96_vm0, %v4667_v47  ;;  %v598_v57 = vpop.f32.mrb[29].mxu1  ;;  %v2320_v49 = vld [vmem:[#allocation2 + $0xc0] sm:$0xff]  ;;  %v2342_v10 = vmul.f32 %v5893_v60, %v2322_v6  ;;  %v2870_v6 = vld [vmem:[#allocation8 + $0x148] sm:$0xff] }
 0x14e   :  { %616 = vst.msk [vmem:[#allocation2 + $0xe0] sm:$0xff] %vm96_vm0, %v598_v57  ;;  %v4668_v58 = vpop.f32.mrb[30].mxu1  ;;  %4861 = vmatmul.mubr.msk.f32.gmra.mrb[2].mxu0 %vm96_vm0, %v2212_v45  ;;  %v2340_v4 = vmul.f32 %v5890_v59, %v2320_v49  ;;  %v2323_v11 = vld [vmem:[#allocation2 + $0xd8] sm:$0xff]  ;;  %v6012_v59 = vpop.permute.xlu1 %3119  ;;  %v2609_v60 = vld [vmem:[#allocation8 + $0x110] sm:$0xff] }
 0x14f   :  { %v2321_v1 = vld [vmem:[#allocation2 + $0xc8] sm:$0xff]  ;;  %619 = vst.msk [vmem:[#allocation2 + $0xf8] sm:$0xff] %vm96_vm0, %v4668_v58  ;;  %v601_v41 = vpop.f32.mrb[31].mxu1  ;;  %5122 = vmatpush3.bf16.msra.mxu0 %v5119_v39  ;;  %v2343_v15 = vmul.f32 %v5896_v61, %v2323_v11  ;;  %v5135_v2 = vpack.c.bf16 %v2610_v20, %v2609_v60  ;;  %v5139_v39 = vpack.c.bf16 %v2739_v32, %v2738_v31  ;;  %v2719_v49 = vpop.permute.xlu0 %2718  ;;  %v3000_v20 = vld [vmem:[#allocation8 + $0x160] sm:$0xff] }
 0x150   :  { %v2341_v7 = vmul.f32 %v2330_v43, %v2321_v1  ;;  %617 = vst.msk [vmem:[#allocation2 + $0xe8] sm:$0xff] %vm96_vm0, %v601_v41  ;;  %4871 = vmatprep.mubr.msk.f32.mxu0 %vm96_vm0, %v2340_v4  ;;  %5124 = vmatprep.subr.bf16.mxu0 %v5123_v48  ;;  %v2869_v4 = vld [vmem:[#allocation8 + $0x140] sm:$0xff] }
 0x152   :  { %4872 = vmatmul.mubr.msk.f32.vlgmr.msra.gmra.mrb[0].mxu0 %vm96_vm0, %v2341_v7  ;;  %v6023_v33 = vpop.permute.xlu1 %3123  ;;  %v5147_v7 = vpack.c.bf16 %v2870_v6, %v2869_v4 }
 0x153   :  { %4874 = vmatprep.mubr.msk.f32.mxu0 %vm96_vm0, %v2342_v10  ;;  %5126 = vmatpush3.bf16.msra.mxu0 %v5123_v48  ;;  %v2872_v10 = vld [vmem:[#allocation8 + $0x158] sm:$0xff]  ;;  %v2731_v12 = vpop.permute.xlu0 %2730 }
 0x154   :  { %v4675_v14 = vpop.f32.mrb[32].mxu1  ;;  %5128 = vmatprep.subr.bf16.mxu0 %v5127_v54  ;;  %v2453_v24 = vld [vmem:[#allocation2 + $0xf0] sm:$0xff] }
 0x155   :  { %v2451_v18 = vld [vmem:[#allocation2 + $0xe0] sm:$0xff]  ;;  %684 = vst.msk [vmem:[#allocation2 + $0x110] sm:$0xff] %vm96_vm0, %v4675_v14  ;;  %v664_v19 = vpop.f32.mrb[33].mxu1  ;;  %v2473_v50 = vmul.f32 %v5903_v63, %v2453_v24  ;;  %v2741_v63 = vld [vmem:[#allocation8 + $0x138] sm:$0xff] }
 0x156   :  { %v2471_v46 = vmul.f32 %v2457_v9, %v2451_v18  ;;  %682 = vst.msk [vmem:[#allocation2 + $0x100] sm:$0xff] %vm96_vm0, %v664_v19  ;;  %v4676_v23 = vpop.f32.mrb[34].mxu1  ;;  %4875 = vmatmul.mubr.msk.f32.gmra.mrb[2].mxu0 %vm96_vm0, %v2343_v15  ;;  %v2454_v30 = vld [vmem:[#allocation2 + $0xf8] sm:$0xff]  ;;  %v6028_v53 = vpop.permute.xlu1 %3246  ;;  %v5143_v51 = vpack.c.bf16 %v2741_v63, %v2740_v22 }
 0x157   :  { %685 = vst.msk [vmem:[#allocation2 + $0x118] sm:$0xff] %vm96_vm0, %v4676_v23  ;;  %v667_v26 = vpop.f32.mrb[35].mxu1  ;;  %5130 = vmatpush3.bf16.msra.mxu0 %v5127_v54  ;;  %v2452_v61 = vld [vmem:[#allocation2 + $0xe8] sm:$0xff]  ;;  %v2474_v56 = vmul.f32 %v2469_v21, %v2454_v30  ;;  %v2854_v23 = vpop.permute.xlu0 %2853  ;;  %v3132_v63 = vld [vmem:[#allocation8 + $0x188] sm:$0xff] }
 0x158   :  { %683 = vst.msk [vmem:[#allocation2 + $0x108] sm:$0xff] %vm96_vm0, %v667_v26  ;;  %4885 = vmatprep.mubr.msk.f32.mxu0 %vm96_vm0, %v2471_v46  ;;  %v2472_v27 = vmul.f32 %v5900_v62, %v2452_v61  ;;  %5132 = vmatprep.subr.bf16.mxu0 %v5131_v16  ;;  %v3001_v46 = vld [vmem:[#allocation8 + $0x168] sm:$0xff] }
 0x159   :  { %v5155_v61 = vpack.c.bf16 %v3001_v46, %v3000_v20 }
 0x15a   :  { %4886 = vmatmul.mubr.msk.f32.vlgmr.msra.gmra.mrb[0].mxu0 %vm96_vm0, %v2472_v27 }
 0x15b   :  { %4888 = vmatprep.mubr.msk.f32.mxu0 %vm96_vm0, %v2473_v50  ;;  %5134 = vmatpush3.bf16.msra.mxu0 %v5131_v16 }
 0x15c   :  { %v4683_v37 = vpop.f32.mrb[36].mxu1  ;;  %5136 = vmatprep.subr.bf16.mxu0 %v5135_v2  ;;  %v2584_v45 = vld [vmem:[#allocation2 + $0x110] sm:$0xff] }
 0x15d   :  { %750 = vst.msk [vmem:[#allocation2 + $0x130] sm:$0xff] %vm96_vm0, %v4683_v37  ;;  %v730_v62 = vpop.f32.mrb[37].mxu1  ;;  %v2582_v40 = vld [vmem:[#allocation2 + $0x100] sm:$0xff]  ;;  %v2604_v52 = vmul.f32 %v5912_v5, %v2584_v45 }
 0x15e   :  { %748 = vst.msk [vmem:[#allocation2 + $0x120] sm:$0xff] %vm96_vm0, %v730_v62  ;;  %v4684_v38 = vpop.f32.mrb[38].mxu1  ;;  %4889 = vmatmul.mubr.msk.f32.gmra.mrb[2].mxu0 %vm96_vm0, %v2474_v56  ;;  %v2602_v43 = vmul.f32 %v5907_v8, %v2582_v40  ;;  %v2585_v58 = vld [vmem:[#allocation2 + $0x118] sm:$0xff]  ;;  %v6039_v8 = vpop.permute.xlu1 %3250  ;;  %v2871_v5 = vld [vmem:[#allocation8 + $0x150] sm:$0xff] }
 0x15f   :  { %v2583_v47 = vld [vmem:[#allocation2 + $0x108] sm:$0xff]  ;;  %751 = vst.msk [vmem:[#allocation2 + $0x138] sm:$0xff] %vm96_vm0, %v4684_v38  ;;  %v733_v48 = vpop.f32.mrb[39].mxu1  ;;  %5138 = vmatpush3.bf16.msra.mxu0 %v5135_v2  ;;  %v2605_v41 = vmul.f32 %v5920_v28, %v2585_v58  ;;  %v5151_v18 = vpack.c.bf16 %v2872_v10, %v2871_v5  ;;  %v3002_v2 = vld [vmem:[#allocation8 + $0x170] sm:$0xff]  ;;  %v3262_v5 = vld [vmem:[#allocation8 + $0x1a0] sm:$0xff] }
 0x160   :  { %v2603_v57 = vmul.f32 %v2592_v34, %v2583_v47  ;;  %749 = vst.msk [vmem:[#allocation2 + $0x128] sm:$0xff] %vm96_vm0, %v733_v48  ;;  %4899 = vmatprep.mubr.msk.f32.mxu0 %vm96_vm0, %v2602_v43  ;;  %5140 = vmatprep.subr.bf16.mxu0 %v5139_v39  ;;  %v3263_v10 = vld [vmem:[#allocation8 + $0x1a8] sm:$0xff] }
 0x162   :  { %4900 = vmatmul.mubr.msk.f32.vlgmr.msra.gmra.mrb[0].mxu0 %vm96_vm0, %v2603_v57  ;;  %v6050_v21 = vpop.permute.xlu1 %3373 }
 0x163   :  { %4902 = vmatprep.mubr.msk.f32.mxu0 %vm96_vm0, %v2604_v52  ;;  %5142 = vmatpush3.bf16.msra.mxu0 %v5139_v39  ;;  %v2981_v39 = vpop.permute.xlu0 %2980 }
 0x164   :  { %v4691_v1 = vpop.f32.mrb[40].mxu1  ;;  %5144 = vmatprep.subr.bf16.mxu0 %v5143_v51  ;;  %v2715_v14 = vld [vmem:[#allocation2 + $0x130] sm:$0xff] }
 0x165   :  { %v2713_v9 = vld [vmem:[#allocation2 + $0x120] sm:$0xff]  ;;  %816 = vst.msk [vmem:[#allocation2 + $0x150] sm:$0xff] %vm96_vm0, %v4691_v1  ;;  %v796_v54 = vpop.f32.mrb[41].mxu1  ;;  %v2735_v60 = vmul.f32 %v5938_v0, %v2715_v14  ;;  %v3003_v0 = vld [vmem:[#allocation8 + $0x178] sm:$0xff]  ;;  %v5171_v14 = vpack.c.bf16 %v3263_v10, %v3262_v5 }
 0x166   :  { %v2733_v11 = vmul.f32 %v2719_v49, %v2713_v9  ;;  %814 = vst.msk [vmem:[#allocation2 + $0x140] sm:$0xff] %vm96_vm0, %v796_v54  ;;  %v4692_v13 = vpop.f32.mrb[42].mxu1  ;;  %4903 = vmatmul.mubr.msk.f32.gmra.mrb[2].mxu0 %vm96_vm0, %v2605_v41  ;;  %v2716_v19 = vld [vmem:[#allocation2 + $0x138] sm:$0xff]  ;;  %v6059_v56 = vpop.permute.xlu1 %3381  ;;  %v5159_v62 = vpack.c.bf16 %v3003_v0, %v3002_v2  ;;  %v3134_v49 = vld [vmem:[#allocation8 + $0x198] sm:$0xff] }
 0x167   :  { %817 = vst.msk [vmem:[#allocation2 + $0x158] sm:$0xff] %vm96_vm0, %v4692_v13  ;;  %v799_v15 = vpop.f32.mrb[43].mxu1  ;;  %5146 = vmatpush3.bf16.msra.mxu0 %v5143_v51  ;;  %v2714_v28 = vld [vmem:[#allocation2 + $0x128] sm:$0xff]  ;;  %v2736_v24 = vmul.f32 %v2731_v12, %v2716_v19  ;;  %v2993_v52 = vpop.permute.xlu0 %2992 }
 0x168   :  { %815 = vst.msk [vmem:[#allocation2 + $0x148] sm:$0xff] %vm96_vm0, %v799_v15  ;;  %4913 = vmatprep.mubr.msk.f32.mxu0 %vm96_vm0, %v2733_v11  ;;  %v2734_v16 = vmul.f32 %v5927_v36, %v2714_v28  ;;  %5148 = vmatprep.subr.bf16.mxu0 %v5147_v7  ;;  %v3264_v28 = vld [vmem:[#allocation8 + $0x1b0] sm:$0xff] }
 0x16a   :  { %4914 = vmatmul.mubr.msk.f32.vlgmr.msra.gmra.mrb[0].mxu0 %vm96_vm0, %v2734_v16  ;;  %v6068_v57 = vpop.permute.xlu1 %3385 }
 0x16b   :  { %4916 = vmatprep.mubr.msk.f32.mxu0 %vm96_vm0, %v2735_v60  ;;  %5150 = vmatpush3.bf16.msra.mxu0 %v5147_v7  ;;  %v3116_v11 = vpop.permute.xlu0 %3115 }
 0x16c   :  { %v4699_v26 = vpop.f32.mrb[44].mxu1  ;;  %5152 = vmatprep.subr.bf16.mxu0 %v5151_v18  ;;  %v2846_v31 = vld [vmem:[#allocation2 + $0x150] sm:$0xff] }
 0x16d   :  { %882 = vst.msk [vmem:[#allocation2 + $0x170] sm:$0xff] %vm96_vm0, %v4699_v26  ;;  %v862_v36 = vpop.f32.mrb[45].mxu1  ;;  %v2844_v27 = vld [vmem:[#allocation2 + $0x140] sm:$0xff]  ;;  %v2866_v40 = vmul.f32 %v5965_v42, %v2846_v31 }
 0x16e   :  { %880 = vst.msk [vmem:[#allocation2 + $0x160] sm:$0xff] %vm96_vm0, %v862_v36  ;;  %v4700_v30 = vpop.f32.mrb[46].mxu1  ;;  %4917 = vmatmul.mubr.msk.f32.gmra.mrb[2].mxu0 %vm96_vm0, %v2736_v24  ;;  %v2864_v50 = vmul.f32 %v5950_v25, %v2844_v27  ;;  %v2847_v22 = vld [vmem:[#allocation2 + $0x158] sm:$0xff]  ;;  %v3131_v25 = vld [vmem:[#allocation8 + $0x180] sm:$0xff]  ;;  %v3133_v42 = vld [vmem:[#allocation8 + $0x190] sm:$0xff]  ;;  %v6077_v54 = vpop.permute.xlu1 %3508 }
 0x16f   :  { %v2845_v32 = vld [vmem:[#allocation2 + $0x148] sm:$0xff]  ;;  %883 = vst.msk [vmem:[#allocation2 + $0x178] sm:$0xff] %vm96_vm0, %v4700_v30  ;;  %v865_v34 = vpop.f32.mrb[47].mxu1  ;;  %5154 = vmatpush3.bf16.msra.mxu0 %v5151_v18  ;;  %v2867_v43 = vmul.f32 %v5974_v44, %v2847_v22  ;;  %v5163_v45 = vpack.c.bf16 %v3132_v63, %v3131_v25  ;;  %v5167_v41 = vpack.c.bf16 %v3134_v49, %v3133_v42  ;;  %v3243_v24 = vpop.permute.xlu0 %3242  ;;  %v3394_v27 = vld [vmem:[#allocation8 + $0x1c8] sm:$0xff] }
 0x170   :  { %v2865_v37 = vmul.f32 %v2854_v23, %v2845_v32  ;;  %881 = vst.msk [vmem:[#allocation2 + $0x168] sm:$0xff] %vm96_vm0, %v865_v34  ;;  %4927 = vmatprep.mubr.msk.f32.mxu0 %vm96_vm0, %v2864_v50  ;;  %5156 = vmatprep.subr.bf16.mxu0 %v5155_v61  ;;  %v3396_v34 = vld [vmem:[#allocation8 + $0x1d8] sm:$0xff] }
 0x172   :  { %4928 = vmatmul.mubr.msk.f32.vlgmr.msra.gmra.mrb[0].mxu0 %vm96_vm0, %v2865_v37  ;;  %v6086_v46 = vpop.permute.xlu1 %3512 }
 0x173   :  { %4930 = vmatprep.mubr.msk.f32.mxu0 %vm96_vm0, %v2866_v40  ;;  %5158 = vmatpush3.bf16.msra.mxu0 %v5155_v61 }
 0x174   :  { %v4707_v38 = vpop.f32.mrb[48].mxu1  ;;  %5160 = vmatprep.subr.bf16.mxu0 %v5159_v62  ;;  %v2977_v4 = vld [vmem:[#allocation2 + $0x170] sm:$0xff] }
 0x175   :  { %v2975_v47 = vld [vmem:[#allocation2 + $0x160] sm:$0xff]  ;;  %948 = vst.msk [vmem:[#allocation2 + $0x190] sm:$0xff] %vm96_vm0, %v4707_v38  ;;  %v928_v48 = vpop.f32.mrb[49].mxu1  ;;  %v2997_v9 = vmul.f32 %v5992_v35, %v2977_v4  ;;  %v3265_v35 = vld [vmem:[#allocation8 + $0x1b8] sm:$0xff] }
 0x176   :  { %v2995_v51 = vmul.f32 %v2981_v39, %v2975_v47  ;;  %946 = vst.msk [vmem:[#allocation2 + $0x180] sm:$0xff] %vm96_vm0, %v928_v48  ;;  %v4708_v58 = vpop.f32.mrb[50].mxu1  ;;  %4931 = vmatmul.mubr.msk.f32.gmra.mrb[2].mxu0 %vm96_vm0, %v2867_v43  ;;  %v2978_v7 = vld [vmem:[#allocation2 + $0x178] sm:$0xff]  ;;  %v5175_v26 = vpack.c.bf16 %v3265_v35, %v3264_v28  ;;  %v6095_v32 = vpop.permute.xlu1 %3635  ;;  %v3526_v4 = vld [vmem:[#allocation8 + $0x1f0] sm:$0xff] }
 0x177   :  { %949 = vst.msk [vmem:[#allocation2 + $0x198] sm:$0xff] %vm96_vm0, %v4708_v58  ;;  %v931_v44 = vpop.f32.mrb[51].mxu1  ;;  %5162 = vmatpush3.bf16.msra.mxu0 %v5159_v62  ;;  %v2976_v6 = vld [vmem:[#allocation2 + $0x168] sm:$0xff]  ;;  %v2998_v12 = vmul.f32 %v2993_v52, %v2978_v7  ;;  %v3255_v39 = vpop.permute.xlu0 %3254  ;;  %v3525_v47 = vld [vmem:[#allocation8 + $0x1e8] sm:$0xff] }
 0x178   :  { %947 = vst.msk [vmem:[#allocation2 + $0x188] sm:$0xff] %vm96_vm0, %v931_v44  ;;  %4941 = vmatprep.mubr.msk.f32.mxu0 %vm96_vm0, %v2995_v51  ;;  %v2996_v1 = vmul.f32 %v5983_v55, %v2976_v6  ;;  %5164 = vmatprep.subr.bf16.mxu0 %v5163_v45 }
 0x17a   :  { %4942 = vmatmul.mubr.msk.f32.vlgmr.msra.gmra.mrb[0].mxu0 %vm96_vm0, %v2996_v1  ;;  %v6106_v42 = vpop.permute.xlu1 %3643 }
 0x17b   :  { %4944 = vmatprep.mubr.msk.f32.mxu0 %vm96_vm0, %v2997_v9  ;;  %5166 = vmatpush3.bf16.msra.mxu0 %v5163_v45  ;;  %v3524_v45 = vld [vmem:[#allocation8 + $0x1e0] sm:$0xff]  ;;  %v3378_v48 = vpop.permute.xlu0 %3377 }
 0x17c   :  { %v4715_v13 = vpop.f32.mrb[52].mxu1  ;;  %5168 = vmatprep.subr.bf16.mxu0 %v5167_v41  ;;  %v3108_v19 = vld [vmem:[#allocation2 + $0x190] sm:$0xff]  ;;  %v5187_v52 = vpack.c.bf16 %v3525_v47, %v3524_v45 }
 0x17d   :  { %1014 = vst.msk [vmem:[#allocation2 + $0x1b0] sm:$0xff] %vm96_vm0, %v4715_v13  ;;  %v994_v55 = vpop.f32.mrb[53].mxu1  ;;  %v3106_v15 = vld [vmem:[#allocation2 + $0x180] sm:$0xff]  ;;  %v3128_v61 = vmul.f32 %v6012_v59, %v3108_v19  ;;  %v3658_v19 = vld [vmem:[#allocation8 + $0x218] sm:$0xff] }
 0x17e   :  { %1012 = vst.msk [vmem:[#allocation2 + $0x1a0] sm:$0xff] %vm96_vm0, %v994_v55  ;;  %v4716_v16 = vpop.f32.mrb[54].mxu1  ;;  %4945 = vmatmul.mubr.msk.f32.gmra.mrb[2].mxu0 %vm96_vm0, %v2998_v12  ;;  %v3126_v18 = vmul.f32 %v6001_v3, %v3106_v15  ;;  %v3109_v36 = vld [vmem:[#allocation2 + $0x198] sm:$0xff]  ;;  %v3393_v3 = vld [vmem:[#allocation8 + $0x1c0] sm:$0xff]  ;;  %v3395_v59 = vld [vmem:[#allocation8 + $0x1d0] sm:$0xff] }
 0x17f   :  { %v3107_v60 = vld [vmem:[#allocation2 + $0x188] sm:$0xff]  ;;  %1015 = vst.msk [vmem:[#allocation2 + $0x1b8] sm:$0xff] %vm96_vm0, %v4716_v16  ;;  %v997_v20 = vpop.f32.mrb[55].mxu1  ;;  %5170 = vmatpush3.bf16.msra.mxu0 %v5167_v41  ;;  %v3129_v0 = vmul.f32 %v6023_v33, %v3109_v36  ;;  %v5179_v30 = vpack.c.bf16 %v3394_v27, %v3393_v3  ;;  %v5183_v63 = vpack.c.bf16 %v3396_v34, %v3395_v59  ;;  %v3505_v5 = vpop.permute.xlu0 %3504 }
 0x180   :  { %v3127_v23 = vmul.f32 %v3116_v11, %v3107_v60  ;;  %1013 = vst.msk [vmem:[#allocation2 + $0x1a8] sm:$0xff] %vm96_vm0, %v997_v20  ;;  %4955 = vmatprep.mubr.msk.f32.mxu0 %vm96_vm0, %v3126_v18  ;;  %5172 = vmatprep.subr.bf16.mxu0 %v5171_v14  ;;  %v6115_v11 = vpop.permute.xlu1 %3647 }
 0x182   :  { %4956 = vmatmul.mubr.msk.f32.vlgmr.msra.gmra.mrb[0].mxu0 %vm96_vm0, %v3127_v23 }
 0x183   :  { %4958 = vmatprep.mubr.msk.f32.mxu0 %vm96_vm0, %v3128_v61  ;;  %5174 = vmatpush3.bf16.msra.mxu0 %v5171_v14  ;;  %v3656_v14 = vld [vmem:[#allocation8 + $0x208] sm:$0xff]  ;;  %v3517_v20 = vpop.permute.xlu0 %3516 }
 0x184   :  { %v4723_v2 = vpop.f32.mrb[56].mxu1  ;;  %5176 = vmatprep.subr.bf16.mxu0 %v5175_v26  ;;  %v3239_v40 = vld [vmem:[#allocation2 + $0x1b0] sm:$0xff]  ;;  %v6122_v18 = vpop.permute.xlu1 %3770 }
 0x185   :  { %v3237_v50 = vld [vmem:[#allocation2 + $0x1a0] sm:$0xff]  ;;  %1080 = vst.msk [vmem:[#allocation2 + $0x1d0] sm:$0xff] %vm96_vm0, %v4723_v2  ;;  %v1060_v31 = vpop.f32.mrb[57].mxu1  ;;  %v3259_v43 = vmul.f32 %v6039_v8, %v3239_v40  ;;  %v3527_v8 = vld [vmem:[#allocation8 + $0x1f8] sm:$0xff]  ;;  %v3786_v2 = vld [vmem:[#allocation8 + $0x220] sm:$0xff] }
 0x186   :  { %v3257_v37 = vmul.f32 %v3243_v24, %v3237_v50  ;;  %1078 = vst.msk [vmem:[#allocation2 + $0x1c0] sm:$0xff] %vm96_vm0, %v1060_v31  ;;  %v4724_v62 = vpop.f32.mrb[58].mxu1  ;;  %4959 = vmatmul.mubr.msk.f32.gmra.mrb[2].mxu0 %vm96_vm0, %v3129_v0  ;;  %v3240_v38 = vld [vmem:[#allocation2 + $0x1b8] sm:$0xff]  ;;  %v5191_v10 = vpack.c.bf16 %v3527_v8, %v3526_v4  ;;  %v3919_v8 = vld [vmem:[#allocation8 + $0x250] sm:$0xff] }
 0x187   :  { %1081 = vst.msk [vmem:[#allocation2 + $0x1d8] sm:$0xff] %vm96_vm0, %v4724_v62  ;;  %v1063_v33 = vpop.f32.mrb[59].mxu1  ;;  %5178 = vmatpush3.bf16.msra.mxu0 %v5175_v26  ;;  %v3238_v22 = vld [vmem:[#allocation2 + $0x1a8] sm:$0xff]  ;;  %v3260_v49 = vmul.f32 %v3255_v39, %v3240_v38  ;;  %v3787_v0 = vld [vmem:[#allocation8 + $0x228] sm:$0xff]  ;;  %v3788_v39 = vld [vmem:[#allocation8 + $0x230] sm:$0xff] }
 0x188   :  { %1079 = vst.msk [vmem:[#allocation2 + $0x1c8] sm:$0xff] %vm96_vm0, %v1063_v33  ;;  %4969 = vmatprep.mubr.msk.f32.mxu0 %vm96_vm0, %v3257_v37  ;;  %v3258_v25 = vmul.f32 %v6028_v53, %v3238_v22  ;;  %5180 = vmatprep.subr.bf16.mxu0 %v5179_v30  ;;  %v3775_v50 = vpop.permute.xlu1 %3774  ;;  %v5203_v34 = vpack.c.bf16 %v3787_v0, %v3786_v2  ;;  %v3789_v62 = vld [vmem:[#allocation8 + $0x238] sm:$0xff] }
 0x18a   :  { %4970 = vmatmul.mubr.msk.f32.vlgmr.msra.gmra.mrb[0].mxu0 %vm96_vm0, %v3258_v25 }
 0x18b   :  { %4972 = vmatprep.mubr.msk.f32.mxu0 %vm96_vm0, %v3259_v43  ;;  %5182 = vmatpush3.bf16.msra.mxu0 %v5179_v30  ;;  %v3640_v30 = vpop.permute.xlu0 %3639  ;;  %v5207_v43 = vpack.c.bf16 %v3789_v62, %v3788_v39 }
 0x18c   :  { %v4731_v51 = vpop.f32.mrb[60].mxu1  ;;  %5184 = vmatprep.subr.bf16.mxu0 %v5183_v63  ;;  %v3370_v1 = vld [vmem:[#allocation2 + $0x1d0] sm:$0xff]  ;;  %v3898_v45 = vpop.permute.xlu1 %3897 }
 0x18d   :  { %1146 = vst.msk [vmem:[#allocation2 + $0x1f0] sm:$0xff] %vm96_vm0, %v4731_v51  ;;  %v1126_v53 = vpop.f32.mrb[61].mxu1  ;;  %v3368_v58 = vld [vmem:[#allocation2 + $0x1c0] sm:$0xff]  ;;  %v3390_v12 = vmul.f32 %v6059_v56, %v3370_v1 }
 0x18e   :  { %1144 = vst.msk [vmem:[#allocation2 + $0x1e0] sm:$0xff] %vm96_vm0, %v1126_v53  ;;  %v4732_v44 = vpop.f32.mrb[62].mxu1  ;;  %4973 = vmatmul.mubr.msk.f32.gmra.mrb[2].mxu0 %vm96_vm0, %v3260_v49  ;;  %v3388_v6 = vmul.f32 %v6050_v21, %v3368_v58  ;;  %v3371_v13 = vld [vmem:[#allocation2 + $0x1d8] sm:$0xff]  ;;  %v3655_v21 = vld [vmem:[#allocation8 + $0x200] sm:$0xff]  ;;  %v3657_v56 = vld [vmem:[#allocation8 + $0x210] sm:$0xff] }
 0x18f   :  { %v3369_v41 = vld [vmem:[#allocation2 + $0x1c8] sm:$0xff]  ;;  %1147 = vst.msk [vmem:[#allocation2 + $0x1f8] sm:$0xff] %vm96_vm0, %v4732_v44  ;;  %v1129_v7 = vpop.f32.mrb[63].mxu1  ;;  %5186 = vmatpush3.bf16.msra.mxu0 %v5183_v63  ;;  %v3391_v15 = vmul.f32 %v6068_v57, %v3371_v13  ;;  %v5195_v28 = vpack.c.bf16 %v3656_v14, %v3655_v21  ;;  %v5199_v36 = vpack.c.bf16 %v3658_v19, %v3657_v56  ;;  %v3767_v38 = vpop.permute.xlu0 %3766  ;;  %v3917_v49 = vld [vmem:[#allocation8 + $0x240] sm:$0xff] }
 0x190   :  { %v3389_v9 = vmul.f32 %v3378_v48, %v3369_v41  ;;  %1145 = vst.msk [vmem:[#allocation2 + $0x1e8] sm:$0xff] %vm96_vm0, %v1129_v7  ;;  %4983 = vmatprep.mubr.msk.f32.mxu0 %vm96_vm0, %v3388_v6  ;;  %5188 = vmatprep.subr.bf16.mxu0 %v5187_v52  ;;  %v3920_v44 = vld [vmem:[#allocation8 + $0x258] sm:$0xff]  ;;  %v3906_v7 = vpop.permute.xlu1 %3905 }
 0x192   :  { %4984 = vmatmul.mubr.msk.f32.vlgmr.msra.gmra.mrb[0].mxu0 %vm96_vm0, %v3389_v9 }
 0x193   :  { %4986 = vmatprep.mubr.msk.f32.mxu0 %vm96_vm0, %v3390_v12  ;;  %5190 = vmatpush3.bf16.msra.mxu0 %v5187_v52  ;;  %v3779_v6 = vpop.permute.xlu0 %3778 }
 0x194   :  { %v4739_v55 = vpop.f32.mrb[64].mxu1  ;;  %5192 = vmatprep.subr.bf16.mxu0 %v5191_v10  ;;  %v3501_v24 = vld [vmem:[#allocation2 + $0x1f0] sm:$0xff] }
 0x195   :  { %v3499_v35 = vld [vmem:[#allocation2 + $0x1e0] sm:$0xff]  ;;  %1212 = vst.msk [vmem:[#allocation2 + $0x210] sm:$0xff] %vm96_vm0, %v4739_v55  ;;  %v1192_v16 = vpop.f32.mrb[65].mxu1  ;;  %v3521_v27 = vmul.f32 %v6086_v46, %v3501_v24 }
 0x196   :  { %v3519_v60 = vmul.f32 %v3505_v5, %v3499_v35  ;;  %1210 = vst.msk [vmem:[#allocation2 + $0x200] sm:$0xff] %vm96_vm0, %v1192_v16  ;;  %v4740_v23 = vpop.f32.mrb[66].mxu1  ;;  %4987 = vmatmul.mubr.msk.f32.gmra.mrb[2].mxu0 %vm96_vm0, %v3391_v15  ;;  %v3502_v3 = vld [vmem:[#allocation2 + $0x1f8] sm:$0xff]  ;;  %v3910_v15 = vpop.permute.xlu1 %3909 }
 0x197   :  { %1213 = vst.msk [vmem:[#allocation2 + $0x218] sm:$0xff] %vm96_vm0, %v4740_v23  ;;  %v1195_v57 = vpop.f32.mrb[67].mxu1  ;;  %5194 = vmatpush3.bf16.msra.mxu0 %v5191_v10  ;;  %v3500_v26 = vld [vmem:[#allocation2 + $0x1e8] sm:$0xff]  ;;  %v3522_v31 = vmul.f32 %v3517_v20, %v3502_v3  ;;  %v3902_v21 = vpop.permute.xlu0 %3901 }
 0x198   :  { %1211 = vst.msk [vmem:[#allocation2 + $0x208] sm:$0xff] %vm96_vm0, %v1195_v57  ;;  %4997 = vmatprep.mubr.msk.f32.mxu0 %vm96_vm0, %v3519_v60  ;;  %v3520_v61 = vmul.f32 %v6077_v54, %v3500_v26  ;;  %5196 = vmatprep.subr.bf16.mxu0 %v5195_v28 }
 0x19a   :  { %4998 = vmatmul.mubr.msk.f32.vlgmr.msra.gmra.mrb[0].mxu0 %vm96_vm0, %v3520_v61  ;;  %v4037_v57 = vpop.permute.xlu1 %4036 }
 0x19b   :  { %5000 = vmatprep.mubr.msk.f32.mxu0 %vm96_vm0, %v3521_v27  ;;  %5198 = vmatpush3.bf16.msra.mxu0 %v5195_v28  ;;  %v4029_v23 = vpop.permute.xlu0 %4028 }
 0x19c   :  { %v4747_v59 = vpop.f32.mrb[68].mxu1  ;;  %5200 = vmatprep.subr.bf16.mxu0 %v5199_v36  ;;  %v3632_v33 = vld [vmem:[#allocation2 + $0x210] sm:$0xff] }
 0x19d   :  { %1278 = vst.msk [vmem:[#allocation2 + $0x230] sm:$0xff] %vm96_vm0, %v4747_v59  ;;  %v1258_v54 = vpop.f32.mrb[69].mxu1  ;;  %v3630_v37 = vld [vmem:[#allocation2 + $0x200] sm:$0xff]  ;;  %v3652_v47 = vmul.f32 %v6106_v42, %v3632_v33 }
 0x19e   :  { %1276 = vst.msk [vmem:[#allocation2 + $0x220] sm:$0xff] %vm96_vm0, %v1258_v54  ;;  %v4748_v46 = vpop.f32.mrb[70].mxu1  ;;  %5001 = vmatmul.mubr.msk.f32.gmra.mrb[2].mxu0 %vm96_vm0, %v3522_v31  ;;  %v3650_v40 = vmul.f32 %v6095_v32, %v3630_v37  ;;  %v3633_v48 = vld [vmem:[#allocation2 + $0x218] sm:$0xff] }
 0x19f   :  { %v3631_v22 = vld [vmem:[#allocation2 + $0x208] sm:$0xff]  ;;  %1279 = vst.msk [vmem:[#allocation2 + $0x238] sm:$0xff] %vm96_vm0, %v4748_v46  ;;  %v1261_v25 = vpop.f32.mrb[71].mxu1  ;;  %5202 = vmatpush3.bf16.msra.mxu0 %v5199_v36  ;;  %v3918_v32 = vld [vmem:[#allocation8 + $0x248] sm:$0xff]  ;;  %v3653_v52 = vmul.f32 %v6115_v11, %v3633_v48  ;;  %v5215_v11 = vpack.c.bf16 %v3920_v44, %v3919_v8  ;;  %v4041_v0 = vpop.permute.xlu0 %4040 }
 0x1a0   :  { %v3651_v63 = vmul.f32 %v3640_v30, %v3631_v22  ;;  %1277 = vst.msk [vmem:[#allocation2 + $0x228] sm:$0xff] %vm96_vm0, %v1261_v25  ;;  %5011 = vmatprep.mubr.msk.f32.mxu0 %vm96_vm0, %v3650_v40  ;;  %5204 = vmatprep.subr.bf16.mxu0 %v5203_v34  ;;  %v5211_v53 = vpack.c.bf16 %v3918_v32, %v3917_v49  ;;  %v4356_v25 = vld [vmem:[%s6206_s8] ss:$0 sm:$0xff] }
 0x1a2   :  { %5012 = vmatmul.mubr.msk.f32.vlgmr.msra.gmra.mrb[0].mxu0 %vm96_vm0, %v3651_v63 }
 0x1a3   :  { %5014 = vmatprep.mubr.msk.f32.mxu0 %vm96_vm0, %v3652_v47  ;;  %5206 = vmatpush3.bf16.msra.mxu0 %v5203_v34 }
 0x1a4   :  { %v4755_v51 = vpop.f32.mrb[72].mxu1  ;;  %5208 = vmatprep.subr.bf16.mxu0 %v5207_v43  ;;  %v3763_v41 = vld [vmem:[#allocation2 + $0x230] sm:$0xff] }
 0x1a5   :  { %v3761_v58 = vld [vmem:[#allocation2 + $0x220] sm:$0xff]  ;;  %1344 = vst.msk [vmem:[#allocation2 + $0x250] sm:$0xff] %vm96_vm0, %v4755_v51  ;;  %v1324_v4 = vpop.f32.mrb[73].mxu1  ;;  %v3783_v13 = vmul.f32 %v3775_v50, %v3763_v41  ;;  %v4033_v50 = vpop.permute.xlu1 %4032 }
 0x1a6   :  { %v3781_v42 = vmul.f32 %v3767_v38, %v3761_v58  ;;  %1342 = vst.msk [vmem:[#allocation2 + $0x240] sm:$0xff] %vm96_vm0, %v1324_v4  ;;  %v4756_v1 = vpop.f32.mrb[74].mxu1  ;;  %5015 = vmatmul.mubr.msk.f32.gmra.mrb[2].mxu0 %vm96_vm0, %v3653_v52  ;;  %v3764_v12 = vld [vmem:[#allocation2 + $0x238] sm:$0xff] }
 0x1a7   :  { %1345 = vst.msk [vmem:[#allocation2 + $0x258] sm:$0xff] %vm96_vm0, %v4756_v1  ;;  %v1327_v9 = vpop.f32.mrb[75].mxu1  ;;  %5210 = vmatpush3.bf16.msra.mxu0 %v5207_v43  ;;  %v3762_v5 = vld [vmem:[#allocation2 + $0x228] sm:$0xff]  ;;  %v3784_v14 = vmul.f32 %v3779_v6, %v3764_v12 }
 0x1a8   :  { %1343 = vst.msk [vmem:[#allocation2 + $0x248] sm:$0xff] %vm96_vm0, %v1327_v9  ;;  %5025 = vmatprep.mubr.msk.f32.mxu0 %vm96_vm0, %v3781_v42  ;;  %v3782_v10 = vmul.f32 %v6122_v18, %v3762_v5  ;;  %5212 = vmatprep.subr.bf16.mxu0 %v5211_v53 }
 0x1aa   :  { %5026 = vmatmul.mubr.msk.f32.vlgmr.msra.gmra.mrb[0].mxu0 %vm96_vm0, %v3782_v10 }
 0x1ab   :  { %5028 = vmatprep.mubr.msk.f32.mxu0 %vm96_vm0, %v3783_v13  ;;  %5214 = vmatpush3.bf16.msra.mxu0 %v5211_v53 }
 0x1ac   :  { %v4763_v55 = vpop.f32.mrb[76].mxu1  ;;  %5216 = vmatprep.subr.bf16.mxu0 %v5215_v11  ;;  %v3894_v56 = vld [vmem:[#allocation2 + $0x250] sm:$0xff] }
 0x1ad   :  { %1410 = vst.msk [vmem:[#allocation2 + $0x270] sm:$0xff] %vm96_vm0, %v4763_v55  ;;  %v1390_v28 = vpop.f32.mrb[77].mxu1  ;;  %v3892_v35 = vld [vmem:[#allocation2 + $0x240] sm:$0xff]  ;;  %v3914_v26 = vmul.f32 %v3906_v7, %v3894_v56 }
 0x1ae   :  { %1408 = vst.msk [vmem:[#allocation2 + $0x260] sm:$0xff] %vm96_vm0, %v1390_v28  ;;  %v4764_v16 = vpop.f32.mrb[78].mxu1  ;;  %5029 = vmatmul.mubr.msk.f32.gmra.mrb[2].mxu0 %vm96_vm0, %v3784_v14  ;;  %v3912_v18 = vmul.f32 %v3898_v45, %v3892_v35  ;;  %v3895_v24 = vld [vmem:[#allocation2 + $0x258] sm:$0xff] }
 0x1af   :  { %v3893_v19 = vld [vmem:[#allocation2 + $0x248] sm:$0xff]  ;;  %1411 = vst.msk [vmem:[#allocation2 + $0x278] sm:$0xff] %vm96_vm0, %v4764_v16  ;;  %v1393_v60 = vpop.f32.mrb[79].mxu1  ;;  %5218 = vmatpush3.bf16.msra.mxu0 %v5215_v11  ;;  %v3915_v61 = vmul.f32 %v3910_v15, %v3895_v24 }
 0x1b0   :  { %v3913_v20 = vmul.f32 %v3902_v21, %v3893_v19  ;;  %1409 = vst.msk [vmem:[#allocation2 + $0x268] sm:$0xff] %vm96_vm0, %v1393_v60  ;;  %5039 = vmatprep.mubr.msk.f32.mxu0 %vm96_vm0, %v3912_v18  ;;  %5220 = vmatprep.subr.bf16.mxu0 %v5945_v17 }
 0x1b2   :  { %5040 = vmatmul.mubr.msk.f32.vlgmr.msra.gmra.mrb[0].mxu0 %vm96_vm0, %v3913_v20 }
 0x1b3   :  { %5042 = vmatprep.mubr.msk.f32.mxu0 %vm96_vm0, %v3914_v26  ;;  %5222 = vmatpush3.bf16.msra.mxu0 %v5945_v17  ;;  %v4270_v17 = vld [vmem:[%s6204_s6] ss:$0 sm:$0xff]  ;;  %s5506_s6 = smov [#allocation9]  }
 0x1b4   :  { %v4025_v36 = vld [vmem:[#allocation2 + $0x270] sm:$0xff]  ;;  %5224 = vmatprep.subr.bf16.mxu0 %v5956_v29 }
 0x1b5   :  { %v4045_v3 = vmul.f32 %v4037_v57, %v4025_v36  ;;  %v4023_v27 = vld [vmem:[#allocation2 + $0x260] sm:$0xff] }
 0x1b6   :  { %v4043_v2 = vmul.f32 %v4029_v23, %v4023_v27  ;;  %v4026_v30 = vld [vmem:[#allocation2 + $0x278] sm:$0xff]  ;;  %5043 = vmatmul.mubr.msk.f32.gmra.mrb[2].mxu0 %vm96_vm0, %v3915_v61 }
 0x1b7   :  { %v4024_v31 = vld [vmem:[#allocation2 + $0x268] sm:$0xff]  ;;  %v4046_v59 = vmul.f32 %v4041_v0, %v4026_v30  ;;  %5226 = vmatpush3.bf16.msra.mxu0 %v5956_v29  ;;  %5056 = vmatprep.mubr.msk.f32.mxu1 %vm96_vm0, %v4045_v3  ;;  %v4355_v29 = vld [vmem:[%s6205_s7] ss:$0 sm:$0xff]  ;;  %s4196_s7 = sshll.u32 %s5506_s6, 4  ;;  %s4197_s7 = int_to_ptr.vmem [resolvable:$true] %s4196_s7 }
 0x1b8   :  { %v4044_v34 = vmul.f32 %v4033_v50, %v4024_v31  ;;  %5053 = vmatprep.mubr.msk.f32.mxu0 %vm96_vm0, %v4043_v2  ;;  %s5451_s8 = scalar_lea.vmem %s4197_s7, 512  ;;  %p5456_p11 = scmp.lt.s32.totalorder %s4197_s7, %s4197_s7 }
 0x1b9   :  { %5057 = vmatmul.mubr.msk.f32.vlgmr.msra.gmra.mrb[80].mxu1 %vm96_vm0, %v4046_v59  ;;  %p5452_p10 = scmp.ne.s32.totalorder %s4197_s7, %s5451_s8  ;;  %p5457_p12 = scmp.lt.s32.totalorder %s5451_s8, %s5451_s8 }
 0x1ba   :  { %5054 = vmatmul.mubr.msk.f32.vlgmr.msra.gmra.mrb[0].mxu0 %vm96_vm0, %v4044_v34 }
 0x1bb   :  { %p5458_p13 = por %p5457_p12, %p5456_p11 }
 0x1bd   :  { %p5459_p0 = pnand %p5458_p13, %p5452_p10 }
 0x289   :  { %v5044_v54 = vpop.f32.mrb[2].mxu0 }
 0x28a   :  { %v5233_v37 = vadd.f32 %v5044_v54, %v4270_v17  ;;  %v4009_v39 = vpop.f32.mrb[3].mxu0 }
 0x28b   :  { %v5235_v62 = vadd.f32 %v4270_v17, %v4009_v39 }
 0x28c   :  { %v5058_v46 = vpop.f32.mrb[80].mxu1 }
 0x28d   :  { %v5234_v40 = vadd.f32 %v5233_v37, %v5058_v46  ;;  %v5055_v33 = vpop.f32.mrb[0].mxu0  ;;  %v4140_v22 = vpop.f32.mrb[81].mxu1 }
 0x28e   :  { %v5231_v63 = vadd.f32 %v5055_v33, %v4270_v17  ;;  %v5236_v38 = vadd.f32 %v5235_v62, %v4140_v22  ;;  %v4130_v43 = vpop.f32.mrb[1].mxu0 }
 0x28f   :  { %v4163_v45 = vmul.f32 %v5234_v40, %v4355_v29  ;;  %v5232_v47 = vadd.f32 %v4270_v17, %v4130_v43 }
 0x290   :  { %v4161_v48 = vmul.f32 %v5231_v63, %v4355_v29  ;;  %v4162_v49 = vmul.f32 %v5236_v38, %v4355_v29 }
 0x291   :  { %v4174_v32 = vadd.f32 %v4356_v25, %v4163_v45  ;;  %v4160_v51 = vmul.f32 %v5232_v47, %v4355_v29 }
 0x292   :  { %v4172_v52 = vadd.f32 %v4356_v25, %v4161_v48  ;;  %v4173_v53 = vadd.f32 %v4356_v25, %v4162_v49 }
 0x293   :  { %vm4178_vm1 = vcmp.ge.f32.partialorder %v4174_v32, 0.0  ;;  %v4182_v58 = vmul.f32 0.01, %v4174_v32  ;;  %v4171_v4 = vadd.f32 %v4356_v25, %v4160_v51 }
 0x294   :  { %vm4176_vm2 = vcmp.ge.f32.partialorder %v4172_v52, 0.0  ;;  %v4180_v8 = vmul.f32 0.01, %v4172_v52  ;;  %vm4177_vm3 = vcmp.ge.f32.partialorder %v4173_v53, 0.0  ;;  %v4181_v44 = vmul.f32 0.01, %v4173_v53 }
 0x295   :  { %v4186_v42 = vsel %vm4178_vm1, %v4174_v32, %v4182_v58  ;;  %vm4175_vm4 = vcmp.ge.f32.partialorder %v4171_v4, 0.0  ;;  %v4179_v6 = vmul.f32 0.01, %v4171_v4 }
 0x296   :  { %4190 = vst.msk [vmem:[#allocation9 + $0x18] sm:$0xff] %vm96_vm0, %v4186_v42  ;;  %v4184_v1 = vsel %vm4176_vm2, %v4172_v52, %v4180_v8  ;;  %v4185_v41 = vsel %vm4177_vm3, %v4173_v53, %v4181_v44 }
 0x297   :  { %4188 = vst.msk [vmem:[#allocation9 + $0x8] sm:$0xff] %vm96_vm0, %v4184_v1  ;;  %4189 = vst.msk [vmem:[#allocation9 + $0x10] sm:$0xff] %vm96_vm0, %v4185_v41  ;;  %v4183_v7 = vsel %vm4175_vm4, %v4171_v4, %v4179_v6 }
 0x298   :  { %4187 = vst.msk [vmem:[#allocation9] sm:$0xff] %vm96_vm0, %v4183_v7 }
 0x299   :  { %5462 = shalt.err (!%p5459_p0)
}
 0x29a   :  { %s5463_s12 = scalar_lea.hbm %s6207_s9, 512 }
 0x29b   :  { %p5464_p1 = scmp.ne.s32.totalorder %s6207_s9, %s5463_s12  ;;  %p5467_p2 = scmp.lt.u32.totalorder %s5463_s12, %s6207_s9 }
 0x29d   :  { %p5469_p3 = pnand %p5467_p2, %p5464_p1 }
 0x29f   :  { %5472 = shalt.err (!%p5469_p3)
}
 0x2a0   :  { %4202 = dma.vmem_to_hbm [thread:$0]  %s4197_s7, 512, %s6207_s9, [#allocation5], %s5483_s1, %s5483_s1, %s5484_s10  }
 0x2a1   :  { %5477 = dma.done.wait [#allocation5], 512  }
 0x2a2   :  { %5478 = vsyncadd [#allocation5], 4294966784 }
 0x2a3   :  { %4206 = vsyncpa [#allocation4], 1 }
 0x2a4   :  { %4207 = vsyncpa [#allocation7], 1 }
 0x2a5   :  { %4208 = vsyncpa [#allocation5], 1 }

</bundles_post_ra>
